<compile_context>
chip_gen: v6e
topology: v6e:2x2x1
jax: 0.10.0
libtpu: 0.0.40
codegen_flags: <defaults>
</compile_context>

<pallas_src>
import numpy as np

import jax
import jax.numpy as jnp
from jax.experimental import pallas as pl
from jax.experimental.pallas import tpu as pltpu

NUM_CLASSES = 10
BN_EPS = 1e-5
# Geometry implied by fc1 = Linear(256*8*1*1, 64): D=64, H=W=2 inputs.
D_IN, H_IN, W_IN = 64, 2, 2


def _round_up(x, m):
    return (x + m - 1) // m * m


# ----------------------------------------------------------------------------
# Model parameters (same shapes / conventions as the PyTorch module).
# ----------------------------------------------------------------------------
def init_params(key):
    ks = jax.random.split(key, 16)
    f32 = jnp.float32

    def w(k, shape, fan_in):
        return jax.random.normal(k, shape, f32) / jnp.sqrt(f32(fan_in))

    p = {}
    p["conv1_w"] = w(ks[0], (64, 1, 3, 2, 2), 1 * 3 * 2 * 2)
    p["conv1_b"] = 0.01 * jax.random.normal(ks[1], (64,), f32)
    p["bn1_gamma"] = 1.0 + 0.1 * jax.random.normal(ks[2], (64,), f32)
    p["bn1_beta"] = 0.1 * jax.random.normal(ks[3], (64,), f32)
    p["bn1_mean"] = 0.1 * jax.random.normal(ks[4], (64,), f32)
    p["bn1_var"] = jax.random.uniform(ks[5], (64,), f32, 0.5, 1.5)

    p["conv2_w"] = w(ks[6], (128, 64, 3, 2, 2), 64 * 3 * 2 * 2)
    p["conv2_b"] = 0.01 * jax.random.normal(ks[7], (128,), f32)
    p["bn2_gamma"] = 1.0 + 0.1 * jax.random.normal(ks[8], (128,), f32)
    p["bn2_beta"] = 0.1 * jax.random.normal(ks[9], (128,), f32)
    p["bn2_mean"] = 0.1 * jax.random.normal(ks[10], (128,), f32)
    p["bn2_var"] = jax.random.uniform(ks[11], (128,), f32, 0.5, 1.5)

    p["conv3_w"] = w(ks[12], (256, 128, 3, 2, 2), 128 * 3 * 2 * 2)
    p["conv3_b"] = 0.01 * jax.random.normal(ks[13], (256,), f32)

    fck = jax.random.split(ks[14], 8)
    p["fc1_w"] = w(fck[0], (256 * 8 * 1 * 1, 64), 2048)
    p["fc1_b"] = 0.01 * jax.random.normal(fck[1], (64,), f32)
    p["fc2_w"] = w(fck[2], (64, 32), 64)
    p["fc2_b"] = 0.01 * jax.random.normal(fck[3], (32,), f32)
    p["fc3_w"] = w(fck[4], (32, 16), 32)
    p["fc3_b"] = 0.01 * jax.random.normal(fck[5], (16,), f32)
    p["fc4_w"] = w(fck[6], (16, NUM_CLASSES), 16)
    p["fc4_b"] = 0.01 * jax.random.normal(fck[7], (NUM_CLASSES,), f32)
    return p


# ----------------------------------------------------------------------------
# One-time host-side weight preparation (hoisted out of the jitted forward).
# ----------------------------------------------------------------------------
def prepare_params(params):
    f32 = np.float32
    p = {k: np.asarray(v, f32) for k, v in params.items()}

    def fold_bn(w, b, gamma, beta, mean, var):
        s = gamma / np.sqrt(var + BN_EPS)
        return w * s[:, None, None, None, None], b * s + (beta - mean * s)

    def conv_taps_hw1(w):
        # Layers whose input has H = W = 1 (conv2, conv3): for pooled output
        # position (y, x) only the tap (dy, dx) = (1-y, 1-x) touches real data.
        cout, cin, kd, _, _ = w.shape
        cin_p, cout_p = _round_up(cin, 128), _round_up(cout, 128)
        v = np.zeros((kd, cin_p, 4 * cout_p), f32)
        for g, (y, x) in enumerate([(0, 0), (0, 1), (1, 0), (1, 1)]):
            dy, dx = 1 - y, 1 - x
            v[:, :cin, g * cout_p:g * cout_p + cout] = np.transpose(
                w[:, :, :, dy, dx], (2, 1, 0))
        return v

    def conv1_taps(w):
        # conv1 input has H = W = 2 and C_in = 1: flatten (h, w) into 4 input
        # "channels" q = h*2 + w; tap (dy, dx) = (h-y+1, w-x+1) when valid.
        cout, kd = w.shape[0], w.shape[2]
        cout_p = _round_up(cout, 128)
        v = np.zeros((kd, 128, 4 * cout_p), f32)
        for g, (y, x) in enumerate([(0, 0), (0, 1), (1, 0), (1, 1)]):
            for q, (h, w_) in enumerate([(0, 0), (0, 1), (1, 0), (1, 1)]):
                dy, dx = h - y + 1, w_ - x + 1
                if 0 <= dy <= 1 and 0 <= dx <= 1:
                    v[:, q, g * cout_p:g * cout_p + cout] = np.transpose(
                        w[:, 0, :, dy, dx])
        return v

    def big_bias(b, cout_p):
        bb = np.zeros((cout_p,), f32)
        bb[:b.shape[0]] = b
        return np.tile(bb, 4)[None, :]

    w1, c1 = fold_bn(p["conv1_w"], p["conv1_b"], p["bn1_gamma"],
                     p["bn1_beta"], p["bn1_mean"], p["bn1_var"])
    w2, c2 = fold_bn(p["conv2_w"], p["conv2_b"], p["bn2_gamma"],
                     p["bn2_beta"], p["bn2_mean"], p["bn2_var"])
    w3, c3 = p["conv3_w"], p["conv3_b"]

    prep = {
        "v1": jnp.asarray(conv1_taps(w1), jnp.bfloat16),     # (3, 128, 512)
        "b1": jnp.asarray(big_bias(c1, 128), jnp.float32),   # (1, 512)
        "v2": jnp.asarray(conv_taps_hw1(w2), jnp.bfloat16),  # (3, 128, 512)
        "b2": jnp.asarray(big_bias(c2, 128), jnp.float32),   # (1, 512)
        "v3": jnp.asarray(conv_taps_hw1(w3), jnp.bfloat16),  # (3, 128, 1024)
        "b3": jnp.asarray(big_bias(c3, 256), jnp.float32),   # (1, 1024)
    }

    # fc1 consumes the torch channel-major flatten of (B, 256, 8, 1, 1); the
    # kernel keeps activations depth-major, so regroup rows to (d, c, j).
    w1fc = p["fc1_w"].reshape(256, 8, 64).transpose(1, 0, 2)  # (8, 256, 64)
    w1fc_p = np.zeros((8, 256, 128), f32)
    w1fc_p[:, :, :64] = w1fc
    c1fc_p = np.zeros((1, 128), f32)
    c1fc_p[0, :64] = p["fc1_b"]
    prep["w1fc"] = jnp.asarray(w1fc_p, jnp.bfloat16)
    prep["c1fc"] = jnp.asarray(c1fc_p, jnp.float32)

    def pad_fc(w, b):
        kin, kout = w.shape
        wp = np.zeros((_round_up(kin, 128), 128), f32)
        wp[:kin, :kout] = w
        bp = np.zeros((1, 128), f32)
        bp[0, :kout] = b
        return jnp.asarray(wp, jnp.bfloat16), jnp.asarray(bp, jnp.float32)

    prep["w2fc"], prep["c2fc"] = pad_fc(p["fc2_w"], p["fc2_b"])
    prep["w3fc"], prep["c3fc"] = pad_fc(p["fc3_w"], p["fc3_b"])
    prep["w4fc"], prep["c4fc"] = pad_fc(p["fc4_w"], p["fc4_b"])
    return prep


# ----------------------------------------------------------------------------
# The fused kernel (one batch element per grid step).
# ----------------------------------------------------------------------------
def _cnn3d_fused_kernel(x_ref, v1_ref, b1_ref, v2_ref, b2_ref, v3_ref, b3_ref,
                        w1_ref, c1_ref, w2_ref, c2_ref, w3_ref, c3_ref,
                        w4_ref, c4_ref, o_ref, p1_ref, p2_ref, p3_ref):
    f32, bf16 = jnp.float32, jnp.bfloat16

    def conv_block(a_in, p_ref, v_ref, b_ref, d_in, c_out):
        # a_in: (d_in, Cin_pad) bf16, p_ref: (d_in+2, Cin_pad) scratch,
        # v_ref: (3, Cin_pad, 4*c_out) bf16, b_ref: (1, 4*c_out) f32.
        cp = p_ref.shape[1]
        zero_row = jnp.zeros((1, cp), bf16)
        p_ref[0:1, :] = zero_row                     # depth zero-pad (front)
        p_ref[d_in + 1:d_in + 2, :] = zero_row       # depth zero-pad (back)
        p_ref[1:d_in + 1, :] = a_in
        # 3 depth taps = 3 matmuls on shifted views (K grid fully collapsed).
        z = jnp.dot(p_ref[0:d_in, :], v_ref[0], preferred_element_type=f32)
        z = z + jnp.dot(p_ref[1:d_in + 1, :], v_ref[1],
                        preferred_element_type=f32)
        z = z + jnp.dot(p_ref[2:d_in + 2, :], v_ref[2],
                        preferred_element_type=f32)
        z = jnp.maximum(z + b_ref[...], 0.0)         # folded bias/BN + ReLU
        # MaxPool over the 4 pooled (y, x) positions: lane-group max.
        zc = jnp.maximum(
            jnp.maximum(z[:, 0:c_out], z[:, c_out:2 * c_out]),
            jnp.maximum(z[:, 2 * c_out:3 * c_out], z[:, 3 * c_out:4 * c_out]))
        # MaxPool over depth pairs.
        zc = jnp.max(zc.reshape(d_in // 2, 2, c_out), axis=1)
        return zc.astype(bf16)

    a1 = conv_block(x_ref[0], p1_ref, v1_ref, b1_ref, D_IN, 128)     # (32,128)
    a2 = conv_block(a1, p2_ref, v2_ref, b2_ref, D_IN // 2, 128)      # (16,128)
    a3 = conv_block(a2, p3_ref, v3_ref, b3_ref, D_IN // 4, 256)      # (8,256)

    # FC head (tanh, tanh, relu, linear). Every matmul is kept at M=8 (one
    # sublane tile); all 8 rows carry the same sample and row 0 is read back.
    h = jnp.zeros((8, 128), f32)
    for d in range(8):                                # fc1 over the 8 depths
        row = jnp.broadcast_to(a3[d:d + 1, :], (8, 256))
        h = h + jnp.dot(row, w1_ref[d], preferred_element_type=f32)
    h = jnp.tanh(h + c1_ref[...])
    h = jnp.dot(h.astype(bf16), w2_ref[...], preferred_element_type=f32)
    h = jnp.tanh(h + c2_ref[...])
    h = jnp.dot(h.astype(bf16), w3_ref[...], preferred_element_type=f32)
    h = jnp.maximum(h + c3_ref[...], 0.0)
    h = jnp.dot(h.astype(bf16), w4_ref[...], preferred_element_type=f32)
    # TODO(synk): nn.Dropout(0.2) is the identity in eval mode; training-mode
    # RNG masking is not implemented.
    o_ref[0] = (h + c4_ref[...]).astype(o_ref.dtype)


# ----------------------------------------------------------------------------
# Forward pass: one pallas_call for the entire network.
# ----------------------------------------------------------------------------
def cnn3d_forward(prep, x):
    B, C, D, H, W = x.shape
    assert (C, D, H, W) == (1, D_IN, H_IN, W_IN), x.shape
    # Flatten (h, w) into 4 "input channels" per depth row, pad to 128 lanes.
    xr = x.reshape(B, D_IN, H_IN * W_IN)
    xr = jnp.pad(xr, ((0, 0), (0, 0), (0, 128 - H_IN * W_IN)))
    xr = xr.astype(jnp.bfloat16)

    def const_spec(shape):
        nd = len(shape)
        return pl.BlockSpec(shape, lambda b, _nd=nd: (0,) * _nd)

    out = pl.pallas_call(
        _cnn3d_fused_kernel,
        out_shape=jax.ShapeDtypeStruct((B, 8, 128), jnp.float32),
        grid_spec=pltpu.PrefetchScalarGridSpec(
            num_scalar_prefetch=0,
            grid=(B,),
            in_specs=[
                pl.BlockSpec((1, D_IN, 128), lambda b: (b, 0, 0)),
                const_spec((3, 128, 512)), const_spec((1, 512)),
                const_spec((3, 128, 512)), const_spec((1, 512)),
                const_spec((3, 128, 1024)), const_spec((1, 1024)),
                const_spec((8, 256, 128)), const_spec((1, 128)),
                const_spec((128, 128)), const_spec((1, 128)),
                const_spec((128, 128)), const_spec((1, 128)),
                const_spec((128, 128)), const_spec((1, 128)),
            ],
            out_specs=pl.BlockSpec((1, 8, 128), lambda b: (b, 0, 0)),
            scratch_shapes=[
                pltpu.VMEM((D_IN + 2, 128), jnp.bfloat16),       # conv1 depth pad
                pltpu.VMEM((D_IN // 2 + 2, 128), jnp.bfloat16),  # conv2 depth pad
                pltpu.VMEM((D_IN // 4 + 2, 128), jnp.bfloat16),  # conv3 depth pad
            ],
        ),
        compiler_params=pltpu.CompilerParams(
            dimension_semantics=("parallel",)),
    )(xr, prep["v1"], prep["b1"], prep["v2"], prep["b2"], prep["v3"],
      prep["b3"], prep["w1fc"], prep["c1fc"], prep["w2fc"], prep["c2fc"],
      prep["w3fc"], prep["c3fc"], prep["w4fc"], prep["c4fc"])
    return out[:, 0, :NUM_CLASSES]


if __name__ == "__main__":
    key = jax.random.PRNGKey(0)
    pkey, xkey = jax.random.split(key)
    params = init_params(pkey)
    prep = prepare_params(params)   # one-time weight prep, outside jit
    # Input consistent with fc1 = Linear(256*8*1*1, 64):
    # (B=2, C=1, D=64, H=2, W=2) -> after 3x (conv, pool) -> (B, 256, 8, 1, 1)
    x = jax.random.normal(xkey, (2, 1, D_IN, H_IN, W_IN), jnp.float32)

    fwd = jax.jit(cnn3d_forward)
    out = jax.block_until_ready(fwd(prep, x))
    assert out.shape == (2, NUM_CLASSES), out.shape
    assert bool(jnp.all(jnp.isfinite(out)))
    print("KERNEL_OK")
</pallas_src>

<mosaic_0001>
module attributes {stable_mosaic.version = 11 : i64} {
  func.func @_cnn3d_fused_kernel(%arg0: i32, %arg1: memref<1x64x128xbf16, #tpu.memory_space<vmem>>, %arg2: memref<3x128x512xbf16, #tpu.memory_space<vmem>>, %arg3: memref<1x512xf32, #tpu.memory_space<vmem>>, %arg4: memref<3x128x512xbf16, #tpu.memory_space<vmem>>, %arg5: memref<1x512xf32, #tpu.memory_space<vmem>>, %arg6: memref<3x128x1024xbf16, #tpu.memory_space<vmem>>, %arg7: memref<1x1024xf32, #tpu.memory_space<vmem>>, %arg8: memref<8x256x128xbf16, #tpu.memory_space<vmem>>, %arg9: memref<1x128xf32, #tpu.memory_space<vmem>>, %arg10: memref<128x128xbf16, #tpu.memory_space<vmem>>, %arg11: memref<1x128xf32, #tpu.memory_space<vmem>>, %arg12: memref<128x128xbf16, #tpu.memory_space<vmem>>, %arg13: memref<1x128xf32, #tpu.memory_space<vmem>>, %arg14: memref<128x128xbf16, #tpu.memory_space<vmem>>, %arg15: memref<1x128xf32, #tpu.memory_space<vmem>>, %arg16: memref<1x8x128xf32, #tpu.memory_space<vmem>>, %arg17: memref<66x128xbf16, #tpu.memory_space<vmem>>, %arg18: memref<34x128xbf16, #tpu.memory_space<vmem>>, %arg19: memref<18x128xbf16, #tpu.memory_space<vmem>>) attributes {dimension_semantics = [#tpu.dimension_semantics<parallel>], iteration_bounds = array<i64: 2>, scalar_prefetch = 0 : i64, scratch_operands = 3 : i64, tpu.core_type = #tpu.core_type<tc>, window_params = [{transform_indices = @transform_0, window_bounds = array<i64: 1, 64, 128>}, {pipeline_mode = #tpu.pipeline_mode<synchronous>, transform_indices = @transform_1, window_bounds = array<i64: 3, 128, 512>}, {pipeline_mode = #tpu.pipeline_mode<synchronous>, transform_indices = @transform_2, window_bounds = array<i64: 1, 512>}, {pipeline_mode = #tpu.pipeline_mode<synchronous>, transform_indices = @transform_3, window_bounds = array<i64: 3, 128, 512>}, {pipeline_mode = #tpu.pipeline_mode<synchronous>, transform_indices = @transform_4, window_bounds = array<i64: 1, 512>}, {pipeline_mode = #tpu.pipeline_mode<synchronous>, transform_indices = @transform_5, window_bounds = array<i64: 3, 128, 1024>}, {pipeline_mode = #tpu.pipeline_mode<synchronous>, transform_indices = @transform_6, window_bounds = array<i64: 1, 1024>}, {pipeline_mode = #tpu.pipeline_mode<synchronous>, transform_indices = @transform_7, window_bounds = array<i64: 8, 256, 128>}, {pipeline_mode = #tpu.pipeline_mode<synchronous>, transform_indices = @transform_8, window_bounds = array<i64: 1, 128>}, {pipeline_mode = #tpu.pipeline_mode<synchronous>, transform_indices = @transform_9, window_bounds = array<i64: 128, 128>}, {pipeline_mode = #tpu.pipeline_mode<synchronous>, transform_indices = @transform_10, window_bounds = array<i64: 1, 128>}, {pipeline_mode = #tpu.pipeline_mode<synchronous>, transform_indices = @transform_11, window_bounds = array<i64: 128, 128>}, {pipeline_mode = #tpu.pipeline_mode<synchronous>, transform_indices = @transform_12, window_bounds = array<i64: 1, 128>}, {pipeline_mode = #tpu.pipeline_mode<synchronous>, transform_indices = @transform_13, window_bounds = array<i64: 128, 128>}, {pipeline_mode = #tpu.pipeline_mode<synchronous>, transform_indices = @transform_14, window_bounds = array<i64: 1, 128>}, {transform_indices = @transform_15, window_bounds = array<i64: 1, 8, 128>}]} {
    %c0 = arith.constant 0 : index
    %c0_0 = arith.constant 0 : index
    %c0_1 = arith.constant 0 : index
    %0 = vector.load %arg1[%c0, %c0_0, %c0_1] : memref<1x64x128xbf16, #tpu.memory_space<vmem>>, vector<1x64x128xbf16>
    %1 = vector.shape_cast %0 : vector<1x64x128xbf16> to vector<64x128xbf16>
    %cst = arith.constant 0.000000e+00 : bf16
    %2 = vector.broadcast %cst : bf16 to vector<1x128xbf16>
    %c0_2 = arith.constant 0 : index
    %c0_3 = arith.constant 0 : index
    %3 = vector.load %arg17[%c0_2, %c0_3] : memref<66x128xbf16, #tpu.memory_space<vmem>>, vector<1x128xbf16>
    tpu.vector_store %arg17[%c0_2, %c0_3], %2 {strides = array<i32>} : memref<66x128xbf16, #tpu.memory_space<vmem>>, vector<1x128xbf16>,
    %c65 = arith.constant 65 : index
    %c0_4 = arith.constant 0 : index
    %4 = vector.load %arg17[%c65, %c0_4] : memref<66x128xbf16, #tpu.memory_space<vmem>>, vector<1x128xbf16>
    tpu.vector_store %arg17[%c65, %c0_4], %2 {strides = array<i32>} : memref<66x128xbf16, #tpu.memory_space<vmem>>, vector<1x128xbf16>,
    %c1 = arith.constant 1 : index
    %c0_5 = arith.constant 0 : index
    %5 = vector.load %arg17[%c1, %c0_5] : memref<66x128xbf16, #tpu.memory_space<vmem>>, vector<64x128xbf16>
    tpu.vector_store %arg17[%c1, %c0_5], %1 {strides = array<i32>} : memref<66x128xbf16, #tpu.memory_space<vmem>>, vector<64x128xbf16>,
    %c0_6 = arith.constant 0 : index
    %c0_7 = arith.constant 0 : index
    %6 = vector.load %arg17[%c0_6, %c0_7] : memref<66x128xbf16, #tpu.memory_space<vmem>>, vector<64x128xbf16>
    %c0_8 = arith.constant 0 : index
    %c0_9 = arith.constant 0 : index
    %c0_10 = arith.constant 0 : index
    %7 = vector.load %arg2[%c0_8, %c0_9, %c0_10] : memref<3x128x512xbf16, #tpu.memory_space<vmem>>, vector<1x128x512xbf16>
    %8 = vector.shape_cast %7 : vector<1x128x512xbf16> to vector<128x512xbf16>
    %cst_11 = arith.constant dense<0.000000e+00> : vector<64x512xf32>
    %9 = tpu.matmul %6, %8, %cst_11 {dimension_numbers = #tpu.dot_dimension_numbers<[1], [0], [0], [1], [0, 0, 1, 1], [], []>} : vector<64x128xbf16>, vector<128x512xbf16>, vector<64x512xf32> -> vector<64x512xf32>
    %c1_12 = arith.constant 1 : index
    %c0_13 = arith.constant 0 : index
    %10 = vector.load %arg17[%c1_12, %c0_13] : memref<66x128xbf16, #tpu.memory_space<vmem>>, vector<64x128xbf16>
    %c1_14 = arith.constant 1 : index
    %c0_15 = arith.constant 0 : index
    %c0_16 = arith.constant 0 : index
    %11 = vector.load %arg2[%c1_14, %c0_15, %c0_16] : memref<3x128x512xbf16, #tpu.memory_space<vmem>>, vector<1x128x512xbf16>
    %12 = vector.shape_cast %11 : vector<1x128x512xbf16> to vector<128x512xbf16>
    %cst_17 = arith.constant dense<0.000000e+00> : vector<64x512xf32>
    %13 = tpu.matmul %10, %12, %cst_17 {dimension_numbers = #tpu.dot_dimension_numbers<[1], [0], [0], [1], [0, 0, 1, 1], [], []>} : vector<64x128xbf16>, vector<128x512xbf16>, vector<64x512xf32> -> vector<64x512xf32>
    %14 = arith.addf %9, %13 : vector<64x512xf32>
    %c2 = arith.constant 2 : index
    %c0_18 = arith.constant 0 : index
    %15 = vector.load %arg17[%c2, %c0_18] : memref<66x128xbf16, #tpu.memory_space<vmem>>, vector<64x128xbf16>
    %c2_19 = arith.constant 2 : index
    %c0_20 = arith.constant 0 : index
    %c0_21 = arith.constant 0 : index
    %16 = vector.load %arg2[%c2_19, %c0_20, %c0_21] : memref<3x128x512xbf16, #tpu.memory_space<vmem>>, vector<1x128x512xbf16>
    %17 = vector.shape_cast %16 : vector<1x128x512xbf16> to vector<128x512xbf16>
    %cst_22 = arith.constant dense<0.000000e+00> : vector<64x512xf32>
    %18 = tpu.matmul %15, %17, %cst_22 {dimension_numbers = #tpu.dot_dimension_numbers<[1], [0], [0], [1], [0, 0, 1, 1], [], []>} : vector<64x128xbf16>, vector<128x512xbf16>, vector<64x512xf32> -> vector<64x512xf32>
    %19 = arith.addf %14, %18 : vector<64x512xf32>
    %c0_23 = arith.constant 0 : index
    %c0_24 = arith.constant 0 : index
    %20 = vector.load %arg3[%c0_23, %c0_24] : memref<1x512xf32, #tpu.memory_space<vmem>>, vector<1x512xf32>
    %21 = vector.broadcast %20 : vector<1x512xf32> to vector<64x512xf32>
    %22 = arith.addf %19, %21 : vector<64x512xf32>
    %cst_25 = arith.constant 0.000000e+00 : f32
    %23 = vector.broadcast %cst_25 : f32 to vector<64x512xf32>
    %24 = arith.maximumf %22, %23 : vector<64x512xf32>
    %25 = vector.extract_strided_slice %24 {offsets = [0, 0], sizes = [64, 128], strides = [1, 1]} : vector<64x512xf32> to vector<64x128xf32>
    %26 = vector.extract_strided_slice %24 {offsets = [0, 128], sizes = [64, 128], strides = [1, 1]} : vector<64x512xf32> to vector<64x128xf32>
    %27 = arith.maximumf %25, %26 : vector<64x128xf32>
    %28 = vector.extract_strided_slice %24 {offsets = [0, 256], sizes = [64, 128], strides = [1, 1]} : vector<64x512xf32> to vector<64x128xf32>
    %29 = vector.extract_strided_slice %24 {offsets = [0, 384], sizes = [64, 128], strides = [1, 1]} : vector<64x512xf32> to vector<64x128xf32>
    %30 = arith.maximumf %28, %29 : vector<64x128xf32>
    %31 = arith.maximumf %27, %30 : vector<64x128xf32>
    %32 = vector.shape_cast %31 : vector<64x128xf32> to vector<32x2x128xf32>
    %cst_26 = arith.constant dense<0xFF800000> : vector<32x128xf32>
    %33 = vector.multi_reduction <maximumf>, %32, %cst_26 [1] : vector<32x2x128xf32> to vector<32x128xf32>
    %34 = arith.truncf %33 : vector<32x128xf32> to vector<32x128xbf16>
    %cst_27 = arith.constant 0.000000e+00 : bf16
    %35 = vector.broadcast %cst_27 : bf16 to vector<1x128xbf16>
    %c0_28 = arith.constant 0 : index
    %c0_29 = arith.constant 0 : index
    %36 = vector.load %arg18[%c0_28, %c0_29] : memref<34x128xbf16, #tpu.memory_space<vmem>>, vector<1x128xbf16>
    tpu.vector_store %arg18[%c0_28, %c0_29], %35 {strides = array<i32>} : memref<34x128xbf16, #tpu.memory_space<vmem>>, vector<1x128xbf16>,
    %c33 = arith.constant 33 : index
    %c0_30 = arith.constant 0 : index
    %37 = vector.load %arg18[%c33, %c0_30] : memref<34x128xbf16, #tpu.memory_space<vmem>>, vector<1x128xbf16>
    tpu.vector_store %arg18[%c33, %c0_30], %35 {strides = array<i32>} : memref<34x128xbf16, #tpu.memory_space<vmem>>, vector<1x128xbf16>,
    %c1_31 = arith.constant 1 : index
    %c0_32 = arith.constant 0 : index
    %38 = vector.load %arg18[%c1_31, %c0_32] : memref<34x128xbf16, #tpu.memory_space<vmem>>, vector<32x128xbf16>
    tpu.vector_store %arg18[%c1_31, %c0_32], %34 {strides = array<i32>} : memref<34x128xbf16, #tpu.memory_space<vmem>>, vector<32x128xbf16>,
    %c0_33 = arith.constant 0 : index
    %c0_34 = arith.constant 0 : index
    %39 = vector.load %arg18[%c0_33, %c0_34] : memref<34x128xbf16, #tpu.memory_space<vmem>>, vector<32x128xbf16>
    %c0_35 = arith.constant 0 : index
    %c0_36 = arith.constant 0 : index
    %c0_37 = arith.constant 0 : index
    %40 = vector.load %arg4[%c0_35, %c0_36, %c0_37] : memref<3x128x512xbf16, #tpu.memory_space<vmem>>, vector<1x128x512xbf16>
    %41 = vector.shape_cast %40 : vector<1x128x512xbf16> to vector<128x512xbf16>
    %cst_38 = arith.constant dense<0.000000e+00> : vector<32x512xf32>
    %42 = tpu.matmul %39, %41, %cst_38 {dimension_numbers = #tpu.dot_dimension_numbers<[1], [0], [0], [1], [0, 0, 1, 1], [], []>} : vector<32x128xbf16>, vector<128x512xbf16>, vector<32x512xf32> -> vector<32x512xf32>
    %c1_39 = arith.constant 1 : index
    %c0_40 = arith.constant 0 : index
    %43 = vector.load %arg18[%c1_39, %c0_40] : memref<34x128xbf16, #tpu.memory_space<vmem>>, vector<32x128xbf16>
    %c1_41 = arith.constant 1 : index
    %c0_42 = arith.constant 0 : index
    %c0_43 = arith.constant 0 : index
    %44 = vector.load %arg4[%c1_41, %c0_42, %c0_43] : memref<3x128x512xbf16, #tpu.memory_space<vmem>>, vector<1x128x512xbf16>
    %45 = vector.shape_cast %44 : vector<1x128x512xbf16> to vector<128x512xbf16>
    %cst_44 = arith.constant dense<0.000000e+00> : vector<32x512xf32>
    %46 = tpu.matmul %43, %45, %cst_44 {dimension_numbers = #tpu.dot_dimension_numbers<[1], [0], [0], [1], [0, 0, 1, 1], [], []>} : vector<32x128xbf16>, vector<128x512xbf16>, vector<32x512xf32> -> vector<32x512xf32>
    %47 = arith.addf %42, %46 : vector<32x512xf32>
    %c2_45 = arith.constant 2 : index
    %c0_46 = arith.constant 0 : index
    %48 = vector.load %arg18[%c2_45, %c0_46] : memref<34x128xbf16, #tpu.memory_space<vmem>>, vector<32x128xbf16>
    %c2_47 = arith.constant 2 : index
    %c0_48 = arith.constant 0 : index
    %c0_49 = arith.constant 0 : index
    %49 = vector.load %arg4[%c2_47, %c0_48, %c0_49] : memref<3x128x512xbf16, #tpu.memory_space<vmem>>, vector<1x128x512xbf16>
    %50 = vector.shape_cast %49 : vector<1x128x512xbf16> to vector<128x512xbf16>
    %cst_50 = arith.constant dense<0.000000e+00> : vector<32x512xf32>
    %51 = tpu.matmul %48, %50, %cst_50 {dimension_numbers = #tpu.dot_dimension_numbers<[1], [0], [0], [1], [0, 0, 1, 1], [], []>} : vector<32x128xbf16>, vector<128x512xbf16>, vector<32x512xf32> -> vector<32x512xf32>
    %52 = arith.addf %47, %51 : vector<32x512xf32>
    %c0_51 = arith.constant 0 : index
    %c0_52 = arith.constant 0 : index
    %53 = vector.load %arg5[%c0_51, %c0_52] : memref<1x512xf32, #tpu.memory_space<vmem>>, vector<1x512xf32>
    %54 = vector.broadcast %53 : vector<1x512xf32> to vector<32x512xf32>
    %55 = arith.addf %52, %54 : vector<32x512xf32>
    %cst_53 = arith.constant 0.000000e+00 : f32
    %56 = vector.broadcast %cst_53 : f32 to vector<32x512xf32>
    %57 = arith.maximumf %55, %56 : vector<32x512xf32>
    %58 = vector.extract_strided_slice %57 {offsets = [0, 0], sizes = [32, 128], strides = [1, 1]} : vector<32x512xf32> to vector<32x128xf32>
    %59 = vector.extract_strided_slice %57 {offsets = [0, 128], sizes = [32, 128], strides = [1, 1]} : vector<32x512xf32> to vector<32x128xf32>
    %60 = arith.maximumf %58, %59 : vector<32x128xf32>
    %61 = vector.extract_strided_slice %57 {offsets = [0, 256], sizes = [32, 128], strides = [1, 1]} : vector<32x512xf32> to vector<32x128xf32>
    %62 = vector.extract_strided_slice %57 {offsets = [0, 384], sizes = [32, 128], strides = [1, 1]} : vector<32x512xf32> to vector<32x128xf32>
    %63 = arith.maximumf %61, %62 : vector<32x128xf32>
    %64 = arith.maximumf %60, %63 : vector<32x128xf32>
    %65 = vector.shape_cast %64 : vector<32x128xf32> to vector<16x2x128xf32>
    %cst_54 = arith.constant dense<0xFF800000> : vector<16x128xf32>
    %66 = vector.multi_reduction <maximumf>, %65, %cst_54 [1] : vector<16x2x128xf32> to vector<16x128xf32>
    %67 = arith.truncf %66 : vector<16x128xf32> to vector<16x128xbf16>
    %cst_55 = arith.constant 0.000000e+00 : bf16
    %68 = vector.broadcast %cst_55 : bf16 to vector<1x128xbf16>
    %c0_56 = arith.constant 0 : index
    %c0_57 = arith.constant 0 : index
    %69 = vector.load %arg19[%c0_56, %c0_57] : memref<18x128xbf16, #tpu.memory_space<vmem>>, vector<1x128xbf16>
    tpu.vector_store %arg19[%c0_56, %c0_57], %68 {strides = array<i32>} : memref<18x128xbf16, #tpu.memory_space<vmem>>, vector<1x128xbf16>,
    %c17 = arith.constant 17 : index
    %c0_58 = arith.constant 0 : index
    %70 = vector.load %arg19[%c17, %c0_58] : memref<18x128xbf16, #tpu.memory_space<vmem>>, vector<1x128xbf16>
    tpu.vector_store %arg19[%c17, %c0_58], %68 {strides = array<i32>} : memref<18x128xbf16, #tpu.memory_space<vmem>>, vector<1x128xbf16>,
    %c1_59 = arith.constant 1 : index
    %c0_60 = arith.constant 0 : index
    %71 = vector.load %arg19[%c1_59, %c0_60] : memref<18x128xbf16, #tpu.memory_space<vmem>>, vector<16x128xbf16>
    tpu.vector_store %arg19[%c1_59, %c0_60], %67 {strides = array<i32>} : memref<18x128xbf16, #tpu.memory_space<vmem>>, vector<16x128xbf16>,
    %c0_61 = arith.constant 0 : index
    %c0_62 = arith.constant 0 : index
    %72 = vector.load %arg19[%c0_61, %c0_62] : memref<18x128xbf16, #tpu.memory_space<vmem>>, vector<16x128xbf16>
    %c0_63 = arith.constant 0 : index
    %c0_64 = arith.constant 0 : index
    %c0_65 = arith.constant 0 : index
    %73 = vector.load %arg6[%c0_63, %c0_64, %c0_65] : memref<3x128x1024xbf16, #tpu.memory_space<vmem>>, vector<1x128x1024xbf16>
    %74 = vector.shape_cast %73 : vector<1x128x1024xbf16> to vector<128x1024xbf16>
    %cst_66 = arith.constant dense<0.000000e+00> : vector<16x1024xf32>
    %75 = tpu.matmul %72, %74, %cst_66 {dimension_numbers = #tpu.dot_dimension_numbers<[1], [0], [0], [1], [0, 0, 1, 1], [], []>} : vector<16x128xbf16>, vector<128x1024xbf16>, vector<16x1024xf32> -> vector<16x1024xf32>
    %c1_67 = arith.constant 1 : index
    %c0_68 = arith.constant 0 : index
    %76 = vector.load %arg19[%c1_67, %c0_68] : memref<18x128xbf16, #tpu.memory_space<vmem>>, vector<16x128xbf16>
    %c1_69 = arith.constant 1 : index
    %c0_70 = arith.constant 0 : index
    %c0_71 = arith.constant 0 : index
    %77 = vector.load %arg6[%c1_69, %c0_70, %c0_71] : memref<3x128x1024xbf16, #tpu.memory_space<vmem>>, vector<1x128x1024xbf16>
    %78 = vector.shape_cast %77 : vector<1x128x1024xbf16> to vector<128x1024xbf16>
    %cst_72 = arith.constant dense<0.000000e+00> : vector<16x1024xf32>
    %79 = tpu.matmul %76, %78, %cst_72 {dimension_numbers = #tpu.dot_dimension_numbers<[1], [0], [0], [1], [0, 0, 1, 1], [], []>} : vector<16x128xbf16>, vector<128x1024xbf16>, vector<16x1024xf32> -> vector<16x1024xf32>
    %80 = arith.addf %75, %79 : vector<16x1024xf32>
    %c2_73 = arith.constant 2 : index
    %c0_74 = arith.constant 0 : index
    %81 = vector.load %arg19[%c2_73, %c0_74] : memref<18x128xbf16, #tpu.memory_space<vmem>>, vector<16x128xbf16>
    %c2_75 = arith.constant 2 : index
    %c0_76 = arith.constant 0 : index
    %c0_77 = arith.constant 0 : index
    %82 = vector.load %arg6[%c2_75, %c0_76, %c0_77] : memref<3x128x1024xbf16, #tpu.memory_space<vmem>>, vector<1x128x1024xbf16>
    %83 = vector.shape_cast %82 : vector<1x128x1024xbf16> to vector<128x1024xbf16>
    %cst_78 = arith.constant dense<0.000000e+00> : vector<16x1024xf32>
    %84 = tpu.matmul %81, %83, %cst_78 {dimension_numbers = #tpu.dot_dimension_numbers<[1], [0], [0], [1], [0, 0, 1, 1], [], []>} : vector<16x128xbf16>, vector<128x1024xbf16>, vector<16x1024xf32> -> vector<16x1024xf32>
    %85 = arith.addf %80, %84 : vector<16x1024xf32>
    %c0_79 = arith.constant 0 : index
    %c0_80 = arith.constant 0 : index
    %86 = vector.load %arg7[%c0_79, %c0_80] : memref<1x1024xf32, #tpu.memory_space<vmem>>, vector<1x1024xf32>
    %87 = vector.broadcast %86 : vector<1x1024xf32> to vector<16x1024xf32>
    %88 = arith.addf %85, %87 : vector<16x1024xf32>
    %cst_81 = arith.constant 0.000000e+00 : f32
    %89 = vector.broadcast %cst_81 : f32 to vector<16x1024xf32>
    %90 = arith.maximumf %88, %89 : vector<16x1024xf32>
    %91 = vector.extract_strided_slice %90 {offsets = [0, 0], sizes = [16, 256], strides = [1, 1]} : vector<16x1024xf32> to vector<16x256xf32>
    %92 = vector.extract_strided_slice %90 {offsets = [0, 256], sizes = [16, 256], strides = [1, 1]} : vector<16x1024xf32> to vector<16x256xf32>
    %93 = arith.maximumf %91, %92 : vector<16x256xf32>
    %94 = vector.extract_strided_slice %90 {offsets = [0, 512], sizes = [16, 256], strides = [1, 1]} : vector<16x1024xf32> to vector<16x256xf32>
    %95 = vector.extract_strided_slice %90 {offsets = [0, 768], sizes = [16, 256], strides = [1, 1]} : vector<16x1024xf32> to vector<16x256xf32>
    %96 = arith.maximumf %94, %95 : vector<16x256xf32>
    %97 = arith.maximumf %93, %96 : vector<16x256xf32>
    %98 = vector.shape_cast %97 : vector<16x256xf32> to vector<8x2x256xf32>
    %cst_82 = arith.constant dense<0xFF800000> : vector<8x256xf32>
    %99 = vector.multi_reduction <maximumf>, %98, %cst_82 [1] : vector<8x2x256xf32> to vector<8x256xf32>
    %100 = arith.truncf %99 : vector<8x256xf32> to vector<8x256xbf16>
    %cst_83 = arith.constant 0.000000e+00 : f32
    %101 = vector.broadcast %cst_83 : f32 to vector<8x128xf32>
    %102 = vector.extract_strided_slice %100 {offsets = [0, 0], sizes = [1, 256], strides = [1, 1]} : vector<8x256xbf16> to vector<1x256xbf16>
    %103 = vector.shape_cast %102 : vector<1x256xbf16> to vector<1x256xbf16>
    %104 = vector.broadcast %103 : vector<1x256xbf16> to vector<8x256xbf16>
    %c0_84 = arith.constant 0 : index
    %c0_85 = arith.constant 0 : index
    %c0_86 = arith.constant 0 : index
    %105 = vector.load %arg8[%c0_84, %c0_85, %c0_86] : memref<8x256x128xbf16, #tpu.memory_space<vmem>>, vector<1x256x128xbf16>
    %106 = vector.shape_cast %105 : vector<1x256x128xbf16> to vector<256x128xbf16>
    %cst_87 = arith.constant dense<0.000000e+00> : vector<8x128xf32>
    %107 = tpu.matmul %104, %106, %cst_87 {dimension_numbers = #tpu.dot_dimension_numbers<[1], [0], [0], [1], [0, 0, 1, 1], [], []>} : vector<8x256xbf16>, vector<256x128xbf16>, vector<8x128xf32> -> vector<8x128xf32>
    %108 = arith.addf %101, %107 : vector<8x128xf32>
    %109 = vector.extract_strided_slice %100 {offsets = [1, 0], sizes = [1, 256], strides = [1, 1]} : vector<8x256xbf16> to vector<1x256xbf16>
    %110 = vector.shape_cast %109 : vector<1x256xbf16> to vector<1x256xbf16>
    %111 = vector.broadcast %110 : vector<1x256xbf16> to vector<8x256xbf16>
    %c1_88 = arith.constant 1 : index
    %c0_89 = arith.constant 0 : index
    %c0_90 = arith.constant 0 : index
    %112 = vector.load %arg8[%c1_88, %c0_89, %c0_90] : memref<8x256x128xbf16, #tpu.memory_space<vmem>>, vector<1x256x128xbf16>
    %113 = vector.shape_cast %112 : vector<1x256x128xbf16> to vector<256x128xbf16>
    %cst_91 = arith.constant dense<0.000000e+00> : vector<8x128xf32>
    %114 = tpu.matmul %111, %113, %cst_91 {dimension_numbers = #tpu.dot_dimension_numbers<[1], [0], [0], [1], [0, 0, 1, 1], [], []>} : vector<8x256xbf16>, vector<256x128xbf16>, vector<8x128xf32> -> vector<8x128xf32>
    %115 = arith.addf %108, %114 : vector<8x128xf32>
    %116 = vector.extract_strided_slice %100 {offsets = [2, 0], sizes = [1, 256], strides = [1, 1]} : vector<8x256xbf16> to vector<1x256xbf16>
    %117 = vector.shape_cast %116 : vector<1x256xbf16> to vector<1x256xbf16>
    %118 = vector.broadcast %117 : vector<1x256xbf16> to vector<8x256xbf16>
    %c2_92 = arith.constant 2 : index
    %c0_93 = arith.constant 0 : index
    %c0_94 = arith.constant 0 : index
    %119 = vector.load %arg8[%c2_92, %c0_93, %c0_94] : memref<8x256x128xbf16, #tpu.memory_space<vmem>>, vector<1x256x128xbf16>
    %120 = vector.shape_cast %119 : vector<1x256x128xbf16> to vector<256x128xbf16>
    %cst_95 = arith.constant dense<0.000000e+00> : vector<8x128xf32>
    %121 = tpu.matmul %118, %120, %cst_95 {dimension_numbers = #tpu.dot_dimension_numbers<[1], [0], [0], [1], [0, 0, 1, 1], [], []>} : vector<8x256xbf16>, vector<256x128xbf16>, vector<8x128xf32> -> vector<8x128xf32>
    %122 = arith.addf %115, %121 : vector<8x128xf32>
    %123 = vector.extract_strided_slice %100 {offsets = [3, 0], sizes = [1, 256], strides = [1, 1]} : vector<8x256xbf16> to vector<1x256xbf16>
    %124 = vector.shape_cast %123 : vector<1x256xbf16> to vector<1x256xbf16>
    %125 = vector.broadcast %124 : vector<1x256xbf16> to vector<8x256xbf16>
    %c3 = arith.constant 3 : index
    %c0_96 = arith.constant 0 : index
    %c0_97 = arith.constant 0 : index
    %126 = vector.load %arg8[%c3, %c0_96, %c0_97] : memref<8x256x128xbf16, #tpu.memory_space<vmem>>, vector<1x256x128xbf16>
    %127 = vector.shape_cast %126 : vector<1x256x128xbf16> to vector<256x128xbf16>
    %cst_98 = arith.constant dense<0.000000e+00> : vector<8x128xf32>
    %128 = tpu.matmul %125, %127, %cst_98 {dimension_numbers = #tpu.dot_dimension_numbers<[1], [0], [0], [1], [0, 0, 1, 1], [], []>} : vector<8x256xbf16>, vector<256x128xbf16>, vector<8x128xf32> -> vector<8x128xf32>
    %129 = arith.addf %122, %128 : vector<8x128xf32>
    %130 = vector.extract_strided_slice %100 {offsets = [4, 0], sizes = [1, 256], strides = [1, 1]} : vector<8x256xbf16> to vector<1x256xbf16>
    %131 = vector.shape_cast %130 : vector<1x256xbf16> to vector<1x256xbf16>
    %132 = vector.broadcast %131 : vector<1x256xbf16> to vector<8x256xbf16>
    %c4 = arith.constant 4 : index
    %c0_99 = arith.constant 0 : index
    %c0_100 = arith.constant 0 : index
    %133 = vector.load %arg8[%c4, %c0_99, %c0_100] : memref<8x256x128xbf16, #tpu.memory_space<vmem>>, vector<1x256x128xbf16>
    %134 = vector.shape_cast %133 : vector<1x256x128xbf16> to vector<256x128xbf16>
    %cst_101 = arith.constant dense<0.000000e+00> : vector<8x128xf32>
    %135 = tpu.matmul %132, %134, %cst_101 {dimension_numbers = #tpu.dot_dimension_numbers<[1], [0], [0], [1], [0, 0, 1, 1], [], []>} : vector<8x256xbf16>, vector<256x128xbf16>, vector<8x128xf32> -> vector<8x128xf32>
    %136 = arith.addf %129, %135 : vector<8x128xf32>
    %137 = vector.extract_strided_slice %100 {offsets = [5, 0], sizes = [1, 256], strides = [1, 1]} : vector<8x256xbf16> to vector<1x256xbf16>
    %138 = vector.shape_cast %137 : vector<1x256xbf16> to vector<1x256xbf16>
    %139 = vector.broadcast %138 : vector<1x256xbf16> to vector<8x256xbf16>
    %c5 = arith.constant 5 : index
    %c0_102 = arith.constant 0 : index
    %c0_103 = arith.constant 0 : index
    %140 = vector.load %arg8[%c5, %c0_102, %c0_103] : memref<8x256x128xbf16, #tpu.memory_space<vmem>>, vector<1x256x128xbf16>
    %141 = vector.shape_cast %140 : vector<1x256x128xbf16> to vector<256x128xbf16>
    %cst_104 = arith.constant dense<0.000000e+00> : vector<8x128xf32>
    %142 = tpu.matmul %139, %141, %cst_104 {dimension_numbers = #tpu.dot_dimension_numbers<[1], [0], [0], [1], [0, 0, 1, 1], [], []>} : vector<8x256xbf16>, vector<256x128xbf16>, vector<8x128xf32> -> vector<8x128xf32>
    %143 = arith.addf %136, %142 : vector<8x128xf32>
    %144 = vector.extract_strided_slice %100 {offsets = [6, 0], sizes = [1, 256], strides = [1, 1]} : vector<8x256xbf16> to vector<1x256xbf16>
    %145 = vector.shape_cast %144 : vector<1x256xbf16> to vector<1x256xbf16>
    %146 = vector.broadcast %145 : vector<1x256xbf16> to vector<8x256xbf16>
    %c6 = arith.constant 6 : index
    %c0_105 = arith.constant 0 : index
    %c0_106 = arith.constant 0 : index
    %147 = vector.load %arg8[%c6, %c0_105, %c0_106] : memref<8x256x128xbf16, #tpu.memory_space<vmem>>, vector<1x256x128xbf16>
    %148 = vector.shape_cast %147 : vector<1x256x128xbf16> to vector<256x128xbf16>
    %cst_107 = arith.constant dense<0.000000e+00> : vector<8x128xf32>
    %149 = tpu.matmul %146, %148, %cst_107 {dimension_numbers = #tpu.dot_dimension_numbers<[1], [0], [0], [1], [0, 0, 1, 1], [], []>} : vector<8x256xbf16>, vector<256x128xbf16>, vector<8x128xf32> -> vector<8x128xf32>
    %150 = arith.addf %143, %149 : vector<8x128xf32>
    %151 = vector.extract_strided_slice %100 {offsets = [7, 0], sizes = [1, 256], strides = [1, 1]} : vector<8x256xbf16> to vector<1x256xbf16>
    %152 = vector.shape_cast %151 : vector<1x256xbf16> to vector<1x256xbf16>
    %153 = vector.broadcast %152 : vector<1x256xbf16> to vector<8x256xbf16>
    %c7 = arith.constant 7 : index
    %c0_108 = arith.constant 0 : index
    %c0_109 = arith.constant 0 : index
    %154 = vector.load %arg8[%c7, %c0_108, %c0_109] : memref<8x256x128xbf16, #tpu.memory_space<vmem>>, vector<1x256x128xbf16>
    %155 = vector.shape_cast %154 : vector<1x256x128xbf16> to vector<256x128xbf16>
    %cst_110 = arith.constant dense<0.000000e+00> : vector<8x128xf32>
    %156 = tpu.matmul %153, %155, %cst_110 {dimension_numbers = #tpu.dot_dimension_numbers<[1], [0], [0], [1], [0, 0, 1, 1], [], []>} : vector<8x256xbf16>, vector<256x128xbf16>, vector<8x128xf32> -> vector<8x128xf32>
    %157 = arith.addf %150, %156 : vector<8x128xf32>
    %c0_111 = arith.constant 0 : index
    %c0_112 = arith.constant 0 : index
    %158 = vector.load %arg9[%c0_111, %c0_112] : memref<1x128xf32, #tpu.memory_space<vmem>>, vector<1x128xf32>
    %159 = vector.broadcast %158 : vector<1x128xf32> to vector<8x128xf32>
    %160 = arith.addf %157, %159 : vector<8x128xf32>
    %161 = math.tanh %160 : vector<8x128xf32>
    %162 = arith.truncf %161 : vector<8x128xf32> to vector<8x128xbf16>
    %c0_113 = arith.constant 0 : index
    %c0_114 = arith.constant 0 : index
    %163 = vector.load %arg10[%c0_113, %c0_114] : memref<128x128xbf16, #tpu.memory_space<vmem>>, vector<128x128xbf16>
    %cst_115 = arith.constant dense<0.000000e+00> : vector<8x128xf32>
    %164 = tpu.matmul %162, %163, %cst_115 {dimension_numbers = #tpu.dot_dimension_numbers<[1], [0], [0], [1], [0, 0, 1, 1], [], []>} : vector<8x128xbf16>, vector<128x128xbf16>, vector<8x128xf32> -> vector<8x128xf32>
    %c0_116 = arith.constant 0 : index
    %c0_117 = arith.constant 0 : index
    %165 = vector.load %arg11[%c0_116, %c0_117] : memref<1x128xf32, #tpu.memory_space<vmem>>, vector<1x128xf32>
    %166 = vector.broadcast %165 : vector<1x128xf32> to vector<8x128xf32>
    %167 = arith.addf %164, %166 : vector<8x128xf32>
    %168 = math.tanh %167 : vector<8x128xf32>
    %169 = arith.truncf %168 : vector<8x128xf32> to vector<8x128xbf16>
    %c0_118 = arith.constant 0 : index
    %c0_119 = arith.constant 0 : index
    %170 = vector.load %arg12[%c0_118, %c0_119] : memref<128x128xbf16, #tpu.memory_space<vmem>>, vector<128x128xbf16>
    %cst_120 = arith.constant dense<0.000000e+00> : vector<8x128xf32>
    %171 = tpu.matmul %169, %170, %cst_120 {dimension_numbers = #tpu.dot_dimension_numbers<[1], [0], [0], [1], [0, 0, 1, 1], [], []>} : vector<8x128xbf16>, vector<128x128xbf16>, vector<8x128xf32> -> vector<8x128xf32>
    %c0_121 = arith.constant 0 : index
    %c0_122 = arith.constant 0 : index
    %172 = vector.load %arg13[%c0_121, %c0_122] : memref<1x128xf32, #tpu.memory_space<vmem>>, vector<1x128xf32>
    %173 = vector.broadcast %172 : vector<1x128xf32> to vector<8x128xf32>
    %174 = arith.addf %171, %173 : vector<8x128xf32>
    %cst_123 = arith.constant 0.000000e+00 : f32
    %175 = vector.broadcast %cst_123 : f32 to vector<8x128xf32>
    %176 = arith.maximumf %174, %175 : vector<8x128xf32>
    %177 = arith.truncf %176 : vector<8x128xf32> to vector<8x128xbf16>
    %c0_124 = arith.constant 0 : index
    %c0_125 = arith.constant 0 : index
    %178 = vector.load %arg14[%c0_124, %c0_125] : memref<128x128xbf16, #tpu.memory_space<vmem>>, vector<128x128xbf16>
    %cst_126 = arith.constant dense<0.000000e+00> : vector<8x128xf32>
    %179 = tpu.matmul %177, %178, %cst_126 {dimension_numbers = #tpu.dot_dimension_numbers<[1], [0], [0], [1], [0, 0, 1, 1], [], []>} : vector<8x128xbf16>, vector<128x128xbf16>, vector<8x128xf32> -> vector<8x128xf32>
    %c0_127 = arith.constant 0 : index
    %c0_128 = arith.constant 0 : index
    %180 = vector.load %arg15[%c0_127, %c0_128] : memref<1x128xf32, #tpu.memory_space<vmem>>, vector<1x128xf32>
    %181 = vector.broadcast %180 : vector<1x128xf32> to vector<8x128xf32>
    %182 = arith.addf %179, %181 : vector<8x128xf32>
    %c0_129 = arith.constant 0 : index
    %c0_130 = arith.constant 0 : index
    %c0_131 = arith.constant 0 : index
    %183 = vector.load %arg16[%c0_129, %c0_130, %c0_131] : memref<1x8x128xf32, #tpu.memory_space<vmem>>, vector<1x8x128xf32>
    %184 = vector.shape_cast %183 : vector<1x8x128xf32> to vector<8x128xf32>
    %185 = vector.shape_cast %182 : vector<8x128xf32> to vector<1x8x128xf32>
    tpu.vector_store %arg16[%c0_129, %c0_130, %c0_131], %185 {strides = array<i32>} : memref<1x8x128xf32, #tpu.memory_space<vmem>>, vector<1x8x128xf32>,
    return
  }
  func.func @transform_0(%arg0: i32) -> (i32, i32, i32) {
    %c0_i32 = arith.constant 0 : i32
    %c0_i32_0 = arith.constant 0 : i32
    %c0_i32_1 = arith.constant 0 : i32
    return %arg0, %c0_i32, %c0_i32_0 : i32, i32, i32
  }
  func.func @transform_1(%arg0: i32) -> (i32, i32, i32) {
    %c0_i32 = arith.constant 0 : i32
    %c0_i32_0 = arith.constant 0 : i32
    %c0_i32_1 = arith.constant 0 : i32
    %c0_i32_2 = arith.constant 0 : i32
    return %c0_i32, %c0_i32_0, %c0_i32_1 : i32, i32, i32
  }
  func.func @transform_2(%arg0: i32) -> (i32, i32) {
    %c0_i32 = arith.constant 0 : i32
    %c0_i32_0 = arith.constant 0 : i32
    %c0_i32_1 = arith.constant 0 : i32
    return %c0_i32, %c0_i32_0 : i32, i32
  }
  func.func @transform_3(%arg0: i32) -> (i32, i32, i32) {
    %c0_i32 = arith.constant 0 : i32
    %c0_i32_0 = arith.constant 0 : i32
    %c0_i32_1 = arith.constant 0 : i32
    %c0_i32_2 = arith.constant 0 : i32
    return %c0_i32, %c0_i32_0, %c0_i32_1 : i32, i32, i32
  }
  func.func @transform_4(%arg0: i32) -> (i32, i32) {
    %c0_i32 = arith.constant 0 : i32
    %c0_i32_0 = arith.constant 0 : i32
    %c0_i32_1 = arith.constant 0 : i32
    return %c0_i32, %c0_i32_0 : i32, i32
  }
  func.func @transform_5(%arg0: i32) -> (i32, i32, i32) {
    %c0_i32 = arith.constant 0 : i32
    %c0_i32_0 = arith.constant 0 : i32
    %c0_i32_1 = arith.constant 0 : i32
    %c0_i32_2 = arith.constant 0 : i32
    return %c0_i32, %c0_i32_0, %c0_i32_1 : i32, i32, i32
  }
  func.func @transform_6(%arg0: i32) -> (i32, i32) {
    %c0_i32 = arith.constant 0 : i32
    %c0_i32_0 = arith.constant 0 : i32
    %c0_i32_1 = arith.constant 0 : i32
    return %c0_i32, %c0_i32_0 : i32, i32
  }
  func.func @transform_7(%arg0: i32) -> (i32, i32, i32) {
    %c0_i32 = arith.constant 0 : i32
    %c0_i32_0 = arith.constant 0 : i32
    %c0_i32_1 = arith.constant 0 : i32
    %c0_i32_2 = arith.constant 0 : i32
    return %c0_i32, %c0_i32_0, %c0_i32_1 : i32, i32, i32
  }
  func.func @transform_8(%arg0: i32) -> (i32, i32) {
    %c0_i32 = arith.constant 0 : i32
    %c0_i32_0 = arith.constant 0 : i32
    %c0_i32_1 = arith.constant 0 : i32
    return %c0_i32, %c0_i32_0 : i32, i32
  }
  func.func @transform_9(%arg0: i32) -> (i32, i32) {
    %c0_i32 = arith.constant 0 : i32
    %c0_i32_0 = arith.constant 0 : i32
    %c0_i32_1 = arith.constant 0 : i32
    return %c0_i32, %c0_i32_0 : i32, i32
  }
  func.func @transform_10(%arg0: i32) -> (i32, i32) {
    %c0_i32 = arith.constant 0 : i32
    %c0_i32_0 = arith.constant 0 : i32
    %c0_i32_1 = arith.constant 0 : i32
    return %c0_i32, %c0_i32_0 : i32, i32
  }
  func.func @transform_11(%arg0: i32) -> (i32, i32) {
    %c0_i32 = arith.constant 0 : i32
    %c0_i32_0 = arith.constant 0 : i32
    %c0_i32_1 = arith.constant 0 : i32
    return %c0_i32, %c0_i32_0 : i32, i32
  }
  func.func @transform_12(%arg0: i32) -> (i32, i32) {
    %c0_i32 = arith.constant 0 : i32
    %c0_i32_0 = arith.constant 0 : i32
    %c0_i32_1 = arith.constant 0 : i32
    return %c0_i32, %c0_i32_0 : i32, i32
  }
  func.func @transform_13(%arg0: i32) -> (i32, i32) {
    %c0_i32 = arith.constant 0 : i32
    %c0_i32_0 = arith.constant 0 : i32
    %c0_i32_1 = arith.constant 0 : i32
    return %c0_i32, %c0_i32_0 : i32, i32
  }
  func.func @transform_14(%arg0: i32) -> (i32, i32) {
    %c0_i32 = arith.constant 0 : i32
    %c0_i32_0 = arith.constant 0 : i32
    %c0_i32_1 = arith.constant 0 : i32
    return %c0_i32, %c0_i32_0 : i32, i32
  }
  func.func @transform_15(%arg0: i32) -> (i32, i32, i32) {
    %c0_i32 = arith.constant 0 : i32
    %c0_i32_0 = arith.constant 0 : i32
    %c0_i32_1 = arith.constant 0 : i32
    return %arg0, %c0_i32, %c0_i32_0 : i32, i32, i32
  }
}

</mosaic_0001>

<bundles_post_ra>
// kernel: cnn3d_forward.1
= control target key start
LH: loop header
LB: loop body
LE: loop exit
PB: predicated region body
PF: predicated region fallthrough
CT: control target
= control target key end

     0   :  { %20 = vsyncpa [#allocation6], 0  ;;  %s10458_s0 = inlined_call_operand.vmem [shape: bf16[2,64,128], index: 0, kind: input, shape index: {}]   ;;  %s10459_s1 = inlined_call_operand.hbm [shape: bf16[3,128,512], index: 1, kind: input, shape index: {}]   ;;  %s10460_s2 = inlined_call_operand.vmem [shape: f32[1,512], index: 2, kind: input, shape index: {}]   ;;  %s10461_s3 = inlined_call_operand.hbm [shape: bf16[3,128,512], index: 3, kind: input, shape index: {}]   ;;  %s10462_s4 = inlined_call_operand.vmem [shape: f32[1,512], index: 4, kind: input, shape index: {}]   ;;  %s10463_s5 = inlined_call_operand.hbm [shape: bf16[3,128,1024], index: 5, kind: input, shape index: {}]   ;;  %s10464_s6 = inlined_call_operand.vmem [shape: f32[1,1024], index: 6, kind: input, shape index: {}]   ;;  %s10465_s7 = inlined_call_operand.hbm [shape: bf16[8,256,128], index: 7, kind: input, shape index: {}]   ;;  %s10466_s8 = inlined_call_operand.vmem [shape: f32[1,128], index: 8, kind: input, shape index: {}]   ;;  %s10467_s9 = inlined_call_operand.vmem [shape: bf16[128,128], index: 9, kind: input, shape index: {}]   ;;  %s10468_s10 = inlined_call_operand.vmem [shape: f32[1,128], index: 10, kind: input, shape index: {}]   ;;  %s10469_s11 = inlined_call_operand.vmem [shape: bf16[128,128], index: 11, kind: input, shape index: {}]   ;;  %s10470_s12 = inlined_call_operand.vmem [shape: f32[1,128], index: 12, kind: input, shape index: {}]   ;;  %s10471_s13 = inlined_call_operand.vmem [shape: bf16[128,128], index: 13, kind: input, shape index: {}]   ;;  %s10472_s14 = inlined_call_operand.vmem [shape: f32[1,128], index: 14, kind: input, shape index: {}]   ;;  %s10473_s15 = inlined_call_operand.vmem [shape: f32[2,8,128], index: 15, kind: output, shape index: {}]  }
   0x1   :  { %21 = vsyncpa [#allocation8], 0 }
   0x2   :  { %22 = vsyncpa [#allocation11], 0  ;;  %s9406_s18 = smov 0  }
   0x3 LB: > { %s9412_s19 = sadd.s32 4294967295, %s9310_s18   ;;  %p7739_p0 = scmp.ge.s32.totalorder %s9310_s18, 1  ;;  %s9310_s18 = sphi %s9406_s18, %s28_s18  }
   0x4   : > { %p379_p1 = scmp.lt.s32.totalorder %s9310_s18, 3  ;;  %p8701_p2 = scmp.eq.s32.totalorder %s9412_s19, 0 }
   0x5   : > { %s9312_s21 = smov [#allocation7]   ;;  %s9313_s23 = smov [#allocation5]  }
   0x6   : > { %p9417_p3 = pnand %p7739_p0, %p379_p1  ;;  %s407_s22 = sshll.u32 %s9312_s21, 4  ;;  %s408_s22 = int_to_ptr.vmem [resolvable:$true] %s407_s22 }
   0x7   : > { %s391_s24 = sshll.u32 %s9313_s23, 4  ;;  %s9314_s26 = smov [#allocation9]   ;;  %s9423_s24 = int_to_ptr.vmem [resolvable:$true] %s391_s24 }
   0x8   : > { %p8688_p4 = pneg %p9417_p3  ;;  %s423_s27 = sshll.u32 %s9314_s26, 4  ;;  %s9431_s27 = int_to_ptr.vmem [resolvable:$true] %s423_s27 }
   0x9   : > { %s9199_s28 = scalar_lea.vmem %s408_s22, 12288  ;;  %p9207_p10 = scmp.lt.s32.totalorder %s408_s22, %s408_s22 }
   0xa   : > { %p9427_p5 = pnand %p8701_p2, %p8688_p4  ;;  %p9200_p7 = scmp.ne.s32.totalorder %s408_s22, %s9199_s28 }
   0xb   : > { %p9208_p11 = scmp.lt.s32.totalorder %s9199_s28, %s9199_s28 }
   0xc   : > { %p9190_p6 = pneg %p9427_p5 }
   0xd   : > { %p9209_p12 = por %p9208_p11, %p9207_p10 }
   0xe   : > { %p9202_p8 = pnand %p9200_p7, %p9190_p6 }
  0x10   : > { %p9203_p9 = pneg %p9202_p8 }
  0x12   : > { %p9210_p13 = pnand %p9209_p12, %p9203_p9 }
  0x14   : > { %9213 = shalt.err (!%p9210_p13)
}
  0x15   : > { %s9315_s29 = smov 256   ;;  %s9316_s30 = smov 16  }
  0x16   : > { %8694 = dma.hbm_to_vmem [thread:$0]  (!%p9427_p5), %s10461_s3, 12288, %s408_s22, [#allocation8], %s9315_s29, %s9315_s29, %s9316_s30  }
  0x17   : > { %s9225_s21 = scalar_lea.vmem %s9423_s24, 12288  ;;  %p9233_p7 = scmp.lt.s32.totalorder %s9423_s24, %s9423_s24 }
  0x18   : > { %p9226_p0 = scmp.ne.s32.totalorder %s9423_s24, %s9225_s21  ;;  %p9234_p8 = scmp.lt.s32.totalorder %s9225_s21, %s9225_s21 }
  0x1a   : > { %p9228_p1 = pnand %p9226_p0, %p9190_p6  ;;  %p9235_p9 = por %p9234_p8, %p9233_p7 }
  0x1c   : > { %p9229_p4 = pneg %p9228_p1 }
  0x1e   : > { %p9236_p10 = pnand %p9235_p9, %p9229_p4 }
  0x20   : > { %9239 = shalt.err (!%p9236_p10)
}
  0x21   : > { %8691 = dma.hbm_to_vmem [thread:$0]  (!%p9427_p5), %s10459_s1, 12288, %s9423_s24, [#allocation6], %s9315_s29, %s9315_s29, %s9316_s30  }
  0x22   : > { %s9251_s22 = scalar_lea.vmem %s9431_s27, 24576  ;;  %p9259_p0 = scmp.lt.s32.totalorder %s9431_s27, %s9431_s27 }
  0x23   : > { %p9252_p11 = scmp.ne.s32.totalorder %s9431_s27, %s9251_s22  ;;  %p9260_p1 = scmp.lt.s32.totalorder %s9251_s22, %s9251_s22 }
  0x25   : > { %p9254_p12 = pnand %p9252_p11, %p9190_p6  ;;  %p9261_p4 = por %p9260_p1, %p9259_p0 }
  0x27   : > { %p9255_p13 = pneg %p9254_p12 }
  0x29   : > { %p9262_p7 = pnand %p9261_p4, %p9255_p13 }
  0x2b   : > { %9265 = shalt.err (!%p9262_p7)
}
  0x2c   : > { %s9317_s28 = smov 512   ;;  %s9318_s16 = smov 32  }
  0x2d   : > { %8697 = dma.hbm_to_vmem [thread:$0]  (!%p9427_p5), %s10463_s5, 24576, %s9431_s27, [#allocation8], %s9317_s28, %s9317_s28, %s9318_s16  }
  0x2e   : > { %s9319_s29 = smov [#allocation10]  }
  0x2f   : > { %s439_s30 = sshll.u32 %s9319_s29, 4  ;;  %s440_s30 = int_to_ptr.vmem [resolvable:$true] %s439_s30 }
  0x30   : > { %s9277_s21 = scalar_lea.vmem %s440_s30, 16384  ;;  %p9285_p11 = scmp.lt.s32.totalorder %s440_s30, %s440_s30 }
  0x31   : > { %p9278_p8 = scmp.ne.s32.totalorder %s440_s30, %s9277_s21  ;;  %p9286_p12 = scmp.lt.s32.totalorder %s9277_s21, %s9277_s21 }
  0x33   : > { %p9280_p9 = pnand %p9278_p8, %p9190_p6  ;;  %p9287_p13 = por %p9286_p12, %p9285_p11 }
  0x35   : > { %p9281_p10 = pneg %p9280_p9 }
  0x37   : > { %p9288_p0 = pnand %p9287_p13, %p9281_p10 }
  0x39   : > { %9291 = shalt.err (!%p9288_p0)
}
  0x3a   : > { %s9320_s23 = smov 64   ;;  %s9321_s26 = smov 4  }
  0x3b   : > { %8700 = dma.hbm_to_vmem [thread:$0]  (!%p9427_p5), %s10465_s7, 16384, %s440_s30, [#allocation11], %s9320_s23, %s9320_s23, %s9321_s26  }
  0x3c   : > { %484 = sbr.rel (%p9417_p3) target bundleno = 2184 (0x888), region = 80 }
  0x41   : > { %9297 = dma.done.wait (%p8701_p2), [#allocation6], 12288  }
  0x42   : > { %9299 = vsyncadd (%p8701_p2), [#allocation6], 4294955008 }
  0x43   : > { %9301 = dma.done.wait (%p8701_p2), [#allocation8], 36864  }
  0x44   : > { %9303 = vsyncadd (%p8701_p2), [#allocation8], 4294930432 }
  0x45   : > { %9305 = dma.done.wait (%p8701_p2), [#allocation11], 16384  }
  0x46   : > { %9307 = vsyncadd (%p8701_p2), [#allocation11], 4294950912  ;;  %v10474_v0 = vmov 0   ;;  %v8731_v1 = vld [vmem:[#allocation5 + $0x1e4] ss:$16 sps:$4 sm:$0xff]   ;;  %p543_p2 = scmp.lt.s32.totalorder %s9412_s19, 1 }
  0x47   : > { %999 = vmatprep.mubr.bf16.mxu0 %v10474_v0  ;;  %1072 = vmatprep.mubr.bf16.mxu1 %v10474_v0  ;;  %v8733_v2 = vld [vmem:[#allocation5 + $0x1ec] ss:$16 sps:$4 sm:$0xff]   ;;  %v8735_v3 = vld [vmem:[#allocation5 + $0x1e0] ss:$16 sps:$4 sm:$0xff]   ;;  %v8736_v4 = vld [vmem:[#allocation5 + $0x1e8] ss:$16 sps:$4 sm:$0xff]  }
  0x48   : > { %967 = vmatprep.subr.bf16.mxu0 %v8731_v1  ;;  %1040 = vmatprep.subr.bf16.mxu1 %v8733_v2  ;;  %v8737_v5 = vld [vmem:[#allocation5 + $0x1c4] ss:$16 sps:$4 sm:$0xff]   ;;  %v8739_v6 = vld [vmem:[#allocation5 + $0x1cc] ss:$16 sps:$4 sm:$0xff]   ;;  %v8741_v7 = vld [vmem:[#allocation5 + $0x1c0] ss:$16 sps:$4 sm:$0xff]  }
  0x49   : > { %968 = vmatpush1.bf16.msra.mxu0 %v8735_v3  ;;  %1041 = vmatpush1.bf16.msra.mxu1 %v8736_v4  ;;  %v8742_v8 = vld [vmem:[#allocation5 + $0x1c8] ss:$16 sps:$4 sm:$0xff]   ;;  %v8743_v9 = vld [vmem:[#allocation5 + $0x1a4] ss:$16 sps:$4 sm:$0xff]   ;;  %v8745_v10 = vld [vmem:[#allocation5 + $0x1ac] ss:$16 sps:$4 sm:$0xff]  }
  0x4a   : > { %969 = vmatprep.subr.bf16.mxu0 %v8737_v5  ;;  %1042 = vmatprep.subr.bf16.mxu1 %v8739_v6  ;;  %v8747_v11 = vld [vmem:[#allocation5 + $0x1a0] ss:$16 sps:$4 sm:$0xff]   ;;  %v8748_v12 = vld [vmem:[#allocation5 + $0x1a8] ss:$16 sps:$4 sm:$0xff]   ;;  %v8749_v13 = vld [vmem:[#allocation5 + $0x184] ss:$16 sps:$4 sm:$0xff]  }
  0x4b   : > { %v8751_v14 = vld [vmem:[#allocation5 + $0x18c] ss:$16 sps:$4 sm:$0xff]   ;;  %v8753_v15 = vld [vmem:[#allocation5 + $0x180] ss:$16 sps:$4 sm:$0xff]   ;;  %s10516_s19 = smov (!%p543_p2, %s9412_s19), 1  ;;  %vm561_vm1 = vcmask 1040384  }
  0x4c   : > { %v8754_v16 = vld [vmem:[#allocation5 + $0x188] ss:$16 sps:$4 sm:$0xff]   ;;  %v8755_v17 = vld [vmem:[#allocation5 + $0x164] ss:$16 sps:$4 sm:$0xff]   ;;  %v8757_v18 = vld [vmem:[#allocation5 + $0x16c] ss:$16 sps:$4 sm:$0xff]  }
  0x4d   : > { %970 = vmatpush1.bf16.msra.mxu0 %v8741_v7  ;;  %1043 = vmatpush1.bf16.msra.mxu1 %v8742_v8  ;;  %vm562_vm0 = vsmask.f32 256  ;;  %v8759_v19 = vld [vmem:[#allocation5 + $0x160] ss:$16 sps:$4 sm:$0xff]   ;;  %v8760_v20 = vld [vmem:[#allocation5 + $0x168] ss:$16 sps:$4 sm:$0xff]  }
  0x4e   : > { %971 = vmatprep.subr.bf16.mxu0 %v8743_v9  ;;  %1044 = vmatprep.subr.bf16.mxu1 %v8745_v10  ;;  %s8358_s20 = sshll.u32 %s10516_s19, 5  ;;  %v8761_v21 = vld [vmem:[#allocation5 + $0x144] ss:$16 sps:$4 sm:$0xff]   ;;  %v8763_v22 = vld [vmem:[#allocation5 + $0x14c] ss:$16 sps:$4 sm:$0xff]   ;;  %vm9505_vm2 = vmand %vm561_vm1, %vm562_vm0  ;;  %v10486_v23 = vmov 0 }
  0x4f   : > { %s9501_s16 = scalar_lea.vmem %s10458_s0, %s8358_s20  ;;  %v10487_v23 = vsel %vm9505_vm2, 4294967295, %v10486_v23  ;;  %vm567_vm3 = vsmask.f32 7938  ;;  %v8765_v24 = vld [vmem:[#allocation5 + $0x140] ss:$16 sps:$4 sm:$0xff]   ;;  %vm654_vm5 = vcmask 1043456  }
  0x50   : > { %10488 = vst [vmem:[#allocation15_spill] sm:$0xff] %v10487_v23  ;;  %vm572_vm4 = vsmask.f32 4368  ;;  %v8766_v25 = vld [vmem:[#allocation5 + $0x148] ss:$16 sps:$4 sm:$0xff]   ;;  %vm9523_vm7 = vmand %vm654_vm5, %vm567_vm3  ;;  %v10491_v54 = vmov 0 }
  0x51   : > { %972 = vmatpush1.bf16.msra.mxu0 %v8747_v11  ;;  %1045 = vmatpush1.bf16.msra.mxu1 %v8748_v12  ;;  %v8767_v26 = vld [vmem:[#allocation5 + $0x124] ss:$16 sps:$4 sm:$0xff]   ;;  %v8769_v27 = vld [vmem:[#allocation5 + $0x12c] ss:$16 sps:$4 sm:$0xff]   ;;  %v554_v29 = vld [vmem:[%s9501_s16 + $0x4] sm:$0xf] }
  0x52   : > { %973 = vmatprep.subr.bf16.mxu0 %v8749_v13  ;;  %1046 = vmatprep.subr.bf16.mxu1 %v8751_v14  ;;  %v553_v28 = vld [vmem:[%s9501_s16] sm:$0xf]  ;;  %v8771_v30 = vld [vmem:[#allocation5 + $0x120] ss:$16 sps:$4 sm:$0xff]   ;;  %v8772_v31 = vld [vmem:[#allocation5 + $0x128] ss:$16 sps:$4 sm:$0xff]  }
  0x53   : > { %v555_v32 = vld [vmem:[%s9501_s16 + $0x8] sm:$0xf]  ;;  %v556_v33 = vld [vmem:[%s9501_s16 + $0xc] sm:$0xf]  ;;  %v564_v34 = vld [vmem:[#allocation2] sm:$0x1] }
  0x54   : > { %v565_v35 = vsel %vm9505_vm2, 0, %v564_v34  ;;  %v575_v36 = vshrl.u32 %v553_v28, 16  ;;  %v578_v37 = vshll.u32 %v553_v28, 16  ;;  %v583_v38 = vshrl.u32 %v554_v29, 16  ;;  %v8773_v39 = vld [vmem:[#allocation5 + $0x104] ss:$16 sps:$4 sm:$0xff]   ;;  %vm9517_vm6 = vmor %vm562_vm0, %vm572_vm4 }
  0x55   : > { %974 = vmatpush1.bf16.msra.mxu0 %v8753_v15  ;;  %1047 = vmatpush1.bf16.msra.mxu1 %v8754_v16  ;;  %566 = vst [vmem:[#allocation2] sm:$0x1] %v565_v35  ;;  %v586_v40 = vshll.u32 %v554_v29, 16  ;;  %v592_v41 = vshrl.u32 %v555_v32, 16  ;;  %v595_v42 = vshll.u32 %v555_v32, 16  ;;  %v601_v43 = vshrl.u32 %v556_v33, 16  ;;  %vm9559_vm8 = vmand %vm561_vm1, %vm567_vm3 }
  0x56   : > { %975 = vmatprep.subr.bf16.mxu0 %v8755_v17  ;;  %1048 = vmatprep.subr.bf16.mxu1 %v8757_v18  ;;  %v8775_v44 = vld [vmem:[#allocation5 + $0x10c] ss:$16 sps:$4 sm:$0xff]   ;;  %v577_v45 = vrot.slane %v575_v36, 7  ;;  %v585_v46 = vrot.slane %v583_v38, 7  ;;  %v604_v47 = vshll.u32 %v556_v33, 16  ;;  %v10492_v54 = vsel %vm9523_vm7, 4294967295, %v10491_v54 }
  0x57   : > { %v594_v49 = vrot.slane %v592_v41, 7  ;;  %v603_v50 = vrot.slane %v601_v43, 7  ;;  %10493 = vst [vmem:[#allocation16_spill] sm:$0xff] %v10492_v54  ;;  %v8777_v55 = vld [vmem:[#allocation5 + $0x100] ss:$16 sps:$4 sm:$0xff]   ;;  %vm1460_vm10 = vcmask 1046528  }
  0x58   : > { %v581_v51 = vrot.slane %v577_v45, 4  ;;  %v588_v52 = vor.u32 %v586_v40, %v585_v46  ;;  %v590_v53 = vrot.slane %v585_v46, 4  ;;  %v8778_v56 = vld [vmem:[#allocation5 + $0x108] ss:$16 sps:$4 sm:$0xff]   ;;  %v580_v57 = vor.u32 %v578_v37, %v577_v45  ;;  %v8783_v62 = vld [vmem:[#allocation5 + $0xe4] ss:$16 sps:$4 sm:$0xff]  }
  0x59   : > { %976 = vmatpush1.bf16.msra.mxu0 %v8759_v19  ;;  %1049 = vmatpush1.bf16.msra.mxu1 %v8760_v20  ;;  %v597_v58 = vor.u32 %v595_v42, %v594_v49  ;;  %v599_v59 = vrot.slane %v594_v49, 4  ;;  %v606_v60 = vor.u32 %v604_v47, %v603_v50  ;;  %v8786_v63 = vld [vmem:[#allocation5 + $0xec] ss:$16 sps:$4 sm:$0xff]   ;;  %v558_v4 = vld [vmem:[%s9501_s16 + $0x14] sm:$0xf]  ;;  %v608_v11 = vrot.slane %v603_v50, 4 }
  0x5a   : > { %977 = vmatprep.subr.bf16.mxu0 %v8761_v21  ;;  %1050 = vmatprep.subr.bf16.mxu1 %v8763_v22  ;;  %v589_v61 = vsel %vm9517_vm6, %v581_v51, %v588_v52  ;;  %v557_v1 = vld [vmem:[%s9501_s16 + $0x10] sm:$0xf]  ;;  %v619_v8 = vshrl.u32 %v558_v4, 16  ;;  %v622_v9 = vshll.u32 %v558_v4, 16  ;;  %v559_v18 = vld [vmem:[%s9501_s16 + $0x18] sm:$0xf] }
  0x5b   : > { %v598_v2 = vsel %vm9517_vm6, %v590_v53, %v597_v58  ;;  %v607_v3 = vsel %vm9517_vm6, %v599_v59, %v606_v60  ;;  %659 = vst [vmem:[#allocation2 + $0x4] sm:$0xf] %v589_v61  ;;  %v610_v5 = vshrl.u32 %v557_v1, 16  ;;  %v613_v7 = vshll.u32 %v557_v1, 16  ;;  %v560_v19 = vld [vmem:[%s9501_s16 + $0x1c] sm:$0xf] }
  0x5c   : > { %v656_v6 = vld [vmem:[#allocation2] sm:$0xf]  ;;  %660 = vst [vmem:[#allocation2 + $0x8] sm:$0xf] %v598_v2  ;;  %661 = vst [vmem:[#allocation2 + $0xc] sm:$0xf] %v607_v3 }
  0x5d   : > { %978 = vmatpush1.bf16.msra.mxu0 %v8765_v24  ;;  %1051 = vmatpush1.bf16.msra.mxu1 %v8766_v25  ;;  %v657_v10 = vsel %vm9523_vm7, %v580_v57, %v656_v6  ;;  %v612_v12 = vrot.slane %v610_v5, 7  ;;  %v621_v13 = vrot.slane %v619_v8, 7  ;;  %v628_v22 = vshrl.u32 %v559_v18, 16  ;;  %v569_v46 = vld [vmem:[#allocation2 + $0x20] sm:$0x1]  ;;  %s7752_s27 = sshll.u32 %s10516_s19, 3 }
  0x5e   : > { %979 = vmatprep.subr.bf16.mxu0 %v8767_v26  ;;  %1052 = vmatprep.subr.bf16.mxu1 %v8769_v27  ;;  %658 = vst [vmem:[#allocation2] sm:$0xf] %v657_v10  ;;  %v631_v24 = vshll.u32 %v559_v18, 16  ;;  %v637_v25 = vshrl.u32 %v560_v19, 16  ;;  %v640_v27 = vshll.u32 %v560_v19, 16  ;;  %v570_v48 = vsel %vm9559_vm8, 0, %v569_v46  ;;  %s551_s17 = scalar_lea.vmem %s10473_s15, %s7752_s27 }
  0x5f   : > { %v615_v14 = vor.u32 %v613_v7, %v612_v12  ;;  %v617_v15 = vrot.slane %v612_v12, 4  ;;  %v624_v16 = vor.u32 %v622_v9, %v621_v13  ;;  %v626_v28 = vrot.slane %v621_v13, 4  ;;  %v8784_v47 = vld [vmem:[#allocation5 + $0xe8] ss:$16 sps:$4 sm:$0xff]   ;;  %v8789_v50 = vld [vmem:[#allocation5 + $0xc4] ss:$16 sps:$4 sm:$0xff]  }
  0x60   : > { %v630_v29 = vrot.slane %v628_v22, 7  ;;  %vm766_vm9 = vsmask.f32 7424  ;;  %571 = vst [vmem:[#allocation2 + $0x20] sm:$0x1] %v570_v48  ;;  %vm2098_vm11 = vcmask 1041408  }
  0x61   : > { %980 = vmatpush1.bf16.msra.mxu0 %v8771_v30  ;;  %1053 = vmatpush1.bf16.msra.mxu1 %v8772_v31  ;;  %v616_v17 = vsel %vm9517_vm6, %v608_v11, %v615_v14  ;;  %v625_v21 = vsel %vm9517_vm6, %v617_v15, %v624_v16  ;;  %v639_v30 = vrot.slane %v637_v25, 7  ;;  %v8792_v53 = vld [vmem:[#allocation5 + $0xcc] ss:$16 sps:$4 sm:$0xff]   ;;  %v8787_v58 = vld [vmem:[#allocation5 + $0xc0] ss:$16 sps:$4 sm:$0xff]   ;;  %vm2489_vm12 = vcmask 1042434  }
  0x62   : > { %981 = vmatprep.subr.bf16.mxu0 %v8773_v39  ;;  %1054 = vmatprep.subr.bf16.mxu1 %v8775_v44  ;;  %v9541_v20 = vld [vmem:[#allocation2 + $0x4] sm:$0xf]  ;;  %662 = vst [vmem:[#allocation2 + $0x10] sm:$0xf] %v616_v17  ;;  %663 = vst [vmem:[#allocation2 + $0x14] sm:$0xf] %v625_v21  ;;  %v633_v34 = vor.u32 %v631_v24, %v630_v29 }
  0x63   : > { %v9545_v26 = vld [vmem:[#allocation2 + $0x8] sm:$0xff]   ;;  %v635_v35 = vrot.slane %v630_v29, 4  ;;  %v642_v36 = vor.u32 %v640_v27, %v639_v30  ;;  %v8781_v44 = vld [vmem:[#allocation5 + $0xe0] ss:$16 sps:$4 sm:$0xff]   ;;  %v644_v61 = vrot.slane %v639_v30, 4  ;;  %vm2491_vm13 = vcmask 1043459  }
  0x64   : > { %v775_v32 = vshll.u32 %v9545_v26, 16  ;;  %v634_v39 = vsel %vm9517_vm6, %v626_v28, %v633_v34  ;;  %v779_v51 = vshrl.u32 %v9545_v26, 16  ;;  %v8790_v59 = vld [vmem:[#allocation5 + $0xc8] ss:$16 sps:$4 sm:$0xff]   ;;  %v8796_v60 = vld [vmem:[#allocation5 + $0xa4] ss:$16 sps:$4 sm:$0xff]  }
  0x65   : > { %982 = vmatpush1.bf16.msra.mxu0 %v8777_v55  ;;  %1055 = vmatpush1.bf16.msra.mxu1 %v8778_v56  ;;  %v669_v31 = vld [vmem:[#allocation2] sm:$0xf]  ;;  %v643_v40 = vsel %vm9517_vm6, %v635_v35, %v642_v36  ;;  %664 = vst [vmem:[#allocation2 + $0x18] sm:$0xf] %v634_v39  ;;  %v1462_v55 = vrot.slane %v9545_v26, 1  ;;  %vm2493_vm14 = vcmask 1044484  }
  0x66   : > { %1277 = vmatprep.subr.bf16.mxu0 %v8783_v62  ;;  %1350 = vmatprep.subr.bf16.mxu1 %v8786_v63  ;;  %v9549_v33 = vcombine.low %v669_v31, %v9541_v20  ;;  %v777_v42 = vrot.slane %v775_v32, 1  ;;  %665 = vst [vmem:[#allocation2 + $0x1c] sm:$0xf] %v643_v40  ;;  %v8799_v3 = vld [vmem:[#allocation5 + $0xac] ss:$16 sps:$4 sm:$0xff]   ;;  %vm2495_vm15 = vcmask 1045509  }
  0x67   : > { %v8794_v4 = vld [vmem:[#allocation5 + $0xa0] ss:$16 sps:$4 sm:$0xff]   ;;  %v666_v5 = vld [vmem:[#allocation2 + $0x20] sm:$0x1]  ;;  %v8797_v8 = vld [vmem:[#allocation5 + $0xa8] ss:$16 sps:$4 sm:$0xff]  }
  0x68   : > { %v768_v37 = vshrl.u32 %v9549_v33, 16  ;;  %v770_v38 = vshll.u32 %v9549_v33, 16  ;;  %v781_v63 = vor.u32 %v779_v51, %v777_v42  ;;  %v667_v11 = vsel %vm9505_vm2, %v644_v61, %v666_v5  ;;  %v8802_v12 = vld [vmem:[#allocation5 + $0x84] ss:$16 sps:$4 sm:$0xff]   ;;  %v8805_v13 = vld [vmem:[#allocation5 + $0x8c] ss:$16 sps:$4 sm:$0xff]  }
  0x69   : > { %v9563_v45 = vld [vmem:[#allocation2 + $0x10] sm:$0xff]   ;;  %668 = vst [vmem:[#allocation2 + $0x20] sm:$0x1] %v667_v11  ;;  %v8803_v16 = vld [vmem:[#allocation5 + $0x88] ss:$16 sps:$4 sm:$0xff]   ;;  %vm2497_vm0 = vcmask 1046534  }
  0x6a   : > { %v772_v43 = vrot.slane %v770_v38, 1  ;;  %v783_v52 = vshll.u32 %v9563_v45, 16  ;;  %v1464_v56 = vrot.slane %v9563_v45, 1  ;;  %v787_v9 = vshrl.u32 %v9563_v45, 16  ;;  %v8800_v15 = vld [vmem:[#allocation5 + $0x80] ss:$16 sps:$4 sm:$0xff]  }
  0x6b   : > { %v8809_v19 = vld [vmem:[#allocation5 + $0x64] ss:$16 sps:$4 sm:$0xff]   ;;  %v8812_v21 = vld [vmem:[#allocation5 + $0x6c] ss:$16 sps:$4 sm:$0xff]   ;;  %v8807_v22 = vld [vmem:[#allocation5 + $0x60] ss:$16 sps:$4 sm:$0xff]  }
  0x6c   : > { %v773_v49 = vor.u32 %v772_v43, %v768_v37  ;;  %v9575_v62 = vsel %vm1460_vm10, %v1462_v55, %v1464_v56  ;;  %v785_v1 = vrot.slane %v783_v52, 1  ;;  %v8810_v24 = vld [vmem:[#allocation5 + $0x68] ss:$16 sps:$4 sm:$0xff]   ;;  %v8815_v29 = vld [vmem:[#allocation5 + $0x44] ss:$16 sps:$4 sm:$0xff]   ;;  %vm2499_vm1 = vcmask 1047559  }
  0x6d   : > { %v9577_v2 = vld [vmem:[#allocation2 + $0x18] sm:$0xff]   ;;  %v8818_v30 = vld [vmem:[#allocation5 + $0x4c] ss:$16 sps:$4 sm:$0xff]   ;;  %v8813_v32 = vld [vmem:[#allocation5 + $0x40] ss:$16 sps:$4 sm:$0xff]   ;;  %vm2501_vm3 = vcmask 1041409  }
  0x6e   : > { %v778_v57 = vsel %vm766_vm9, %v773_v49, %v777_v42  ;;  %v1466_v6 = vrot.slane %v9577_v2, 1  ;;  %v786_v7 = vsel %vm766_vm9, %v781_v63, %v785_v1  ;;  %v791_v10 = vshll.u32 %v9577_v2, 16  ;;  %v8816_v34 = vld [vmem:[#allocation5 + $0x48] ss:$16 sps:$4 sm:$0xff]   ;;  %v8822_v38 = vld [vmem:[#allocation5 + $0x24] ss:$16 sps:$4 sm:$0xff]  }
  0x6f   : > { %1000 = vmatmul.mubr.bf16.vlgmr.msra.gmra.mxu0 %v778_v57  ;;  %1073 = vmatmul.mubr.bf16.vlgmr.msra.gmra.mxu1 %v778_v57  ;;  %v789_v17 = vor.u32 %v787_v9, %v785_v1  ;;  %v795_v25 = vshrl.u32 %v9577_v2, 16  ;;  %v8825_v39 = vld [vmem:[#allocation5 + $0x2c] ss:$16 sps:$4 sm:$0xff]   ;;  %v8820_v42 = vld [vmem:[#allocation5 + $0x20] ss:$16 sps:$4 sm:$0xff]  }
  0x70   : > { %1278 = vmatpush1.bf16.msra.mxu0 %v8781_v44  ;;  %1351 = vmatpush1.bf16.msra.mxu1 %v8784_v47  ;;  %v9588_v14 = vsel %vm1460_vm10, %v1464_v56, %v1466_v6  ;;  %v793_v18 = vrot.slane %v791_v10, 1  ;;  %v8819_v28 = vld [vmem:[#allocation2 + $0x20] ss:$0 sps:$4 sm:$0x11]   ;;  %v8823_v43 = vld [vmem:[#allocation5 + $0x28] ss:$16 sps:$4 sm:$0xff]  }
  0x71   : > { %1279 = vmatprep.subr.bf16.mxu0 %v8789_v50  ;;  %1352 = vmatprep.subr.bf16.mxu1 %v8792_v53  ;;  %v799_v31 = vshll.u32 %v8819_v28, 16  ;;  %v1468_v35 = vrot.slane %v8819_v28, 1  ;;  %v8828_v46 = vld [vmem:[#allocation5 + $0x4] ss:$16 sps:$4 sm:$0xff]   ;;  %v8831_v47 = vld [vmem:[#allocation5 + $0xc] ss:$16 sps:$4 sm:$0xff]  }
  0x72   : > { %1009 = vmatprep.mubr.bf16.mxu0 %v10474_v0  ;;  %1082 = vmatprep.mubr.bf16.mxu1 %v10474_v0  ;;  %v794_v27 = vsel %vm766_vm9, %v789_v17, %v793_v18  ;;  %v797_v36 = vor.u32 %v795_v25, %v793_v18  ;;  %v8826_v48 = vld [vmem:[#allocation5] ss:$16 sps:$4 sm:$0xff]   ;;  %v8829_v49 = vld [vmem:[#allocation5 + $0x8] ss:$16 sps:$4 sm:$0xff]   ;;  %v8834_v50 = vld [vmem:[#allocation5 + $0x2e4] ss:$16 sps:$4 sm:$0xff]  }
  0x73   : > { %v801_v37 = vrot.slane %v799_v31, 1  ;;  %v9595_v40 = vsel %vm1460_vm10, %v1466_v6, %v1468_v35  ;;  %v8837_v51 = vld [vmem:[#allocation5 + $0x2ec] ss:$16 sps:$4 sm:$0xff]   ;;  %v8832_v56 = vld [vmem:[#allocation5 + $0x2e0] ss:$16 sps:$4 sm:$0xff]  }
  0x74   : > { %1280 = vmatpush1.bf16.msra.mxu0 %v8787_v58  ;;  %1353 = vmatpush1.bf16.msra.mxu1 %v8790_v59  ;;  %v1423_v52 = vld [vmem:[#allocation2] sm:$0xe]  ;;  %v8835_v57 = vld [vmem:[#allocation5 + $0x2e8] ss:$16 sps:$4 sm:$0xff]   ;;  %v8840_v58 = vld [vmem:[#allocation5 + $0x2c4] ss:$16 sps:$4 sm:$0xff]  }
  0x75   : > { %1281 = vmatprep.subr.bf16.mxu0 %v8796_v60  ;;  %1354 = vmatprep.subr.bf16.mxu1 %v8799_v3  ;;  %v802_v44 = vsel %vm766_vm9, %v797_v36, %v801_v37  ;;  %v7822_v53 = vcombine.low %v1423_v52, %v9541_v20  ;;  %v8843_v59 = vld [vmem:[#allocation5 + $0x2cc] ss:$16 sps:$4 sm:$0xff]   ;;  %v8838_v63 = vld [vmem:[#allocation5 + $0x2c0] ss:$16 sps:$4 sm:$0xff]   ;;  %v8841_v20 = vld [vmem:[#allocation5 + $0x2c8] ss:$16 sps:$4 sm:$0xff]  }
  0x76   : > { %v8846_v1 = vld [vmem:[#allocation5 + $0x2a4] ss:$16 sps:$4 sm:$0xff]   ;;  %v8849_v3 = vld [vmem:[#allocation5 + $0x2ac] ss:$16 sps:$4 sm:$0xff]   ;;  %v8847_v5 = vld [vmem:[#allocation5 + $0x2a8] ss:$16 sps:$4 sm:$0xff]  }
  0x77   : > { %1010 = vmatmul.mubr.bf16.gmra.mxu0 %v786_v7  ;;  %1083 = vmatmul.mubr.bf16.gmra.mxu1 %v786_v7  ;;  %v1461_v60 = vrot.slane %v7822_v53, 1  ;;  %v8855_v6 = vld [vmem:[#allocation5 + $0x28c] ss:$16 sps:$4 sm:$0xff]   ;;  %v8850_v7 = vld [vmem:[#allocation5 + $0x280] ss:$16 sps:$4 sm:$0xff]  }
  0x78   : > { %1282 = vmatpush1.bf16.msra.mxu0 %v8794_v4  ;;  %1355 = vmatpush1.bf16.msra.mxu1 %v8797_v8  ;;  %v8844_v4 = vld [vmem:[#allocation5 + $0x2a0] ss:$16 sps:$4 sm:$0xff]   ;;  %v8858_v8 = vld [vmem:[#allocation5 + $0x264] ss:$16 sps:$4 sm:$0xff]   ;;  %v8861_v9 = vld [vmem:[#allocation5 + $0x26c] ss:$16 sps:$4 sm:$0xff]  }
  0x79   : > { %1283 = vmatprep.subr.bf16.mxu0 %v8802_v12  ;;  %1356 = vmatprep.subr.bf16.mxu1 %v8805_v13  ;;  %v9606_v61 = vsel %vm1460_vm10, %v1461_v60, %v1462_v55  ;;  %v8852_v55 = vld [vmem:[#allocation5 + $0x284] ss:$16 sps:$4 sm:$0xff]   ;;  %v8856_v10 = vld [vmem:[#allocation5 + $0x260] ss:$16 sps:$4 sm:$0xff]   ;;  %v8859_v11 = vld [vmem:[#allocation5 + $0x268] ss:$16 sps:$4 sm:$0xff]  }
  0x7a   : > { %1019 = vmatprep.mubr.bf16.mxu0 %v10474_v0  ;;  %1092 = vmatprep.mubr.bf16.mxu1 %v10474_v0  ;;  %v8864_v12 = vld [vmem:[#allocation5 + $0x244] ss:$16 sps:$4 sm:$0xff]   ;;  %v8867_v13 = vld [vmem:[#allocation5 + $0x24c] ss:$16 sps:$4 sm:$0xff]   ;;  %v8868_v18 = vld [vmem:[#allocation5 + $0x220] ss:$16 sps:$4 sm:$0xff]  }
  0x7b   : > { %v8873_v17 = vld [vmem:[#allocation5 + $0x22c] ss:$16 sps:$4 sm:$0xff]   ;;  %v8883_v54 = vld [vmem:[#allocation7 + $0x1e4] ss:$16 sps:$4 sm:$0xff]  }
  0x7c   : > { %1284 = vmatpush1.bf16.msra.mxu0 %v8800_v15  ;;  %1357 = vmatpush1.bf16.msra.mxu1 %v8803_v16  ;;  %v8862_v15 = vld [vmem:[#allocation5 + $0x240] ss:$16 sps:$4 sm:$0xff]   ;;  %v8870_v16 = vld [vmem:[#allocation5 + $0x224] ss:$16 sps:$4 sm:$0xff]  }
  0x7d   : > { %1285 = vmatprep.subr.bf16.mxu0 %v8809_v19  ;;  %1358 = vmatprep.subr.bf16.mxu1 %v8812_v21  ;;  %v8871_v19 = vld [vmem:[#allocation5 + $0x228] ss:$16 sps:$4 sm:$0xff]   ;;  %v8876_v21 = vld [vmem:[#allocation5 + $0x204] ss:$16 sps:$4 sm:$0xff]  }
  0x7f   : > { %1020 = vmatmul.mubr.bf16.gmra.mxu0 %v794_v27  ;;  %1093 = vmatmul.mubr.bf16.gmra.mxu1 %v794_v27 }
  0x80   : > { %1286 = vmatpush1.bf16.msra.mxu0 %v8807_v22  ;;  %1359 = vmatpush1.bf16.msra.mxu1 %v8810_v24  ;;  %v8879_v22 = vld [vmem:[#allocation5 + $0x20c] ss:$16 sps:$4 sm:$0xff]   ;;  %v8874_v24 = vld [vmem:[#allocation5 + $0x200] ss:$16 sps:$4 sm:$0xff]  }
  0x81   : > { %1287 = vmatprep.subr.bf16.mxu0 %v8815_v29  ;;  %1360 = vmatprep.subr.bf16.mxu1 %v8818_v30 }
  0x82   : > { %1029 = vmatprep.mubr.bf16.mxu0 %v10474_v0  ;;  %1102 = vmatprep.mubr.bf16.mxu1 %v10474_v0 }
  0x84   : > { %1288 = vmatpush1.bf16.msra.mxu0 %v8813_v32  ;;  %1361 = vmatpush1.bf16.msra.mxu1 %v8816_v34 }
  0x85   : > { %1289 = vmatprep.subr.bf16.mxu0 %v8822_v38  ;;  %1362 = vmatprep.subr.bf16.mxu1 %v8825_v39 }
  0x87   : > { %1030 = vmatmul.mubr.bf16.gmra.mxu0 %v802_v44  ;;  %1103 = vmatmul.mubr.bf16.gmra.mxu1 %v802_v44 }
  0x88   : > { %1290 = vmatpush1.bf16.msra.mxu0 %v8820_v42  ;;  %1363 = vmatpush1.bf16.msra.mxu1 %v8823_v43 }
  0x89   : > { %1291 = vmatprep.subr.bf16.mxu0 %v8828_v46  ;;  %1364 = vmatprep.subr.bf16.mxu1 %v8831_v47 }
  0x8a   : > { %1309 = vmatprep.mubr.bf16.mxu0 %v10474_v0  ;;  %1382 = vmatprep.mubr.bf16.mxu1 %v10474_v0 }
  0x8c   : > { %1292 = vmatpush1.bf16.msra.mxu0 %v8826_v48  ;;  %1365 = vmatpush1.bf16.msra.mxu1 %v8829_v49 }
  0x8d   : > { %1634 = vmatprep.subr.bf16.mxu0 %v8834_v50  ;;  %1707 = vmatprep.subr.bf16.mxu1 %v8837_v51 }
  0x8f   : > { %1310 = vmatmul.mubr.bf16.vlgmr.msra.gmra.mxu0 %v9549_v33  ;;  %1383 = vmatmul.mubr.bf16.vlgmr.msra.gmra.mxu1 %v9549_v33  ;;  %v8853_v33 = vld [vmem:[#allocation5 + $0x288] ss:$16 sps:$4 sm:$0xff]  }
  0x90   : > { %1635 = vmatpush1.bf16.msra.mxu0 %v8832_v56  ;;  %1708 = vmatpush1.bf16.msra.mxu1 %v8835_v57 }
  0x91   : > { %1636 = vmatprep.subr.bf16.mxu0 %v8840_v58  ;;  %1709 = vmatprep.subr.bf16.mxu1 %v8843_v59 }
  0x92   : > { %1319 = vmatprep.mubr.bf16.mxu0 %v10474_v0  ;;  %1392 = vmatprep.mubr.bf16.mxu1 %v10474_v0 }
  0x94   : > { %1637 = vmatpush1.bf16.msra.mxu0 %v8838_v63  ;;  %1710 = vmatpush1.bf16.msra.mxu1 %v8841_v20 }
  0x95   : > { %1638 = vmatprep.subr.bf16.mxu0 %v8846_v1  ;;  %1711 = vmatprep.subr.bf16.mxu1 %v8849_v3 }
  0x97   : > { %1320 = vmatmul.mubr.bf16.gmra.mxu0 %v9545_v26  ;;  %1393 = vmatmul.mubr.bf16.gmra.mxu1 %v9545_v26  ;;  %v8865_v26 = vld [vmem:[#allocation5 + $0x248] ss:$16 sps:$4 sm:$0xff]  }
  0x98   : > { %1639 = vmatpush1.bf16.msra.mxu0 %v8844_v4  ;;  %1712 = vmatpush1.bf16.msra.mxu1 %v8847_v5 }
  0x99   : > { %1640 = vmatprep.subr.bf16.mxu0 %v8852_v55  ;;  %1713 = vmatprep.subr.bf16.mxu1 %v8855_v6 }
  0x9a   : > { %1329 = vmatprep.mubr.bf16.mxu0 %v10474_v0  ;;  %1402 = vmatprep.mubr.bf16.mxu1 %v10474_v0 }
  0x9c   : > { %1641 = vmatpush1.bf16.msra.mxu0 %v8850_v7  ;;  %1714 = vmatpush1.bf16.msra.mxu1 %v8853_v33 }
  0x9d   : > { %1642 = vmatprep.subr.bf16.mxu0 %v8858_v8  ;;  %1715 = vmatprep.subr.bf16.mxu1 %v8861_v9 }
  0x9f   : > { %1330 = vmatmul.mubr.bf16.gmra.mxu0 %v9563_v45  ;;  %1403 = vmatmul.mubr.bf16.gmra.mxu1 %v9563_v45  ;;  %v8877_v45 = vld [vmem:[#allocation5 + $0x208] ss:$16 sps:$4 sm:$0xff]  }
  0xa0   : > { %1643 = vmatpush1.bf16.msra.mxu0 %v8856_v10  ;;  %1716 = vmatpush1.bf16.msra.mxu1 %v8859_v11 }
  0xa1   : > { %1644 = vmatprep.subr.bf16.mxu0 %v8864_v12  ;;  %1717 = vmatprep.subr.bf16.mxu1 %v8867_v13 }
  0xa2   : > { %1339 = vmatprep.mubr.bf16.mxu0 %v10474_v0  ;;  %1412 = vmatprep.mubr.bf16.mxu1 %v10474_v0 }
  0xa4   : > { %1645 = vmatpush1.bf16.msra.mxu0 %v8862_v15  ;;  %1718 = vmatpush1.bf16.msra.mxu1 %v8865_v26 }
  0xa5   : > { %1646 = vmatprep.subr.bf16.mxu0 %v8870_v16  ;;  %1719 = vmatprep.subr.bf16.mxu1 %v8873_v17  ;;  %v1814_v16 = vlaneseq }
  0xa7   : > { %1340 = vmatmul.mubr.bf16.gmra.mxu0 %v9577_v2  ;;  %1413 = vmatmul.mubr.bf16.gmra.mxu1 %v9577_v2 }
  0xa8   : > { %1647 = vmatpush1.bf16.msra.mxu0 %v8868_v18  ;;  %1720 = vmatpush1.bf16.msra.mxu1 %v8871_v19 }
  0xa9   : > { %1648 = vmatprep.subr.bf16.mxu0 %v8876_v21  ;;  %1721 = vmatprep.subr.bf16.mxu1 %v8879_v22 }
  0xaa   : > { %1666 = vmatprep.mubr.bf16.mxu0 %v10474_v0  ;;  %1739 = vmatprep.mubr.bf16.mxu1 %v10474_v0 }
  0xac   : > { %1649 = vmatpush1.bf16.msra.mxu0 %v8874_v24  ;;  %1722 = vmatpush1.bf16.msra.mxu1 %v8877_v45 }
  0xad   : > { %2807 = vmatprep.subr.bf16.mxu0 %v8883_v54  ;;  %v1812_v54 = vld [vmem:[%s10460_s2] sm:$0xf] }
  0xaf   : > { %1667 = vmatmul.mubr.bf16.vlgmr.msra.gmra.mxu0 %v9606_v61  ;;  %1740 = vmatmul.mubr.bf16.vlgmr.msra.gmra.mxu1 %v9606_v61 }
  0xb0   : > { %1676 = vmatprep.mubr.bf16.mxu0 %v10474_v0  ;;  %1749 = vmatprep.mubr.bf16.mxu1 %v10474_v0 }
  0xb7   : > { %1677 = vmatmul.mubr.bf16.gmra.mxu0 %v9575_v62  ;;  %1750 = vmatmul.mubr.bf16.gmra.mxu1 %v9575_v62  ;;  %v2355_v62 = vld [vmem:[#allocation3] sm:$0x1] }
  0xb8   : > { %1686 = vmatprep.mubr.bf16.mxu0 %v10474_v0  ;;  %1759 = vmatprep.mubr.bf16.mxu1 %v10474_v0  ;;  %v2356_v2 = vsel %vm9505_vm2, 0, %v2355_v62 }
  0xb9   : > { %2357 = vst [vmem:[#allocation3] sm:$0x1] %v2356_v2  ;;  %v9726_v2 = vshrl.u32 %v1814_v16, 7 }
  0xbb   : > { %v9737_v16 = vsub.s32 0, %v9726_v2 }
  0xbf   : > { %1687 = vmatmul.mubr.bf16.gmra.mxu0 %v9588_v14  ;;  %1760 = vmatmul.mubr.bf16.gmra.mxu1 %v9588_v14 }
  0xc0   : > { %1696 = vmatprep.mubr.bf16.mxu0 %v10474_v0  ;;  %1769 = vmatprep.mubr.bf16.mxu1 %v10474_v0 }
  0xc7   : > { %1697 = vmatmul.mubr.bf16.gmra.mxu0 %v9595_v40  ;;  %1770 = vmatmul.mubr.bf16.gmra.mxu1 %v9595_v40 }
  0xc8   : > { %2839 = vmatprep.mubr.bf16.mxu0 %v10474_v0  ;;  %2892 = vmatprep.mubr.bf16.mxu1 %v10474_v0 }
 0x12f   : > { %v9642_v25 = vpop.f32.mrf.mxu0  ;;  %v9644_v14 = vpop.f32.mrf.mxu1 }
 0x131   : > { %v9646_v27 = vpop.f32.mrf.mxu0  ;;  %v9648_v28 = vpop.f32.mrf.mxu1 }
 0x133   : > { %v9650_v29 = vpop.f32.mrf.mxu0  ;;  %v9652_v30 = vpop.f32.mrf.mxu1 }
 0x135   : > { %v9654_v31 = vpop.f32.mrf.mxu0  ;;  %v9656_v32 = vpop.f32.mrf.mxu1 }
 0x137   : > { %v9658_v34 = vpop.f32.mrf.mxu0  ;;  %v9660_v35 = vpop.f32.mrf.mxu1 }
 0x139   : > { %v9662_v36 = vpop.f32.mrf.mxu0  ;;  %v9664_v37 = vpop.f32.mrf.mxu1 }
 0x13b   : > { %v9666_v38 = vpop.f32.mrf.mxu0  ;;  %v9668_v39 = vpop.f32.mrf.mxu1 }
 0x13d   : > { %v9670_v40 = vpop.f32.mrf.mxu0  ;;  %v9672_v42 = vpop.f32.mrf.mxu1 }
 0x13f   : > { %v1021_v43 = vpop.f32.mrf.mxu0  ;;  %v1094_v44 = vpop.f32.mrf.mxu1 }
 0x141   : > { %v1023_v46 = vpop.f32.mrf.mxu0  ;;  %v1096_v47 = vpop.f32.mrf.mxu1 }
 0x143   : > { %v1025_v48 = vpop.f32.mrf.mxu0  ;;  %v1098_v49 = vpop.f32.mrf.mxu1 }
 0x145   : > { %v1027_v50 = vpop.f32.mrf.mxu0  ;;  %v1100_v51 = vpop.f32.mrf.mxu1 }
 0x147   : > { %v1031_v52 = vpop.f32.mrf.mxu0  ;;  %v1104_v53 = vpop.f32.mrf.mxu1 }
 0x149   : > { %v9674_v56 = vpop.f32.mrf.mxu0  ;;  %v9676_v57 = vpop.f32.mrf.mxu1 }
 0x14b   : > { %v9678_v58 = vpop.f32.mrf.mxu0  ;;  %v9680_v59 = vpop.f32.mrf.mxu1 }
 0x14d   : > { %v9682_v60 = vpop.f32.mrf.mxu0  ;;  %v9684_v61 = vpop.f32.mrf.mxu1 }
 0x14f   : > { %v9686_v63 = vpop.f32.mrf.mxu0  ;;  %v9688_v20 = vpop.f32.mrf.mxu1 }
 0x151   : > { %v9690_v1 = vpop.f32.mrf.mxu0  ;;  %v9692_v3 = vpop.f32.mrf.mxu1 }
 0x153   : > { %v9694_v4 = vpop.f32.mrf.mxu0  ;;  %v9696_v5 = vpop.f32.mrf.mxu1 }
 0x155   : > { %v9698_v55 = vpop.f32.mrf.mxu0  ;;  %v9700_v6 = vpop.f32.mrf.mxu1 }
 0x157   : > { %v9702_v7 = vpop.f32.mrf.mxu0  ;;  %v9704_v33 = vpop.f32.mrf.mxu1 }
 0x159   : > { %v9706_v8 = vpop.f32.mrf.mxu0  ;;  %v9708_v9 = vpop.f32.mrf.mxu1 }
 0x15b   : > { %v9710_v10 = vpop.f32.mrf.mxu0  ;;  %v9712_v11 = vpop.f32.mrf.mxu1 }
 0x15d   : > { %v9714_v12 = vpop.f32.mrf.mxu0  ;;  %v9716_v13 = vpop.f32.mrf.mxu1 }
 0x15e   : > { %10496 = vst [vmem:[#allocation17_spill] sm:$0xff] %v9716_v13  ;;  %v8886_v13 = vld [vmem:[#allocation7 + $0x1ec] ss:$16 sps:$4 sm:$0xff]  }
 0x15f   : > { %v1331_v15 = vpop.f32.mrf.mxu0  ;;  %v1404_v26 = vpop.f32.mrf.mxu1  ;;  %2860 = vmatprep.subr.bf16.mxu1 %v8886_v13  ;;  %v8892_v13 = vld [vmem:[#allocation7 + $0x1cc] ss:$16 sps:$4 sm:$0xff]  }
 0x160   : > { %v9718_v17 = vadd.f32 %v1331_v15, %v1021_v43  ;;  %v9720_v18 = vadd.f32 %v1404_v26, %v1094_v44  ;;  %v8881_v44 = vld [vmem:[#allocation7 + $0x1e0] ss:$16 sps:$4 sm:$0xff]   ;;  %v8884_v26 = vld [vmem:[#allocation7 + $0x1e8] ss:$16 sps:$4 sm:$0xff]  }
 0x161   : > { %v1333_v19 = vpop.f32.mrf.mxu0  ;;  %v1406_v21 = vpop.f32.mrf.mxu1  ;;  %2808 = vmatpush1.bf16.msra.mxu0 %v8881_v44  ;;  %2861 = vmatpush1.bf16.msra.mxu1 %v8884_v26  ;;  %v8887_v44 = vld [vmem:[#allocation7 + $0x1c0] ss:$16 sps:$4 sm:$0xff]   ;;  %v8890_v26 = vld [vmem:[#allocation7 + $0x1c8] ss:$16 sps:$4 sm:$0xff]  }
 0x162   : > { %10497 = vst [vmem:[#allocation18_spill] sm:$0xff] %v9720_v18  ;;  %v9722_v22 = vadd.f32 %v1333_v19, %v1023_v46  ;;  %v9724_v24 = vadd.f32 %v1406_v21, %v1096_v47  ;;  %2862 = vmatprep.subr.bf16.mxu1 %v8892_v13  ;;  %v8898_v13 = vld [vmem:[#allocation7 + $0x1ac] ss:$16 sps:$4 sm:$0xff]  }
 0x163   : > { %v1335_v45 = vpop.f32.mrf.mxu0  ;;  %v1408_v62 = vpop.f32.mrf.mxu1 }
 0x164   : > { %v9728_v0 = vadd.f32 %v1335_v45, %v1025_v48  ;;  %v9730_v23 = vadd.f32 %v1408_v62, %v1098_v49  ;;  %v9740_v48 = vsub.s32 2, %v9726_v2  ;;  %v9323_v49 = vmov 1983009808  }
 0x165   : > { %v1337_v43 = vpop.f32.mrf.mxu0  ;;  %v1410_v15 = vpop.f32.mrf.mxu1  ;;  %v1932_v21 = vunpack.c.l.s4 %v9323_v49  ;;  %2863 = vmatpush1.bf16.msra.mxu1 %v8890_v26  ;;  %v8893_v26 = vld [vmem:[#allocation7 + $0x1a0] ss:$16 sps:$4 sm:$0xff]  }
 0x166   : > { %v9732_v18 = vadd.f32 %v1337_v43, %v1027_v50  ;;  %v9734_v46 = vadd.f32 %v1410_v15, %v1100_v51  ;;  %v8889_v51 = vld [vmem:[#allocation7 + $0x1c4] ss:$16 sps:$4 sm:$0xff]   ;;  %v9750_v15 = vsub.s32 1, %v9726_v2  ;;  %2864 = vmatprep.subr.bf16.mxu1 %v8898_v13  ;;  %v8899_v13 = vld [vmem:[#allocation7 + $0x180] ss:$16 sps:$4 sm:$0xff]  }
 0x167   : > { %v1341_v47 = vpop.f32.mrf.mxu0  ;;  %v1414_v19 = vpop.f32.mrf.mxu1  ;;  %2809 = vmatprep.subr.bf16.mxu0 %v8889_v51  ;;  %v1933_v49 = vunpack.c.0.s8 %v1932_v21  ;;  %v8895_v51 = vld [vmem:[#allocation7 + $0x1a4] ss:$16 sps:$4 sm:$0xff]   ;;  %v1312_v21 = vadd.f32 %v9686_v63, %v9642_v25  ;;  %v1314_v63 = vadd.f32 %v9690_v1, %v9646_v27  ;;  %v8904_v27 = vld [vmem:[#allocation7 + $0x18c] ss:$16 sps:$4 sm:$0xff]   ;;  %v1391_v1 = vadd.f32 %v9700_v6, %v9656_v32 }
 0x168   : > { %10498 = vst [vmem:[#allocation19_spill] sm:$0xff] %v9732_v18  ;;  %10499 = vst [vmem:[#allocation20_spill] sm:$0xff] %v9734_v46  ;;  %v9742_v45 = vadd.f32 %v1341_v47, %v1031_v52  ;;  %v9744_v50 = vadd.f32 %v1414_v19, %v1104_v53  ;;  %v9753_v46 = vsub.s32 3, %v9726_v2  ;;  %2810 = vmatpush1.bf16.msra.mxu0 %v8887_v44 }
 0x169   : > { %v1343_v62 = vpop.f32.mrf.mxu0  ;;  %v1416_v43 = vpop.f32.mrf.mxu1  ;;  %10502 = vst [vmem:[#allocation23_spill] sm:$0xff] %v9750_v15  ;;  %v9775_v44 = vrot.slane %v1812_v54, %v9740_v48  ;;  %2811 = vmatprep.subr.bf16.mxu0 %v8895_v51  ;;  %v8901_v51 = vld [vmem:[#allocation7 + $0x184] ss:$16 sps:$4 sm:$0xff]   ;;  %v1397_v32 = vadd.f32 %v9708_v9, %v9664_v37  ;;  %v9828_v37 = vadd.f32 %v9714_v12, %v9670_v40 }
 0x16a   : > { %10500 = vst [vmem:[#allocation21_spill] sm:$0xff] %v9742_v45  ;;  %10501 = vst [vmem:[#allocation22_spill] sm:$0xff] %v9744_v50  ;;  %v9756_v52 = vadd.f32 %v1343_v62, %v9674_v56  ;;  %v9759_v53 = vadd.f32 %v1416_v43, %v9676_v57  ;;  %v2358_v50 = vld [vmem:[#allocation3 + $0x10] sm:$0x1]  ;;  %v9768_v56 = vrot.slane %v1812_v54, %v9737_v16 }
 0x16b   : > { %10503 = vst [vmem:[#allocation24_spill] sm:$0xff] %v9753_v46  ;;  %v1345_v47 = vpop.f32.mrf.mxu0  ;;  %v1418_v19 = vpop.f32.mrf.mxu1  ;;  %v2359_v57 = vsel %vm9559_vm8, 0, %v2358_v50  ;;  %v1385_v50 = vadd.f32 %v9688_v20, %v9644_v14  ;;  %v1316_v14 = vadd.f32 %v9694_v4, %v9650_v29 }
 0x16c   : > { %v9762_v45 = vadd.f32 %v1345_v47, %v9678_v58  ;;  %v9765_v18 = vadd.f32 %v1418_v19, %v9680_v59  ;;  %v9778_v58 = vrot.slane %v1812_v54, %v9750_v15  ;;  %v9781_v59 = vrot.slane %v1812_v54, %v9753_v46  ;;  %2360 = vst [vmem:[#allocation3 + $0x10] sm:$0x1] %v2359_v57  ;;  %v8896_v47 = vld [vmem:[#allocation7 + $0x1a8] ss:$16 sps:$4 sm:$0xff]  }
 0x16d   : > { %v1347_v62 = vpop.f32.mrf.mxu0  ;;  %v1420_v43 = vpop.f32.mrf.mxu1  ;;  %v1387_v54 = vadd.f32 %v9692_v3, %v9648_v28  ;;  %v9796_v15 = vsub.s32 %v1933_v49, %v9726_v2  ;;  %2812 = vmatpush1.bf16.msra.mxu0 %v8893_v26  ;;  %2865 = vmatpush1.bf16.msra.mxu1 %v8896_v47  ;;  %v1318_v28 = vadd.f32 %v9698_v55, %v9654_v31  ;;  %v8907_v26 = vld [vmem:[#allocation7 + $0x164] ss:$16 sps:$4 sm:$0xff]   ;;  %v8905_v47 = vld [vmem:[#allocation7 + $0x160] ss:$16 sps:$4 sm:$0xff]  }
 0x16e   : > { %v9786_v19 = vadd.f32 %v1347_v62, %v9682_v60  ;;  %v9789_v25 = vadd.f32 %v1420_v43, %v9684_v61  ;;  %v1389_v60 = vadd.f32 %v9696_v5, %v9652_v30  ;;  %v1322_v3 = vadd.f32 %v9702_v7, %v9658_v34  ;;  %v8902_v30 = vld [vmem:[#allocation7 + $0x188] ss:$16 sps:$4 sm:$0xff]   ;;  %2813 = vmatprep.subr.bf16.mxu0 %v8901_v51  ;;  %v10504_v51 = vld [vmem:[#allocation17_spill] sm:$0xff] }
 0x16f   : > { %v1668_v57 = vpop.f32.mrf.mxu0  ;;  %v1741_v46 = vpop.f32.mrf.mxu1  ;;  %v1395_v49 = vadd.f32 %v9704_v33, %v9660_v35  ;;  %v1324_v31 = vadd.f32 %v9706_v8, %v9662_v36  ;;  %v9818_v34 = vadd.f32 %v9710_v10, %v9666_v38  ;;  %2866 = vmatprep.subr.bf16.mxu1 %v8904_v27  ;;  %v9824_v36 = vadd.f32 %v9712_v11, %v9668_v39 }
 0x170   : > { %v1780_v61 = vadd.f32 %v1668_v57, %v1312_v21  ;;  %v1782_v20 = vadd.f32 %v1741_v46, %v1385_v50  ;;  %v8908_v50 = vld [vmem:[#allocation7 + $0x168] ss:$16 sps:$4 sm:$0xff]   ;;  %v9832_v39 = vadd.f32 %v10504_v51, %v9672_v42 }
 0x171   : > { %v1670_v29 = vpop.f32.mrf.mxu0  ;;  %v1743_v4 = vpop.f32.mrf.mxu1  ;;  %2814 = vmatpush1.bf16.msra.mxu0 %v8899_v13  ;;  %2867 = vmatpush1.bf16.msra.mxu1 %v8902_v30  ;;  %v8914_v13 = vld [vmem:[#allocation7 + $0x148] ss:$16 sps:$4 sm:$0xff]  }
 0x172   : > { %v1834_v5 = vadd.f32 %v9768_v56, %v1780_v61  ;;  %v1836_v46 = vadd.f32 %v9775_v44, %v1782_v20  ;;  %v1781_v21 = vadd.f32 %v1670_v29, %v1314_v63  ;;  %v1783_v62 = vadd.f32 %v1743_v4, %v1387_v54  ;;  %v8910_v63 = vld [vmem:[#allocation7 + $0x16c] ss:$16 sps:$4 sm:$0xff]   ;;  %2815 = vmatprep.subr.bf16.mxu0 %v8907_v26  ;;  %v8913_v4 = vld [vmem:[#allocation7 + $0x144] ss:$16 sps:$4 sm:$0xff]  }
 0x173   : > { %v1672_v35 = vpop.f32.mrf.mxu0  ;;  %v1745_v55 = vpop.f32.mrf.mxu1  ;;  %2868 = vmatprep.subr.bf16.mxu1 %v8910_v63 }
 0x174   : > { %v1866_v6 = vmax.f32 %v1834_v5, 0.0  ;;  %v1868_v7 = vmax.f32 %v1836_v46, 0.0  ;;  %v1835_v33 = vadd.f32 %v9778_v58, %v1781_v21  ;;  %v1837_v43 = vadd.f32 %v9781_v59, %v1783_v62 }
 0x175   : > { %v1784_v38 = vadd.f32 %v1672_v35, %v1316_v14  ;;  %v1786_v8 = vadd.f32 %v1745_v55, %v1389_v60  ;;  %v1674_v9 = vpop.f32.mrf.mxu0  ;;  %v1747_v10 = vpop.f32.mrf.mxu1  ;;  %2816 = vmatpush1.bf16.msra.mxu0 %v8905_v47  ;;  %2869 = vmatpush1.bf16.msra.mxu1 %v8908_v50  ;;  %v8916_v35 = vld [vmem:[#allocation7 + $0x14c] ss:$16 sps:$4 sm:$0xff]  }
 0x176   : > { %v1867_v54 = vmax.f32 %v1835_v33, 0.0  ;;  %v1869_v57 = vmax.f32 %v1837_v43, 0.0  ;;  %v1785_v61 = vadd.f32 %v1674_v9, %v1318_v28  ;;  %v1787_v20 = vadd.f32 %v1747_v10, %v1391_v1  ;;  %v8911_v1 = vld [vmem:[#allocation7 + $0x140] ss:$16 sps:$4 sm:$0xff]   ;;  %2817 = vmatprep.subr.bf16.mxu0 %v8913_v4  ;;  %2870 = vmatprep.subr.bf16.mxu1 %v8916_v35 }
 0x177   : > { %v1838_v11 = vadd.f32 %v9768_v56, %v1784_v38  ;;  %v1840_v40 = vadd.f32 %v9775_v44, %v1786_v8  ;;  %v1678_v12 = vpop.f32.mrf.mxu0  ;;  %v1751_v14 = vpop.f32.mrf.mxu1  ;;  %v8917_v9 = vld [vmem:[#allocation7 + $0x120] ss:$16 sps:$4 sm:$0xff]  }
 0x178   : > { %v1898_v60 = vmax.f32 %v1866_v6, %v1867_v54  ;;  %v1906_v27 = vmax.f32 %v1868_v7, %v1869_v57  ;;  %v1839_v29 = vadd.f32 %v9778_v58, %v1785_v61  ;;  %v1841_v28 = vadd.f32 %v9781_v59, %v1787_v20  ;;  %v8919_v7 = vld [vmem:[#allocation7 + $0x124] ss:$16 sps:$4 sm:$0xff]  }
 0x179   : > { %v1870_v42 = vmax.f32 %v1838_v11, 0.0  ;;  %v1872_v30 = vmax.f32 %v1840_v40, 0.0  ;;  %v1788_v5 = vadd.f32 %v1678_v12, %v1322_v3  ;;  %v1790_v46 = vadd.f32 %v1751_v14, %v1395_v49  ;;  %v1680_v21 = vpop.f32.mrf.mxu0  ;;  %v1753_v62 = vpop.f32.mrf.mxu1  ;;  %2818 = vmatpush1.bf16.msra.mxu0 %v8911_v1  ;;  %v8922_v3 = vld [vmem:[#allocation7 + $0x12c] ss:$16 sps:$4 sm:$0xff]   ;;  %2871 = vmatpush1.bf16.msra.mxu1 %v8914_v13  ;;  %v8925_v54 = vld [vmem:[#allocation7 + $0x104] ss:$16 sps:$4 sm:$0xff]  }
 0x17a   : > { %v1914_v55 = vmax.f32 %v1898_v60, %v1906_v27  ;;  %v1871_v33 = vmax.f32 %v1839_v29, 0.0  ;;  %v1873_v43 = vmax.f32 %v1841_v28, 0.0  ;;  %v1789_v6 = vadd.f32 %v1680_v21, %v1324_v31  ;;  %v8920_v31 = vld [vmem:[#allocation7 + $0x128] ss:$16 sps:$4 sm:$0xff]   ;;  %2819 = vmatprep.subr.bf16.mxu0 %v8919_v7  ;;  %2872 = vmatprep.subr.bf16.mxu1 %v8922_v3  ;;  %v8923_v1 = vld [vmem:[#allocation7 + $0x100] ss:$16 sps:$4 sm:$0xff]  }
 0x17b   : > { %v1842_v26 = vadd.f32 %v9768_v56, %v1788_v5  ;;  %v1844_v38 = vadd.f32 %v9775_v44, %v1790_v46  ;;  %v1791_v8 = vadd.f32 %v1753_v62, %v1397_v32  ;;  %v1682_v63 = vpop.f32.mrf.mxu0  ;;  %v8928_v32 = vld [vmem:[#allocation7 + $0x10c] ss:$16 sps:$4 sm:$0xff]   ;;  %v8926_v5 = vld [vmem:[#allocation7 + $0x108] ss:$16 sps:$4 sm:$0xff]   ;;  %v8931_v46 = vld [vmem:[#allocation7 + $0xe4] ss:$16 sps:$4 sm:$0xff]  }
 0x17c   : > { %v1930_v49 = vcombine.high %v1914_v55, %v1914_v55  ;;  %v1937_v10 = vrot.slane %v1914_v55, %v9796_v15  ;;  %v1899_v47 = vmax.f32 %v1870_v42, %v1871_v33  ;;  %v1907_v50 = vmax.f32 %v1872_v30, %v1873_v43 }
 0x17d   : > { %v1874_v57 = vmax.f32 %v1842_v26, 0.0  ;;  %v1876_v61 = vmax.f32 %v1844_v38, 0.0  ;;  %v1843_v20 = vadd.f32 %v9778_v58, %v1789_v6  ;;  %v1845_v51 = vadd.f32 %v9781_v59, %v1791_v8  ;;  %2820 = vmatpush1.bf16.msra.mxu0 %v8917_v9  ;;  %2873 = vmatpush1.bf16.msra.mxu1 %v8920_v31 }
 0x17e   : > { %v1944_v11 = vrot.slane %v1930_v49, %v9796_v15  ;;  %v1945_v40 = vcombine.high %v1937_v10, %v1937_v10  ;;  %v2099_v12 = vsel %vm2098_vm11, %v1937_v10, -inf  ;;  %v1915_v14 = vmax.f32 %v1899_v47, %v1907_v50  ;;  %2821 = vmatprep.subr.bf16.mxu0 %v8925_v54  ;;  %2874 = vmatprep.subr.bf16.mxu1 %v8928_v32 }
 0x17f   : > { %v2100_v60 = vrot.slane %v2099_v12, 4  ;;  %v1875_v27 = vmax.f32 %v1843_v20, 0.0  ;;  %v1877_v29 = vmax.f32 %v1845_v51, 0.0  ;;  %v9846_v28 = vadd.f32 %v1682_v63, %v9818_v34  ;;  %v8934_v34 = vld [vmem:[#allocation7 + $0xec] ss:$16 sps:$4 sm:$0xff]  }
 0x180   : > { %v1946_v4 = vcombine.high %v1944_v11, %v1944_v11  ;;  %v2106_v13 = vsel %vm2098_vm11, %v1945_v40, -inf  ;;  %v2113_v42 = vsel %vm2098_vm11, %v1944_v11, -inf  ;;  %v1947_v30 = vcombine.high %v1915_v14, %v1915_v14 }
 0x181   : > { %v2101_v21 = vmax.f32 %v2099_v12, %v2100_v60  ;;  %v2107_v62 = vrot.slane %v2106_v13, 4  ;;  %v2114_v35 = vrot.slane %v2113_v42, 4  ;;  %v1954_v55 = vrot.slane %v1915_v14, %v9796_v15  ;;  %2822 = vmatpush1.bf16.msra.mxu0 %v8923_v1  ;;  %2875 = vmatpush1.bf16.msra.mxu1 %v8926_v5 }
 0x182   : > { %v2120_v33 = vsel %vm2098_vm11, %v1946_v4, -inf  ;;  %v1961_v43 = vrot.slane %v1947_v30, %v9796_v15  ;;  %v9853_v6 = vmax.f32 %v1874_v57, %v1875_v27  ;;  %v1908_v7 = vmax.f32 %v1876_v61, %v1877_v29  ;;  %3075 = vmatprep.subr.bf16.mxu0 %v8931_v46  ;;  %3128 = vmatprep.subr.bf16.mxu1 %v8934_v34 }
 0x183   : > { %v2102_v26 = vrot.slane %v2101_v21, 2  ;;  %v2108_v38 = vmax.f32 %v2106_v13, %v2107_v62  ;;  %v2115_v8 = vmax.f32 %v2113_v42, %v2114_v35  ;;  %v2121_v9 = vrot.slane %v2120_v33, 4 }
 0x184   : > { %v1962_v3 = vcombine.high %v1954_v55, %v1954_v55  ;;  %v1963_v49 = vcombine.high %v1961_v43, %v1961_v43  ;;  %v2127_v10 = vsel %vm2098_vm11, %v1954_v55, -inf  ;;  %v2141_v47 = vsel %vm2098_vm11, %v1961_v43, -inf }
 0x185   : > { %v2103_v50 = vmax.f32 %v2101_v21, %v2102_v26  ;;  %v2109_v63 = vrot.slane %v2108_v38, 2  ;;  %v2116_v31 = vrot.slane %v2115_v8, 2  ;;  %v2122_v54 = vmax.f32 %v2120_v33, %v2121_v9 }
 0x186   : > { %v2128_v57 = vrot.slane %v2127_v10, 4  ;;  %v2134_v61 = vsel %vm2098_vm11, %v1962_v3, -inf  ;;  %v2142_v20 = vrot.slane %v2141_v47, 4  ;;  %v2148_v51 = vsel %vm2098_vm11, %v1963_v49, -inf }
 0x187   : > { %v2104_v32 = vrot.slane %v2103_v50, 1  ;;  %v2110_v11 = vmax.f32 %v2108_v38, %v2109_v63  ;;  %v2117_v40 = vmax.f32 %v2115_v8, %v2116_v31  ;;  %v2123_v12 = vrot.slane %v2122_v54, 2 }
 0x188   : > { %v2129_v14 = vmax.f32 %v2127_v10, %v2128_v57  ;;  %v2135_v60 = vrot.slane %v2134_v61, 4  ;;  %v2143_v27 = vmax.f32 %v2141_v47, %v2142_v20  ;;  %v2149_v29 = vrot.slane %v2148_v51, 4 }
 0x189   : > { %v2105_v1 = vmax.f32 %v2103_v50, %v2104_v32  ;;  %v2111_v4 = vrot.slane %v2110_v11, 1  ;;  %v2118_v13 = vrot.slane %v2117_v40, 1  ;;  %v2124_v42 = vmax.f32 %v2122_v54, %v2123_v12 }
 0x18a   : > { %v2130_v30 = vrot.slane %v2129_v14, 2  ;;  %v2136_v5 = vmax.f32 %v2134_v61, %v2135_v60  ;;  %v2144_v46 = vrot.slane %v2143_v27, 2  ;;  %v2150_v21 = vmax.f32 %v2148_v51, %v2149_v29 }
 0x18b   : > { %v2112_v62 = vmax.f32 %v2110_v11, %v2111_v4  ;;  %v2119_v35 = vmax.f32 %v2117_v40, %v2118_v13  ;;  %v2125_v55 = vrot.slane %v2124_v42, 1  ;;  %v8359_v34 = vpack.c.bf16 %v2105_v1, %v2105_v1 }
 0x18c   : > { %v2131_v33 = vmax.f32 %v2129_v14, %v2130_v30  ;;  %v2137_v43 = vrot.slane %v2136_v5, 2  ;;  %v2145_v26 = vmax.f32 %v2143_v27, %v2144_v46  ;;  %v2151_v38 = vrot.slane %v2150_v21, 2 }
 0x18d   : > { %v2126_v8 = vmax.f32 %v2124_v42, %v2125_v55  ;;  %v8360_v9 = vpack.c.bf16 %v2112_v62, %v2112_v62  ;;  %v8361_v3 = vpack.c.bf16 %v2119_v35, %v2119_v35  ;;  %v2457_v49 = vunpack.c.l.b16 %v8359_v34  ;;  %v1755_v62 = vpop.f32.mrf.mxu1 }
 0x18e   : > { %v2132_v10 = vrot.slane %v2131_v33, 1  ;;  %v2138_v47 = vmax.f32 %v2136_v5, %v2137_v43  ;;  %v2146_v50 = vrot.slane %v2145_v26, 1  ;;  %v2152_v63 = vmax.f32 %v2150_v21, %v2151_v38 }
 0x18f   : > { %v8362_v31 = vpack.c.bf16 %v2126_v8, %v2126_v8  ;;  %v2458_v54 = vunpack.c.l.b16 %v8360_v9  ;;  %v2459_v57 = vunpack.c.l.b16 %v8361_v3  ;;  %v1916_v61 = vmax.f32 %v9853_v6, %v1908_v7 }
 0x190   : > { %v2133_v20 = vmax.f32 %v2131_v33, %v2132_v10  ;;  %v2139_v51 = vrot.slane %v2138_v47, 1  ;;  %v2147_v32 = vmax.f32 %v2145_v26, %v2146_v50  ;;  %v2153_v11 = vrot.slane %v2152_v63, 1 }
 0x191   : > { %v2460_v40 = vunpack.c.l.b16 %v8362_v31  ;;  %v2490_v12 = vsel %vm2489_vm12, %v2458_v54, %v2457_v49  ;;  %v1964_v14 = vcombine.high %v1916_v61, %v1916_v61  ;;  %v1971_v60 = vrot.slane %v1916_v61, %v9796_v15 }
 0x192   : > { %v2492_v27 = vsel %vm2491_vm13, %v2459_v57, %v2490_v12  ;;  %v2140_v29 = vmax.f32 %v2138_v47, %v2139_v51  ;;  %v2154_v1 = vmax.f32 %v2152_v63, %v2153_v11  ;;  %v8363_v4 = vpack.c.bf16 %v2133_v20, %v2133_v20  ;;  %v1684_v47 = vpop.f32.mrf.mxu0  ;;  %v1757_v57 = vpop.f32.mrf.mxu1  ;;  %v2533_v20 = vld [vmem:[#allocation3] sm:$0xf] }
 0x193   : > { %v8365_v13 = vpack.c.bf16 %v2147_v32, %v2147_v32  ;;  %v2494_v42 = vsel %vm2493_vm14, %v2460_v40, %v2492_v27  ;;  %v1978_v6 = vrot.slane %v1964_v14, %v9796_v15  ;;  %v1979_v7 = vcombine.high %v1971_v60, %v1971_v60 }
 0x194   : > { %v8364_v30 = vpack.c.bf16 %v2140_v29, %v2140_v29  ;;  %v8366_v5 = vpack.c.bf16 %v2154_v1, %v2154_v1  ;;  %v2461_v46 = vunpack.c.l.b16 %v8363_v4  ;;  %v2155_v21 = vsel %vm2098_vm11, %v1971_v60, -inf  ;;  %v1688_v4 = vpop.f32.mrf.mxu0 }
 0x195   : > { %v2463_v35 = vunpack.c.l.b16 %v8365_v13  ;;  %v1980_v55 = vcombine.high %v1978_v6, %v1978_v6  ;;  %v2156_v34 = vrot.slane %v2155_v21, 4  ;;  %v2162_v33 = vsel %vm2098_vm11, %v1979_v7, -inf }
 0x196   : > { %v2462_v43 = vunpack.c.l.b16 %v8364_v30  ;;  %v9867_v26 = vunpack.c.l.b16 %v8366_v5  ;;  %v2496_v38 = vsel %vm2495_vm15, %v2461_v46, %v2494_v42  ;;  %v2163_v8 = vrot.slane %v2162_v33, 4 }
 0x197   : > { %v2157_v9 = vmax.f32 %v2155_v21, %v2156_v34  ;;  %v2169_v3 = vsel %vm2098_vm11, %v1978_v6, -inf  ;;  %v2176_v49 = vsel %vm2098_vm11, %v1980_v55, -inf  ;;  %v1846_v10 = vadd.f32 %v9768_v56, %v9846_v28 }
 0x198   : > { %v2498_v50 = vsel %vm2497_vm0, %v2462_v43, %v2496_v38  ;;  %v2164_v63 = vmax.f32 %v2162_v33, %v2163_v8  ;;  %v2170_v31 = vrot.slane %v2169_v3, 4  ;;  %v2177_v54 = vrot.slane %v2176_v49, 4  ;;  %v10506_v38 = vld [vmem:[#allocation18_spill] sm:$0xff] }
 0x199   : > { %v2500_v61 = vsel %vm2499_vm1, %v2463_v35, %v2498_v50  ;;  %v2158_v51 = vrot.slane %v2157_v9, 2  ;;  %v1878_v32 = vmax.f32 %v1846_v10, 0.0  ;;  %v1794_v11 = vadd.f32 %v1755_v62, %v9824_v36  ;;  %v1761_v36 = vpop.f32.mrf.mxu1 }
 0x19a   : > { %v2523_v40 = vpack.c.b16 %v2500_v61, %v2500_v61  ;;  %v2165_v12 = vrot.slane %v2164_v63, 2  ;;  %v2171_v14 = vmax.f32 %v2169_v3, %v2170_v31  ;;  %v2178_v60 = vmax.f32 %v2176_v49, %v2177_v54 }
 0x19b   : > { %v2159_v28 = vmax.f32 %v2157_v9, %v2158_v51  ;;  %v1848_v27 = vadd.f32 %v9775_v44, %v1794_v11  ;;  %v1793_v29 = vadd.f32 %v1684_v47, %v9828_v37  ;;  %v1795_v1 = vadd.f32 %v1757_v57, %v9832_v39  ;;  %v1690_v47 = vpop.f32.mrf.mxu0  ;;  %v1763_v57 = vpop.f32.mrf.mxu1 }
 0x19c   : > { %v2534_v42 = vsel %vm9523_vm7, %v2523_v40, %v2533_v20  ;;  %v2166_v6 = vmax.f32 %v2164_v63, %v2165_v12  ;;  %v2172_v7 = vrot.slane %v2171_v14, 2  ;;  %v2179_v30 = vrot.slane %v2178_v60, 2 }
 0x19d   : > { %2535 = vst [vmem:[#allocation3] sm:$0xf] %v2534_v42  ;;  %v2160_v5 = vrot.slane %v2159_v28, 1  ;;  %v1880_v46 = vmax.f32 %v1848_v27, 0.0  ;;  %v1847_v21 = vadd.f32 %v9778_v58, %v1793_v29  ;;  %v1849_v62 = vadd.f32 %v9781_v59, %v1795_v1 }
 0x19e   : > { %v2167_v35 = vrot.slane %v2166_v6, 1  ;;  %v2173_v55 = vmax.f32 %v2171_v14, %v2172_v7  ;;  %v2180_v37 = vmax.f32 %v2178_v60, %v2179_v30  ;;  %v1796_v39 = vadd.f32 %v1688_v4, %v9718_v17 }
 0x19f   : > { %v2161_v34 = vmax.f32 %v2159_v28, %v2160_v5  ;;  %v1879_v33 = vmax.f32 %v1847_v21, 0.0  ;;  %v1881_v43 = vmax.f32 %v1849_v62, 0.0  ;;  %v1798_v8 = vadd.f32 %v1761_v36, %v10506_v38 }
 0x1a0   : > { %v2168_v9 = vmax.f32 %v2166_v6, %v2167_v35  ;;  %v2174_v3 = vrot.slane %v2173_v55, 1  ;;  %v2181_v49 = vrot.slane %v2180_v37, 1  ;;  %v1850_v10 = vadd.f32 %v9768_v56, %v1796_v39  ;;  %v1692_v6 = vpop.f32.mrf.mxu0 }
 0x1a1   : > { %v8367_v50 = vpack.c.bf16 %v2161_v34, %v2161_v34  ;;  %v1901_v63 = vmax.f32 %v1878_v32, %v1879_v33  ;;  %v1909_v31 = vmax.f32 %v1880_v46, %v1881_v43  ;;  %v1852_v54 = vadd.f32 %v9775_v44, %v1798_v8 }
 0x1a2   : > { %v2175_v61 = vmax.f32 %v2173_v55, %v2174_v3  ;;  %v2182_v20 = vmax.f32 %v2180_v37, %v2181_v49  ;;  %v8368_v17 = vpack.c.bf16 %v2168_v9, %v2168_v9  ;;  %v1882_v51 = vmax.f32 %v1850_v10, 0.0  ;;  %v1765_v37 = vpop.f32.mrf.mxu1  ;;  %v1694_v49 = vpop.f32.mrf.mxu0 }
 0x1a3   : > { %v2465_v11 = vunpack.c.l.b16 %v8367_v50  ;;  %v1917_v40 = vmax.f32 %v1901_v63, %v1909_v31  ;;  %v1884_v12 = vmax.f32 %v1852_v54, 0.0  ;;  %v1797_v14 = vadd.f32 %v1690_v47, %v9722_v22 }
 0x1a4   : > { %v8369_v60 = vpack.c.bf16 %v2175_v61, %v2175_v61  ;;  %v8370_v28 = vpack.c.bf16 %v2182_v20, %v2182_v20  ;;  %v2466_v27 = vunpack.c.l.b16 %v8368_v17  ;;  %v1799_v29 = vadd.f32 %v1763_v57, %v9724_v24  ;;  %v10507_v17 = vld [vmem:[#allocation19_spill] sm:$0xff] }
 0x1a5   : > { %v2502_v32 = vsel %vm2501_vm3, %v2465_v11, %v9867_v26  ;;  %v1981_v1 = vcombine.high %v1917_v40, %v1917_v40  ;;  %v1988_v4 = vrot.slane %v1917_v40, %v9796_v15  ;;  %v1851_v42 = vadd.f32 %v9778_v58, %v1797_v14 }
 0x1a6   : > { %v2467_v7 = vunpack.c.l.b16 %v8369_v60  ;;  %v2468_v30 = vunpack.c.l.b16 %v8370_v28  ;;  %v2503_v36 = vsel %vm2489_vm12, %v2466_v27, %v2502_v32  ;;  %v1853_v22 = vadd.f32 %v9781_v59, %v1799_v29 }
 0x1a7   : > { %v1995_v5 = vrot.slane %v1981_v1, %v9796_v15  ;;  %v1996_v46 = vcombine.high %v1988_v4, %v1988_v4  ;;  %v2183_v24 = vsel %vm2098_vm11, %v1988_v4, -inf  ;;  %v1883_v21 = vmax.f32 %v1851_v42, 0.0 }
 0x1a8   : > { %v2504_v26 = vsel %vm2491_vm13, %v2467_v7, %v2503_v36  ;;  %v2184_v62 = vrot.slane %v2183_v24, 4  ;;  %v1885_v35 = vmax.f32 %v1853_v22, 0.0  ;;  %v1800_v55 = vadd.f32 %v1692_v6, %v9728_v0 }
 0x1a9   : > { %v1997_v39 = vcombine.high %v1995_v5, %v1995_v5  ;;  %v2190_v34 = vsel %vm2098_vm11, %v1996_v46, -inf  ;;  %v2197_v33 = vsel %vm2098_vm11, %v1995_v5, -inf  ;;  %v2505_v43 = vsel %vm2493_vm14, %v2468_v30, %v2504_v26 }
 0x1aa   : > { %v2185_v38 = vmax.f32 %v2183_v24, %v2184_v62  ;;  %v2191_v8 = vrot.slane %v2190_v34, 4  ;;  %v2198_v9 = vrot.slane %v2197_v33, 4  ;;  %v1902_v3 = vmax.f32 %v1882_v51, %v1883_v21 }
 0x1ab   : > { %v2204_v10 = vsel %vm2098_vm11, %v1997_v39, -inf  ;;  %v1910_v47 = vmax.f32 %v1884_v12, %v1885_v35  ;;  %v1854_v50 = vadd.f32 %v9768_v56, %v1800_v55  ;;  %v1802_v0 = vadd.f32 %v1765_v37, %v9730_v23 }
 0x1ac   : > { %v2186_v63 = vrot.slane %v2185_v38, 2  ;;  %v2192_v31 = vmax.f32 %v2190_v34, %v2191_v8  ;;  %v2199_v54 = vmax.f32 %v2197_v33, %v2198_v9  ;;  %v2205_v57 = vrot.slane %v2204_v10, 4 }
 0x1ad   : > { %v1918_v61 = vmax.f32 %v1902_v3, %v1910_v47  ;;  %v1886_v20 = vmax.f32 %v1854_v50, 0.0  ;;  %v1801_v11 = vadd.f32 %v1694_v49, %v10507_v17  ;;  %v9909_v12 = vadd.f32 %v9775_v44, %v1802_v0  ;;  %v1767_v47 = vpop.f32.mrf.mxu1 }
 0x1ae   : > { %v2187_v40 = vmax.f32 %v2185_v38, %v2186_v63  ;;  %v2193_v14 = vrot.slane %v2192_v31, 2  ;;  %v2200_v60 = vrot.slane %v2199_v54, 2  ;;  %v2206_v51 = vmax.f32 %v2204_v10, %v2205_v57 }
 0x1af   : > { %v1998_v28 = vcombine.high %v1918_v61, %v1918_v61  ;;  %v2005_v27 = vrot.slane %v1918_v61, %v9796_v15  ;;  %v1855_v23 = vadd.f32 %v9778_v58, %v1801_v11  ;;  %v1888_v11 = vmax.f32 %v9909_v12, 0.0 }
 0x1b0   : > { %v2188_v29 = vrot.slane %v2187_v40, 1  ;;  %v2194_v32 = vmax.f32 %v2192_v31, %v2193_v14  ;;  %v2201_v1 = vmax.f32 %v2199_v54, %v2200_v60  ;;  %v2207_v4 = vrot.slane %v2206_v51, 2  ;;  %v1698_v54 = vpop.f32.mrf.mxu0 }
 0x1b1   : > { %v2012_v42 = vrot.slane %v1998_v28, %v9796_v15  ;;  %v2013_v6 = vcombine.high %v2005_v27, %v2005_v27  ;;  %v2211_v7 = vsel %vm2098_vm11, %v2005_v27, -inf  ;;  %v1887_v30 = vmax.f32 %v1855_v23, 0.0 }
 0x1b2   : > { %v2189_v36 = vmax.f32 %v2187_v40, %v2188_v29  ;;  %v2195_v22 = vrot.slane %v2194_v32, 1  ;;  %v2202_v5 = vrot.slane %v2201_v1, 1  ;;  %v2208_v46 = vmax.f32 %v2206_v51, %v2207_v4  ;;  %v10508_v29 = vld [vmem:[#allocation20_spill] sm:$0xff] }
 0x1b3   : > { %v2014_v24 = vcombine.high %v2012_v42, %v2012_v42  ;;  %v2212_v21 = vrot.slane %v2211_v7, 4  ;;  %v2218_v26 = vsel %vm2098_vm11, %v2013_v6, -inf  ;;  %v2225_v62 = vsel %vm2098_vm11, %v2012_v42, -inf }
 0x1b4   : > { %v2196_v35 = vmax.f32 %v2194_v32, %v2195_v22  ;;  %v2203_v55 = vmax.f32 %v2201_v1, %v2202_v5  ;;  %v2209_v37 = vrot.slane %v2208_v46, 1  ;;  %v8371_v39 = vpack.c.bf16 %v2189_v36, %v2189_v36  ;;  %v1771_v1 = vpop.f32.mrf.mxu1  ;;  %v1700_v36 = vpop.f32.mrf.mxu0  ;;  %v10509_v5 = vld [vmem:[#allocation21_spill] sm:$0xff] }
 0x1b5   : > { %v2213_v34 = vmax.f32 %v2211_v7, %v2212_v21  ;;  %v2219_v33 = vrot.slane %v2218_v26, 4  ;;  %v2226_v38 = vrot.slane %v2225_v62, 4  ;;  %v2232_v8 = vsel %vm2098_vm11, %v2014_v24, -inf }
 0x1b6   : > { %v2210_v9 = vmax.f32 %v2208_v46, %v2209_v37  ;;  %v8372_v3 = vpack.c.bf16 %v2196_v35, %v2196_v35  ;;  %v8373_v49 = vpack.c.bf16 %v2203_v55, %v2203_v55  ;;  %v2469_v10 = vunpack.c.l.b16 %v8371_v39 }
 0x1b7   : > { %v2214_v50 = vrot.slane %v2213_v34, 2  ;;  %v2220_v0 = vmax.f32 %v2218_v26, %v2219_v33  ;;  %v2227_v63 = vmax.f32 %v2225_v62, %v2226_v38  ;;  %v2233_v31 = vrot.slane %v2232_v8, 4  ;;  %v10510_v62 = vld [vmem:[#allocation22_spill] sm:$0xff] }
 0x1b8   : > { %v2470_v57 = vunpack.c.l.b16 %v8372_v3  ;;  %v2471_v61 = vunpack.c.l.b16 %v8373_v49  ;;  %v2506_v17 = vsel %vm2495_vm15, %v2469_v10, %v2505_v43  ;;  %v8374_v28 = vpack.c.bf16 %v2210_v9, %v2210_v9 }
 0x1b9   : > { %v2215_v40 = vmax.f32 %v2213_v34, %v2214_v50  ;;  %v2221_v14 = vrot.slane %v2220_v0, 2  ;;  %v2228_v60 = vrot.slane %v2227_v63, 2  ;;  %v2234_v51 = vmax.f32 %v2232_v8, %v2233_v31  ;;  %v1773_v8 = vpop.f32.mrf.mxu1 }
 0x1ba   : > { %v2507_v27 = vsel %vm2497_vm0, %v2470_v57, %v2506_v17  ;;  %v1903_v23 = vmax.f32 %v1886_v20, %v1887_v30  ;;  %v1803_v32 = vadd.f32 %v1767_v47, %v10508_v29  ;;  %v1804_v46 = vadd.f32 %v1698_v54, %v10509_v5  ;;  %v1702_v47 = vpop.f32.mrf.mxu0 }
 0x1bb   : > { %v2508_v4 = vsel %vm2499_vm1, %v2471_v61, %v2507_v27  ;;  %v2216_v42 = vrot.slane %v2215_v40, 1  ;;  %v2222_v6 = vmax.f32 %v2220_v0, %v2221_v14  ;;  %v2229_v7 = vmax.f32 %v2227_v63, %v2228_v60  ;;  %v1775_v29 = vpop.f32.mrf.mxu1 }
 0x1bc   : > { %v2524_v43 = vpack.c.b16 %v2508_v4, %v2508_v4  ;;  %v2235_v22 = vrot.slane %v2234_v51, 2  ;;  %v1857_v12 = vadd.f32 %v9781_v59, %v1803_v32  ;;  %v1806_v20 = vadd.f32 %v1771_v1, %v10510_v62 }
 0x1bd   : > { %v2217_v24 = vmax.f32 %v2215_v40, %v2216_v42  ;;  %v2223_v21 = vrot.slane %v2222_v6, 1  ;;  %v2230_v26 = vrot.slane %v2229_v7, 1  ;;  %v1858_v55 = vadd.f32 %v9768_v56, %v1804_v46 }
 0x1be   : > { %2536 = vst [vmem:[#allocation3 + $0x4] sm:$0xf] %v2524_v43  ;;  %v2236_v30 = vmax.f32 %v2234_v51, %v2235_v22  ;;  %v1889_v35 = vmax.f32 %v1857_v12, 0.0  ;;  %v1805_v37 = vadd.f32 %v1700_v36, %v9756_v52  ;;  %v2472_v39 = vunpack.c.l.b16 %v8374_v28  ;;  %v1704_v22 = vpop.f32.mrf.mxu0 }
 0x1bf   : > { %v2224_v34 = vmax.f32 %v2222_v6, %v2223_v21  ;;  %v2231_v33 = vmax.f32 %v2229_v7, %v2230_v26  ;;  %v8375_v38 = vpack.c.bf16 %v2217_v24, %v2217_v24  ;;  %v1860_v49 = vadd.f32 %v9775_v44, %v1806_v20  ;;  %v1777_v20 = vpop.f32.mrf.mxu1 }
 0x1c0   : > { %v2237_v9 = vrot.slane %v2236_v30, 1  ;;  %v1911_v3 = vmax.f32 %v1888_v11, %v1889_v35  ;;  %v1859_v10 = vadd.f32 %v9778_v58, %v1805_v37  ;;  %v1890_v31 = vmax.f32 %v1858_v55, 0.0 }
 0x1c1   : > { %v8376_v50 = vpack.c.bf16 %v2224_v34, %v2224_v34  ;;  %v8377_v0 = vpack.c.bf16 %v2231_v33, %v2231_v33  ;;  %v2473_v63 = vunpack.c.l.b16 %v8375_v38  ;;  %v1807_v52 = vadd.f32 %v1773_v8, %v9759_v53 }
 0x1c2   : > { %v2238_v54 = vmax.f32 %v2236_v30, %v2237_v9  ;;  %v1919_v57 = vmax.f32 %v1903_v23, %v1911_v3  ;;  %v1891_v61 = vmax.f32 %v1859_v10, 0.0  ;;  %v1808_v11 = vadd.f32 %v1702_v47, %v9762_v45 }
 0x1c3   : > { %v2474_v17 = vunpack.c.l.b16 %v8376_v50  ;;  %v2475_v40 = vunpack.c.l.b16 %v8377_v0  ;;  %v2509_v14 = vsel %vm2501_vm3, %v2473_v63, %v2472_v39  ;;  %v1861_v1 = vadd.f32 %v9781_v59, %v1807_v52 }
 0x1c4   : > { %v8378_v60 = vpack.c.bf16 %v2238_v54, %v2238_v54  ;;  %v2015_v51 = vcombine.high %v1919_v57, %v1919_v57  ;;  %v2022_v28 = vrot.slane %v1919_v57, %v9796_v15  ;;  %v1904_v27 = vmax.f32 %v1890_v31, %v1891_v61 }
 0x1c5   : > { %v2510_v32 = vsel %vm2489_vm12, %v2474_v17, %v2509_v14  ;;  %v1862_v23 = vadd.f32 %v9768_v56, %v1808_v11  ;;  %v1892_v7 = vmax.f32 %v1860_v49, 0.0  ;;  %v1893_v36 = vmax.f32 %v1861_v1, 0.0 }
 0x1c6   : > { %v2476_v4 = vunpack.c.l.b16 %v8378_v60  ;;  %v2511_v53 = vsel %vm2491_vm13, %v2475_v40, %v2510_v32  ;;  %v2029_v42 = vrot.slane %v2015_v51, %v9796_v15  ;;  %v2030_v6 = vcombine.high %v2022_v28, %v2022_v28 }
 0x1c7   : > { %v2239_v45 = vsel %vm2098_vm11, %v2022_v28, -inf  ;;  %v1810_v43 = vadd.f32 %v1775_v29, %v9765_v18  ;;  %v1912_v62 = vmax.f32 %v1892_v7, %v1893_v36  ;;  %v1894_v55 = vmax.f32 %v1862_v23, 0.0 }
 0x1c8   : > { %v2031_v12 = vcombine.high %v2029_v42, %v2029_v42  ;;  %v2240_v5 = vrot.slane %v2239_v45, 4  ;;  %v2246_v46 = vsel %vm2098_vm11, %v2030_v6, -inf  ;;  %v2253_v24 = vsel %vm2098_vm11, %v2029_v42, -inf }
 0x1c9   : > { %v2247_v56 = vrot.slane %v2246_v46, 4  ;;  %v2254_v21 = vrot.slane %v2253_v24, 4  ;;  %v2512_v26 = vsel %vm2493_vm14, %v2476_v4, %v2511_v53  ;;  %v1809_v37 = vadd.f32 %v1704_v22, %v9786_v19 }
 0x1ca   : > { %v2241_v30 = vmax.f32 %v2239_v45, %v2240_v5  ;;  %v2260_v35 = vsel %vm2098_vm11, %v2031_v12, -inf  ;;  %v1920_v33 = vmax.f32 %v1904_v27, %v1912_v62  ;;  %v1864_v8 = vadd.f32 %v9775_v44, %v1810_v43 }
 0x1cb   : > { %v2248_v18 = vmax.f32 %v2246_v46, %v2247_v56  ;;  %v2255_v39 = vmax.f32 %v2253_v24, %v2254_v21  ;;  %v2261_v34 = vrot.slane %v2260_v35, 4  ;;  %v1863_v9 = vadd.f32 %v9778_v58, %v1809_v37 }
 0x1cc   : > { %v2242_v38 = vrot.slane %v2241_v30, 2  ;;  %v1811_v3 = vadd.f32 %v1777_v20, %v9789_v25  ;;  %v2032_v50 = vcombine.high %v1920_v33, %v1920_v33  ;;  %v2039_v63 = vrot.slane %v1920_v33, %v9796_v15 }
 0x1cd   : > { %v2249_v49 = vrot.slane %v2248_v18, 2  ;;  %v2256_v10 = vrot.slane %v2255_v39, 2  ;;  %v2262_v47 = vmax.f32 %v2260_v35, %v2261_v34  ;;  %v1895_v31 = vmax.f32 %v1863_v9, 0.0 }
 0x1ce   : > { %v2243_v0 = vmax.f32 %v2241_v30, %v2242_v38  ;;  %v1865_v19 = vadd.f32 %v9781_v59, %v1811_v3  ;;  %v2046_v52 = vrot.slane %v2032_v50, %v9796_v15  ;;  %v2047_v17 = vcombine.high %v2039_v63, %v2039_v63 }
 0x1cf   : > { %v2250_v54 = vmax.f32 %v2248_v18, %v2249_v49  ;;  %v2257_v57 = vmax.f32 %v2255_v39, %v2256_v10  ;;  %v2263_v61 = vrot.slane %v2262_v47, 2  ;;  %v2267_v58 = vsel %vm2098_vm11, %v2039_v63, -inf }
 0x1d0   : > { %v2244_v44 = vrot.slane %v2243_v0, 1  ;;  %v1905_v25 = vmax.f32 %v1894_v55, %v1895_v31  ;;  %v2048_v60 = vcombine.high %v2046_v52, %v2046_v52  ;;  %v2268_v28 = vrot.slane %v2267_v58, 4 }
 0x1d1   : > { %v2251_v40 = vrot.slane %v2250_v54, 1  ;;  %v2258_v14 = vrot.slane %v2257_v57, 1  ;;  %v2264_v11 = vmax.f32 %v2262_v47, %v2263_v61  ;;  %v2274_v27 = vsel %vm2098_vm11, %v2047_v17, -inf }
 0x1d2   : > { %v2245_v51 = vmax.f32 %v2243_v0, %v2244_v44  ;;  %v2281_v59 = vsel %vm2098_vm11, %v2046_v52, -inf  ;;  %v2275_v23 = vrot.slane %v2274_v27, 4  ;;  %v2269_v53 = vmax.f32 %v2267_v58, %v2268_v28 }
 0x1d3   : > { %v2252_v29 = vmax.f32 %v2250_v54, %v2251_v40  ;;  %v2259_v32 = vmax.f32 %v2257_v57, %v2258_v14  ;;  %v2265_v1 = vrot.slane %v2264_v11, 1  ;;  %v2282_v42 = vrot.slane %v2281_v59, 4 }
 0x1d4   : > { %v8379_v4 = vpack.c.bf16 %v2245_v51, %v2245_v51  ;;  %v2288_v6 = vsel %vm2098_vm11, %v2048_v60, -inf  ;;  %v2276_v43 = vmax.f32 %v2274_v27, %v2275_v23  ;;  %v2270_v12 = vrot.slane %v2269_v53, 2 }
 0x1d5   : > { %v2266_v45 = vmax.f32 %v2264_v11, %v2265_v1  ;;  %v8380_v7 = vpack.c.bf16 %v2252_v29, %v2252_v29  ;;  %v8381_v36 = vpack.c.bf16 %v2259_v32, %v2259_v32  ;;  %v2283_v5 = vmax.f32 %v2281_v59, %v2282_v42 }
 0x1d6   : > { %v2477_v22 = vunpack.c.l.b16 %v8379_v4  ;;  %v2289_v46 = vrot.slane %v2288_v6, 4  ;;  %v2277_v21 = vrot.slane %v2276_v43, 2  ;;  %v1896_v62 = vmax.f32 %v1864_v8, 0.0 }
 0x1d7   : > { %v2478_v24 = vunpack.c.l.b16 %v8380_v7  ;;  %v2479_v56 = vunpack.c.l.b16 %v8381_v36  ;;  %v2271_v30 = vmax.f32 %v2269_v53, %v2270_v12  ;;  %v2284_v35 = vrot.slane %v2283_v5, 2 }
 0x1d8   : > { %v2513_v20 = vsel %vm2495_vm15, %v2477_v22, %v2512_v26  ;;  %v2290_v55 = vmax.f32 %v2288_v6, %v2289_v46  ;;  %v8382_v37 = vpack.c.bf16 %v2266_v45, %v2266_v45  ;;  %v2278_v39 = vmax.f32 %v2276_v43, %v2277_v21 }
 0x1d9   : > { %v2514_v18 = vsel %vm2497_vm0, %v2478_v24, %v2513_v20  ;;  %v1897_v34 = vmax.f32 %v1865_v19, 0.0  ;;  %v2272_v38 = vrot.slane %v2271_v30, 1  ;;  %v2285_v9 = vmax.f32 %v2283_v5, %v2284_v35 }
 0x1da   : > { %v2515_v33 = vsel %vm2499_vm1, %v2479_v56, %v2514_v18  ;;  %v2291_v3 = vrot.slane %v2290_v55, 2  ;;  %v2279_v10 = vrot.slane %v2278_v39, 1  ;;  %v2480_v31 = vunpack.c.l.b16 %v8382_v37 }
 0x1db   : > { %v2525_v49 = vpack.c.b16 %v2515_v33, %v2515_v33  ;;  %v1913_v47 = vmax.f32 %v1896_v62, %v1897_v34  ;;  %v2273_v50 = vmax.f32 %v2271_v30, %v2272_v38  ;;  %v2286_v8 = vrot.slane %v2285_v9, 1 }
 0x1dc   : > { %v2292_v0 = vmax.f32 %v2290_v55, %v2291_v3  ;;  %v2280_v26 = vmax.f32 %v2278_v39, %v2279_v10 }
 0x1dd   : > { %2537 = vst [vmem:[#allocation3 + $0x8] sm:$0xf] %v2525_v49  ;;  %v1921_v63 = vmax.f32 %v1905_v25, %v1913_v47  ;;  %v2287_v54 = vmax.f32 %v2285_v9, %v2286_v8  ;;  %v8383_v61 = vpack.c.bf16 %v2273_v50, %v2273_v50  ;;  %v2539_v50 = vld [vmem:[#allocation3 + $0x10] sm:$0x1] }
 0x1de   : > { %v2293_v57 = vrot.slane %v2292_v0, 1  ;;  %v8384_v52 = vpack.c.bf16 %v2280_v26, %v2280_v26 }
 0x1df   : > { %v2049_v19 = vcombine.high %v1921_v63, %v1921_v63  ;;  %v2056_v44 = vrot.slane %v1921_v63, %v9796_v15  ;;  %v8385_v58 = vpack.c.bf16 %v2287_v54, %v2287_v54  ;;  %v2481_v40 = vunpack.c.l.b16 %v8383_v61  ;;  %v2543_v61 = vld [vmem:[#allocation3 + $0x4] sm:$0xf] }
 0x1e0   : > { %v2294_v17 = vmax.f32 %v2292_v0, %v2293_v57  ;;  %v2482_v14 = vunpack.c.l.b16 %v8384_v52 }
 0x1e1   : > { %v2063_v11 = vrot.slane %v2049_v19, %v9796_v15  ;;  %v2064_v60 = vcombine.high %v2056_v44, %v2056_v44  ;;  %v2295_v51 = vsel %vm2098_vm11, %v2056_v44, -inf  ;;  %v2483_v27 = vunpack.c.l.b16 %v8385_v58  ;;  %v2542_v44 = vld [vmem:[#allocation3] sm:$0xf] }
 0x1e2   : > { %v8386_v28 = vpack.c.bf16 %v2294_v17, %v2294_v17  ;;  %v2516_v25 = vsel %vm2501_vm3, %v2481_v40, %v2480_v31  ;;  %v2296_v59 = vrot.slane %v2295_v51, 4  ;;  %v9973_v17 = vcombine.low %v2542_v44, %v2543_v61  ;;  %v3181_v40 = vld [vmem:[#allocation3] sm:$0xe]  ;;  %v8983_v44 = vld [vmem:[#allocation7 + $0x2e8] ss:$16 sps:$4 sm:$0xff]  }
 0x1e3   : > { %v2517_v29 = vsel %vm2489_vm12, %v2482_v14, %v2516_v25  ;;  %v2065_v32 = vcombine.high %v2063_v11, %v2063_v11  ;;  %v2302_v1 = vsel %vm2098_vm11, %v2064_v60, -inf  ;;  %v2309_v23 = vsel %vm2098_vm11, %v2063_v11, -inf }
 0x1e4   : > { %v2484_v4 = vunpack.c.l.b16 %v8386_v28  ;;  %v2518_v53 = vsel %vm2491_vm13, %v2483_v27, %v2517_v29  ;;  %v2297_v42 = vmax.f32 %v2295_v51, %v2296_v59  ;;  %v2303_v6 = vrot.slane %v2302_v1, 4 }
 0x1e5   : > { %v2310_v45 = vrot.slane %v2309_v23, 4  ;;  %v2316_v7 = vsel %vm2098_vm11, %v2065_v32, -inf  ;;  %v2628_v58 = vshll.u32 %v9973_v17, 16  ;;  %v7955_v11 = vcombine.low %v3181_v40, %v2543_v61  ;;  %v8929_v32 = vld [vmem:[#allocation7 + $0xe0] ss:$16 sps:$4 sm:$0xff]  }
 0x1e6   : > { %v2298_v36 = vrot.slane %v2297_v42, 2  ;;  %v2304_v43 = vmax.f32 %v2302_v1, %v2303_v6  ;;  %v2317_v22 = vrot.slane %v2316_v7, 4  ;;  %v2519_v12 = vsel %vm2493_vm14, %v2484_v4, %v2518_v53  ;;  %v8932_v1 = vld [vmem:[#allocation7 + $0xe8] ss:$16 sps:$4 sm:$0xff]   ;;  %v8939_v6 = vld [vmem:[#allocation7 + $0xc4] ss:$16 sps:$4 sm:$0xff]  }
 0x1e7   : > { %v2311_v5 = vmax.f32 %v2309_v23, %v2310_v45  ;;  %v2630_v51 = vrot.slane %v2628_v58, 1  ;;  %v2626_v28 = vshrl.u32 %v9973_v17, 16  ;;  %v3218_v25 = vrot.slane %v7955_v11, 1  ;;  %v8942_v45 = vld [vmem:[#allocation7 + $0xcc] ss:$16 sps:$4 sm:$0xff]  }
 0x1e8   : > { %v2299_v46 = vmax.f32 %v2297_v42, %v2298_v36  ;;  %v2305_v24 = vrot.slane %v2304_v43, 2  ;;  %v2318_v56 = vmax.f32 %v2316_v7, %v2317_v22  ;;  %v8937_v36 = vld [vmem:[#allocation7 + $0xc0] ss:$16 sps:$4 sm:$0xff]   ;;  %v8982_v61 = vld [vmem:[#allocation7 + $0x2e4] ss:$16 sps:$4 sm:$0xff]  }
 0x1e9   : > { %v2312_v21 = vrot.slane %v2311_v5, 2  ;;  %v2631_v23 = vor.u32 %v2630_v51, %v2626_v28  ;;  %v8988_v58 = vld [vmem:[#allocation7 + $0x2c4] ss:$16 sps:$4 sm:$0xff]   ;;  %v8991_v40 = vld [vmem:[#allocation7 + $0x2cc] ss:$16 sps:$4 sm:$0xff]  }
 0x1ea   : > { %v2300_v62 = vrot.slane %v2299_v46, 1  ;;  %v2306_v20 = vmax.f32 %v2304_v43, %v2305_v24  ;;  %v2319_v30 = vrot.slane %v2318_v56, 2  ;;  %v8940_v43 = vld [vmem:[#allocation7 + $0xc8] ss:$16 sps:$4 sm:$0xff]   ;;  %v10512_v24 = vmov 0  }
 0x1eb   : > { %v2313_v35 = vmax.f32 %v2311_v5, %v2312_v21  ;;  %v8945_v5 = vld [vmem:[#allocation7 + $0xa4] ss:$16 sps:$4 sm:$0xff]   ;;  %v8943_v21 = vld [vmem:[#allocation7 + $0xa0] ss:$16 sps:$4 sm:$0xff]   ;;  %v8989_v11 = vld [vmem:[#allocation7 + $0x2c8] ss:$16 sps:$4 sm:$0xff]  }
 0x1ec   : > { %v2301_v55 = vmax.f32 %v2299_v46, %v2300_v62  ;;  %v2307_v37 = vrot.slane %v2306_v20, 1  ;;  %v2320_v18 = vmax.f32 %v2318_v56, %v2319_v30  ;;  %v8948_v46 = vld [vmem:[#allocation7 + $0xac] ss:$16 sps:$4 sm:$0xff]   ;;  %v8946_v62 = vld [vmem:[#allocation7 + $0xa8] ss:$16 sps:$4 sm:$0xff]  }
 0x1ed   : > { %v2314_v39 = vrot.slane %v2313_v35, 1  ;;  %v8952_v30 = vld [vmem:[#allocation7 + $0x84] ss:$16 sps:$4 sm:$0xff]   ;;  %v8997_v28 = vld [vmem:[#allocation7 + $0x2ac] ss:$16 sps:$4 sm:$0xff]  }
 0x1ee   : > { %v2308_v34 = vmax.f32 %v2306_v20, %v2307_v37  ;;  %v2321_v33 = vrot.slane %v2320_v18, 1  ;;  %v8387_v38 = vpack.c.bf16 %v2301_v55, %v2301_v55  ;;  %v8950_v37 = vld [vmem:[#allocation7 + $0x80] ss:$16 sps:$4 sm:$0xff]   ;;  %v8994_v51 = vld [vmem:[#allocation7 + $0x2a4] ss:$16 sps:$4 sm:$0xff]  }
 0x1ef   : > { %v2315_v9 = vmax.f32 %v2313_v35, %v2314_v39  ;;  %v8955_v35 = vld [vmem:[#allocation7 + $0x8c] ss:$16 sps:$4 sm:$0xff]   ;;  %v8958_v39 = vld [vmem:[#allocation7 + $0x64] ss:$16 sps:$4 sm:$0xff]  }
 0x1f0   : > { %v2322_v3 = vmax.f32 %v2320_v18, %v2321_v33  ;;  %v8388_v49 = vpack.c.bf16 %v2308_v34, %v2308_v34  ;;  %v2485_v10 = vunpack.c.l.b16 %v8387_v38  ;;  %v8953_v18 = vld [vmem:[#allocation7 + $0x88] ss:$16 sps:$4 sm:$0xff]   ;;  %v8961_v34 = vld [vmem:[#allocation7 + $0x6c] ss:$16 sps:$4 sm:$0xff]   ;;  %v8956_v33 = vld [vmem:[#allocation7 + $0x60] ss:$16 sps:$4 sm:$0xff]  }
 0x1f1   : > { %v8389_v47 = vpack.c.bf16 %v2315_v9, %v2315_v9  ;;  %v8959_v38 = vld [vmem:[#allocation7 + $0x68] ss:$16 sps:$4 sm:$0xff]   ;;  %v8964_v9 = vld [vmem:[#allocation7 + $0x44] ss:$16 sps:$4 sm:$0xff]  }
 0x1f2   : > { %v2486_v8 = vunpack.c.l.b16 %v8388_v49  ;;  %v2520_v0 = vsel %vm2495_vm15, %v2485_v10, %v2519_v12  ;;  %v8391_v26 = vpack.c.bf16 %v2322_v3, %v2322_v3  ;;  %v8967_v3 = vld [vmem:[#allocation7 + $0x4c] ss:$16 sps:$4 sm:$0xff]   ;;  %v8962_v49 = vld [vmem:[#allocation7 + $0x40] ss:$16 sps:$4 sm:$0xff]   ;;  %v8965_v10 = vld [vmem:[#allocation7 + $0x48] ss:$16 sps:$4 sm:$0xff]  }
 0x1f3   : > { %v2487_v63 = vunpack.c.l.b16 %v8389_v47  ;;  %v8970_v47 = vld [vmem:[#allocation7 + $0x24] ss:$16 sps:$4 sm:$0xff]  }
 0x1f4   : > { %v2521_v31 = vsel %vm2497_vm0, %v2486_v8, %v2520_v0  ;;  %v2540_v57 = vsel %vm9505_vm2, %v8391_v26, %v2539_v50  ;;  %v8973_v50 = vld [vmem:[#allocation7 + $0x2c] ss:$16 sps:$4 sm:$0xff]   ;;  %v8968_v8 = vld [vmem:[#allocation7 + $0x20] ss:$16 sps:$4 sm:$0xff]   ;;  %v8971_v0 = vld [vmem:[#allocation7 + $0x28] ss:$16 sps:$4 sm:$0xff]  }
 0x1f5   : > { %v2522_v52 = vsel %vm2499_vm1, %v2487_v63, %v2521_v31  ;;  %2541 = vst [vmem:[#allocation3 + $0x10] sm:$0x1] %v2540_v57  ;;  %v8976_v26 = vld [vmem:[#allocation7 + $0x4] ss:$16 sps:$4 sm:$0xff]   ;;  %v8979_v63 = vld [vmem:[#allocation7 + $0xc] ss:$16 sps:$4 sm:$0xff]  }
 0x1f6   : > { %v2526_v19 = vpack.c.b16 %v2522_v52, %v2522_v52  ;;  %v8974_v31 = vld [vmem:[#allocation7] ss:$16 sps:$4 sm:$0xff]   ;;  %v8977_v57 = vld [vmem:[#allocation7 + $0x8] ss:$16 sps:$4 sm:$0xff]   ;;  %v8985_v52 = vld [vmem:[#allocation7 + $0x2ec] ss:$16 sps:$4 sm:$0xff]  }
 0x1f8   : > { %2538 = vst [vmem:[#allocation3 + $0xc] sm:$0xf] %v2526_v19  ;;  %v8980_v19 = vld [vmem:[#allocation7 + $0x2e0] ss:$16 sps:$4 sm:$0xff]  }
 0x1fc   : > { %v8949_v14 = vld [vmem:[#allocation3 + $0x10] ss:$0 sps:$4 sm:$0x11]  }
 0x1fd   : > { %v3221_v29 = vrot.slane %v8949_v14, 1  ;;  %v2641_v12 = vshll.u32 %v8949_v14, 16  ;;  %v8986_v14 = vld [vmem:[#allocation7 + $0x2c0] ss:$16 sps:$4 sm:$0xff]  }
 0x1ff   : > { %v9976_v60 = vld [vmem:[#allocation3 + $0x8] sm:$0xff]   ;;  %v2643_v20 = vrot.slane %v2641_v12, 1  ;;  %v9016_v12 = vld [vmem:[#allocation7 + $0x220] ss:$16 sps:$4 sm:$0xff]  }
 0x200   : > { %v2633_v27 = vshll.u32 %v9976_v60, 16  ;;  %v3219_v59 = vrot.slane %v9976_v60, 1  ;;  %v2637_v22 = vshrl.u32 %v9976_v60, 16 }
 0x202   : > { %v2635_v4 = vrot.slane %v2633_v27, 1  ;;  %v9982_v53 = vsel %vm1460_vm10, %v3218_v25, %v3219_v59  ;;  %v9985_v42 = vsel %vm1460_vm10, %v3219_v59, %v3221_v29  ;;  %v8992_v27 = vld [vmem:[#allocation7 + $0x2a0] ss:$16 sps:$4 sm:$0xff]   ;;  %v8995_v25 = vld [vmem:[#allocation7 + $0x2a8] ss:$16 sps:$4 sm:$0xff]  }
 0x203   : > { %v9000_v59 = vld [vmem:[#allocation7 + $0x284] ss:$16 sps:$4 sm:$0xff]   ;;  %v8998_v29 = vld [vmem:[#allocation7 + $0x280] ss:$16 sps:$4 sm:$0xff]  }
 0x204   : > { %v2636_v7 = vsel %vm766_vm9, %v2631_v23, %v2635_v4  ;;  %v2639_v56 = vor.u32 %v2637_v22, %v2635_v4  ;;  %v9009_v23 = vld [vmem:[#allocation7 + $0x26c] ss:$16 sps:$4 sm:$0xff]   ;;  %v9004_v4 = vld [vmem:[#allocation7 + $0x260] ss:$16 sps:$4 sm:$0xff]  }
 0x205   : > { %2840 = vmatmul.mubr.bf16.vlgmr.msra.gmra.mxu0 %v2636_v7  ;;  %2893 = vmatmul.mubr.bf16.vlgmr.msra.gmra.mxu1 %v2636_v7  ;;  %v9010_v7 = vld [vmem:[#allocation7 + $0x240] ss:$16 sps:$4 sm:$0xff]   ;;  %v9021_v22 = vld [vmem:[#allocation7 + $0x22c] ss:$16 sps:$4 sm:$0xff]  }
 0x206   : > { %3076 = vmatpush1.bf16.msra.mxu0 %v8929_v32  ;;  %3129 = vmatpush1.bf16.msra.mxu1 %v8932_v1  ;;  %v2644_v55 = vsel %vm766_vm9, %v2639_v56, %v2643_v20  ;;  %v9001_v32 = vld [vmem:[#allocation7 + $0x288] ss:$16 sps:$4 sm:$0xff]   ;;  %v9006_v1 = vld [vmem:[#allocation7 + $0x264] ss:$16 sps:$4 sm:$0xff]   ;;  %v9027_v56 = vld [vmem:[#allocation7 + $0x20c] ss:$16 sps:$4 sm:$0xff]  }
 0x207   : > { %3077 = vmatprep.subr.bf16.mxu0 %v8939_v6  ;;  %3130 = vmatprep.subr.bf16.mxu1 %v8942_v45  ;;  %v9007_v6 = vld [vmem:[#allocation7 + $0x268] ss:$16 sps:$4 sm:$0xff]   ;;  %v9012_v45 = vld [vmem:[#allocation7 + $0x244] ss:$16 sps:$4 sm:$0xff]  }
 0x208   : > { %2849 = vmatprep.mubr.bf16.mxu0 %v10512_v24  ;;  %2902 = vmatprep.mubr.bf16.mxu1 %v10512_v24  ;;  %v3789_v20 = vld [vmem:[#allocation4] sm:$0x1] }
 0x20a   : > { %3078 = vmatpush1.bf16.msra.mxu0 %v8937_v36  ;;  %3131 = vmatpush1.bf16.msra.mxu1 %v8940_v43  ;;  %v9013_v36 = vld [vmem:[#allocation7 + $0x248] ss:$16 sps:$4 sm:$0xff]   ;;  %v9018_v43 = vld [vmem:[#allocation7 + $0x224] ss:$16 sps:$4 sm:$0xff]  }
 0x20b   : > { %3079 = vmatprep.subr.bf16.mxu0 %v8945_v5  ;;  %3132 = vmatprep.subr.bf16.mxu1 %v8948_v46  ;;  %v9019_v5 = vld [vmem:[#allocation7 + $0x228] ss:$16 sps:$4 sm:$0xff]   ;;  %v9024_v46 = vld [vmem:[#allocation7 + $0x204] ss:$16 sps:$4 sm:$0xff]  }
 0x20d   : > { %2850 = vmatmul.mubr.bf16.gmra.mxu0 %v2644_v55  ;;  %2903 = vmatmul.mubr.bf16.gmra.mxu1 %v2644_v55  ;;  %v4013_v55 = vld [vmem:[#allocation9 + $0x3e0] sm:$0xff] }
 0x20e   : > { %3080 = vmatpush1.bf16.msra.mxu0 %v8943_v21  ;;  %3133 = vmatpush1.bf16.msra.mxu1 %v8946_v62  ;;  %v9022_v21 = vld [vmem:[#allocation7 + $0x200] ss:$16 sps:$4 sm:$0xff]   ;;  %v9025_v62 = vld [vmem:[#allocation7 + $0x208] ss:$16 sps:$4 sm:$0xff]  }
 0x20f   : > { %3081 = vmatprep.subr.bf16.mxu0 %v8952_v30  ;;  %3134 = vmatprep.subr.bf16.mxu1 %v8955_v35  ;;  %v3790_v30 = vsel %vm9505_vm2, 0, %v3789_v20  ;;  %v4009_v35 = vld [vmem:[#allocation9 + $0x3c0] sm:$0xff]  ;;  %v3974_v20 = vld [vmem:[#allocation9 + $0x2a8] sm:$0xff] }
 0x210   : > { %3107 = vmatprep.mubr.bf16.mxu0 %v10512_v24  ;;  %3160 = vmatprep.mubr.bf16.mxu1 %v10512_v24  ;;  %3791 = vst [vmem:[#allocation4] sm:$0x1] %v3790_v30  ;;  %v3961_v30 = vld [vmem:[#allocation9 + $0x240] sm:$0xff] }
 0x212   : > { %3082 = vmatpush1.bf16.msra.mxu0 %v8950_v37  ;;  %3135 = vmatpush1.bf16.msra.mxu1 %v8953_v18  ;;  %v8064_v37 = vcombine.high %v4009_v35, %v4013_v55  ;;  %v4014_v18 = vld [vmem:[#allocation9 + $0x3e8] sm:$0xff] }
 0x213   : > { %3083 = vmatprep.subr.bf16.mxu0 %v8958_v39  ;;  %3136 = vmatprep.subr.bf16.mxu1 %v8961_v34  ;;  %v8063_v39 = vcombine.low %v4009_v35, %v4013_v55  ;;  %v3965_v35 = vld [vmem:[#allocation9 + $0x260] sm:$0xff] }
 0x216   : > { %3084 = vmatpush1.bf16.msra.mxu0 %v8956_v33  ;;  %3137 = vmatpush1.bf16.msra.mxu1 %v8959_v38  ;;  %v4005_v38 = vld [vmem:[#allocation9 + $0x3a0] sm:$0xff] }
 0x217   : > { %3085 = vmatprep.subr.bf16.mxu0 %v8964_v9  ;;  %3138 = vmatprep.subr.bf16.mxu1 %v8967_v3  ;;  %v4002_v9 = vld [vmem:[#allocation9 + $0x388] sm:$0xff]  ;;  %v3792_v3 = vld [vmem:[#allocation4 + $0x8] sm:$0x1] }
 0x21a   : > { %3086 = vmatpush1.bf16.msra.mxu0 %v8962_v49  ;;  %3139 = vmatpush1.bf16.msra.mxu1 %v8965_v10  ;;  %v4006_v10 = vld [vmem:[#allocation9 + $0x3a8] sm:$0xff] }
 0x21b   : > { %3087 = vmatprep.subr.bf16.mxu0 %v8970_v47  ;;  %3140 = vmatprep.subr.bf16.mxu1 %v8973_v50  ;;  %v3793_v47 = vsel %vm9559_vm8, 0, %v3792_v3  ;;  %v10030_v3 = vld [vmem:[#allocation9 + $0x3d0] sm:$0xff] }
 0x21c   : > { %3794 = vst [vmem:[#allocation4 + $0x8] sm:$0x1] %v3793_v47 }
 0x21e   : > { %3088 = vmatpush1.bf16.msra.mxu0 %v8968_v8  ;;  %3141 = vmatpush1.bf16.msra.mxu1 %v8971_v0  ;;  %v8057_v8 = vcombine.low %v4002_v9, %v4006_v10  ;;  %v8058_v0 = vcombine.high %v4002_v9, %v4006_v10  ;;  %v3958_v9 = vld [vmem:[#allocation9 + $0x228] sm:$0xff]  ;;  %v10034_v10 = vld [vmem:[#allocation9 + $0x3d8] sm:$0xff] }
 0x21f   : > { %3089 = vmatprep.subr.bf16.mxu0 %v8976_v26  ;;  %3142 = vmatprep.subr.bf16.mxu1 %v8979_v63 }
 0x222   : > { %3090 = vmatpush1.bf16.msra.mxu0 %v8974_v31  ;;  %3143 = vmatpush1.bf16.msra.mxu1 %v8977_v57  ;;  %v3993_v31 = vld [vmem:[#allocation9 + $0x340] sm:$0xff] }
 0x223   : > { %3385 = vmatprep.subr.bf16.mxu0 %v8982_v61  ;;  %3438 = vmatprep.subr.bf16.mxu1 %v8985_v52  ;;  %v3997_v57 = vld [vmem:[#allocation9 + $0x360] sm:$0xff]  ;;  %v3994_v61 = vld [vmem:[#allocation9 + $0x348] sm:$0xff] }
 0x224   : > { %v8048_v52 = vcombine.high %v3993_v31, %v3997_v57 }
 0x225   : > { %3108 = vmatmul.mubr.bf16.vlgmr.msra.gmra.mxu0 %v9973_v17  ;;  %3161 = vmatmul.mubr.bf16.vlgmr.msra.gmra.mxu1 %v9973_v17  ;;  %v9003_v17 = vld [vmem:[#allocation7 + $0x28c] ss:$16 sps:$4 sm:$0xff]  }
 0x226   : > { %3386 = vmatpush1.bf16.msra.mxu0 %v8980_v19  ;;  %3439 = vmatpush1.bf16.msra.mxu1 %v8983_v44  ;;  %v3998_v19 = vld [vmem:[#allocation9 + $0x368] sm:$0xff]  ;;  %v8047_v44 = vcombine.low %v3993_v31, %v3997_v57  ;;  %v10042_v31 = vld [vmem:[#allocation9 + $0x3f8] sm:$0xff] }
 0x227   : > { %3387 = vmatprep.subr.bf16.mxu0 %v8988_v58  ;;  %3440 = vmatprep.subr.bf16.mxu1 %v8991_v40  ;;  %v8049_v41 = vcombine.low %v3994_v61, %v3998_v19  ;;  %v8050_v58 = vcombine.high %v3994_v61, %v3998_v19 }
 0x228   : > { %3117 = vmatprep.mubr.bf16.mxu0 %v10512_v24  ;;  %3170 = vmatprep.mubr.bf16.mxu1 %v10512_v24 }
 0x22a   : > { %3388 = vmatpush1.bf16.msra.mxu0 %v8986_v14  ;;  %3441 = vmatpush1.bf16.msra.mxu1 %v8989_v11  ;;  %v3985_v11 = vld [vmem:[#allocation9 + $0x300] sm:$0xff] }
 0x22b   : > { %3389 = vmatprep.subr.bf16.mxu0 %v8994_v51  ;;  %3442 = vmatprep.subr.bf16.mxu1 %v8997_v28  ;;  %v3989_v51 = vld [vmem:[#allocation9 + $0x320] sm:$0xff]  ;;  %v3986_v28 = vld [vmem:[#allocation9 + $0x308] sm:$0xff] }
 0x22d   : > { %3118 = vmatmul.mubr.bf16.gmra.mxu0 %v9976_v60  ;;  %3171 = vmatmul.mubr.bf16.gmra.mxu1 %v9976_v60  ;;  %v9015_v60 = vld [vmem:[#allocation7 + $0x24c] ss:$16 sps:$4 sm:$0xff]  }
 0x22e   : > { %3390 = vmatpush1.bf16.msra.mxu0 %v8992_v27  ;;  %3443 = vmatpush1.bf16.msra.mxu1 %v8995_v25  ;;  %v8040_v27 = vcombine.high %v3985_v11, %v3989_v51  ;;  %v3990_v25 = vld [vmem:[#allocation9 + $0x328] sm:$0xff] }
 0x22f   : > { %3391 = vmatprep.subr.bf16.mxu0 %v9000_v59  ;;  %3444 = vmatprep.subr.bf16.mxu1 %v9003_v17  ;;  %v8039_v59 = vcombine.low %v3985_v11, %v3989_v51  ;;  %v8041_v17 = vcombine.low %v3986_v28, %v3990_v25 }
 0x230   : > { %3417 = vmatprep.mubr.bf16.mxu0 %v10512_v24  ;;  %3470 = vmatprep.mubr.bf16.mxu1 %v10512_v24 }
 0x232   : > { %3392 = vmatpush1.bf16.msra.mxu0 %v8998_v29  ;;  %3445 = vmatpush1.bf16.msra.mxu1 %v9001_v32  ;;  %v8042_v29 = vcombine.high %v3986_v28, %v3990_v25  ;;  %v8070_v28 = vcombine.high %v10034_v10, %v10042_v31 }
 0x233   : > { %3393 = vmatprep.subr.bf16.mxu0 %v9006_v1  ;;  %3446 = vmatprep.subr.bf16.mxu1 %v9009_v23  ;;  %v3977_v23 = vld [vmem:[#allocation9 + $0x2c0] sm:$0xff] }
 0x236   : > { %3394 = vmatpush1.bf16.msra.mxu0 %v9004_v4  ;;  %3447 = vmatpush1.bf16.msra.mxu1 %v9007_v6  ;;  %v3981_v4 = vld [vmem:[#allocation9 + $0x2e0] sm:$0xff]  ;;  %v3978_v6 = vld [vmem:[#allocation9 + $0x2c8] sm:$0xff] }
 0x237   : > { %3395 = vmatprep.subr.bf16.mxu0 %v9012_v45  ;;  %3448 = vmatprep.subr.bf16.mxu1 %v9015_v60  ;;  %v8032_v45 = vcombine.high %v3977_v23, %v3981_v4  ;;  %v3982_v60 = vld [vmem:[#allocation9 + $0x2e8] sm:$0xff] }
 0x23a   : > { %3396 = vmatpush1.bf16.msra.mxu0 %v9010_v7  ;;  %3449 = vmatpush1.bf16.msra.mxu1 %v9013_v36  ;;  %v8031_v7 = vcombine.low %v3977_v23, %v3981_v4  ;;  %v8033_v36 = vcombine.low %v3978_v6, %v3982_v60 }
 0x23b   : > { %3397 = vmatprep.subr.bf16.mxu0 %v9018_v43  ;;  %3450 = vmatprep.subr.bf16.mxu1 %v9021_v22  ;;  %v8034_v43 = vcombine.high %v3978_v6, %v3982_v60  ;;  %v3969_v22 = vld [vmem:[#allocation9 + $0x280] sm:$0xff] }
 0x23e   : > { %3398 = vmatpush1.bf16.msra.mxu0 %v9016_v12  ;;  %3451 = vmatpush1.bf16.msra.mxu1 %v9019_v5  ;;  %v3973_v12 = vld [vmem:[#allocation9 + $0x2a0] sm:$0xff]  ;;  %v3970_v5 = vld [vmem:[#allocation9 + $0x288] sm:$0xff] }
 0x23f   : > { %3399 = vmatprep.subr.bf16.mxu0 %v9024_v46  ;;  %3452 = vmatprep.subr.bf16.mxu1 %v9027_v56  ;;  %v8025_v55 = vcombine.low %v3970_v5, %v3974_v20 }
 0x242   : > { %3400 = vmatpush1.bf16.msra.mxu0 %v9022_v21  ;;  %3453 = vmatpush1.bf16.msra.mxu1 %v9025_v62  ;;  %v8023_v21 = vcombine.low %v3969_v22, %v3973_v12  ;;  %v8024_v62 = vcombine.high %v3969_v22, %v3973_v12 }
 0x243   : > { %4358 = vmatprep.subr.bf16.mxu0 %v8064_v37  ;;  %v8016_v37 = vcombine.high %v3961_v30, %v3965_v35 }
 0x245   : > { %3418 = vmatmul.mubr.bf16.vlgmr.msra.gmra.mxu0 %v9982_v53  ;;  %3471 = vmatmul.mubr.bf16.vlgmr.msra.gmra.mxu1 %v9982_v53  ;;  %v4010_v53 = vld [vmem:[#allocation9 + $0x3c8] sm:$0xff] }
 0x246   : > { %3427 = vmatprep.mubr.bf16.mxu0 %v10512_v24  ;;  %3480 = vmatprep.mubr.bf16.mxu1 %v10512_v24  ;;  %v8065_v34 = vcombine.low %v4010_v53, %v4014_v18  ;;  %v8066_v33 = vcombine.high %v4010_v53, %v4014_v18  ;;  %v8026_v53 = vcombine.high %v3970_v5, %v3974_v20  ;;  %v3962_v18 = vld [vmem:[#allocation9 + $0x248] sm:$0xff]  ;;  %v3507_v20 = vld [vmem:[%s10462_s4] sm:$0xf] }
 0x247   : > { %4359 = vmatpush1.bf16.msra.mxu0 %v8063_v39  ;;  %v3966_v39 = vld [vmem:[#allocation9 + $0x268] sm:$0xff] }
 0x248   : > { %4401 = vmatprep.subr.bf16.mxu1 %v8066_v33  ;;  %v8018_v33 = vcombine.high %v3962_v18, %v3966_v39  ;;  %v8017_v57 = vcombine.low %v3962_v18, %v3966_v39  ;;  %v10079_v18 = vrot.slane %v3507_v20, %v9740_v48 }
 0x249   : > { %4402 = vmatpush1.bf16.msra.mxu1 %v8065_v34  ;;  %v3953_v34 = vld [vmem:[#allocation9 + $0x200] sm:$0xff] }
 0x24a   : > { %4403 = vmatprep.subr.bf16.mxu1 %v8058_v0 }
 0x24d   : > { %3428 = vmatmul.mubr.bf16.gmra.mxu0 %v9985_v42  ;;  %3481 = vmatmul.mubr.bf16.gmra.mxu1 %v9985_v42  ;;  %v4001_v42 = vld [vmem:[#allocation9 + $0x380] sm:$0xff] }
 0x24e   : > { %4390 = vmatprep.mubr.bf16.mxu0 %v10512_v24  ;;  %4433 = vmatprep.mubr.bf16.mxu1 %v10512_v24  ;;  %v8056_v49 = vcombine.high %v4001_v42, %v4005_v38  ;;  %v8055_v50 = vcombine.low %v4001_v42, %v4005_v38  ;;  %v3957_v42 = vld [vmem:[#allocation9 + $0x220] sm:$0xff]  ;;  %v3954_v38 = vld [vmem:[#allocation9 + $0x208] sm:$0xff] }
 0x24f   : > { %4404 = vmatpush1.bf16.msra.mxu1 %v8057_v8  ;;  %v8015_v8 = vcombine.low %v3961_v30, %v3965_v35  ;;  %v8008_v61 = vcombine.high %v3953_v34, %v3957_v42  ;;  %v8010_v19 = vcombine.high %v3954_v38, %v3958_v9  ;;  %v8009_v11 = vcombine.low %v3954_v38, %v3958_v9  ;;  %v10514_v38 = vld [vmem:[#allocation24_spill] sm:$0xff] }
 0x250   : > { %4360 = vmatprep.subr.bf16.mxu0 %v8056_v49  ;;  %4405 = vmatprep.subr.bf16.mxu1 %v8050_v58  ;;  %v10032_v49 = vld [vmem:[#allocation9 + $0x3f0] sm:$0xff]  ;;  %v8007_v58 = vcombine.low %v3953_v34, %v3957_v42  ;;  %v10085_v9 = vrot.slane %v3507_v20, %v10514_v38 }
 0x251   : > { %4361 = vmatpush1.bf16.msra.mxu0 %v8055_v50  ;;  %v8067_v0 = vcombine.low %v10030_v3, %v10032_v49  ;;  %v8068_v51 = vcombine.high %v10030_v3, %v10032_v49 }
 0x252   : > { %4362 = vmatprep.subr.bf16.mxu0 %v8048_v52  ;;  %v8069_v52 = vcombine.low %v10034_v10, %v10042_v31  ;;  %v3979_v31 = vld [vmem:[#allocation9 + $0x2d0] sm:$0xff] }
 0x253   : > { %4406 = vmatpush1.bf16.msra.mxu1 %v8049_v41 }
 0x254   : > { %4407 = vmatprep.subr.bf16.mxu1 %v8042_v29 }
 0x255   : > { %4363 = vmatpush1.bf16.msra.mxu0 %v8047_v44 }
 0x256   : > { %4364 = vmatprep.subr.bf16.mxu0 %v8040_v27 }
 0x257   : > { %4408 = vmatpush1.bf16.msra.mxu1 %v8041_v17 }
 0x258   : > { %4409 = vmatprep.subr.bf16.mxu1 %v8034_v43 }
 0x259   : > { %4365 = vmatpush1.bf16.msra.mxu0 %v8039_v59 }
 0x25a   : > { %4366 = vmatprep.subr.bf16.mxu0 %v8032_v45 }
 0x25b   : > { %4410 = vmatpush1.bf16.msra.mxu1 %v8033_v36 }
 0x25c   : > { %4411 = vmatprep.subr.bf16.mxu1 %v8026_v53 }
 0x25d   : > { %4367 = vmatpush1.bf16.msra.mxu0 %v8031_v7 }
 0x25e   : > { %4368 = vmatprep.subr.bf16.mxu0 %v8024_v62 }
 0x25f   : > { %4412 = vmatpush1.bf16.msra.mxu1 %v8025_v55 }
 0x260   : > { %4413 = vmatprep.subr.bf16.mxu1 %v8018_v33  ;;  %v10513_v33 = vld [vmem:[#allocation23_spill] sm:$0xff] }
 0x261   : > { %4369 = vmatpush1.bf16.msra.mxu0 %v8023_v21  ;;  %v10082_v42 = vrot.slane %v3507_v20, %v10513_v33 }
 0x262   : > { %4370 = vmatprep.subr.bf16.mxu0 %v8016_v37  ;;  %v10076_v37 = vrot.slane %v3507_v20, %v9737_v16 }
 0x263   : > { %4414 = vmatpush1.bf16.msra.mxu1 %v8017_v57 }
 0x264   : > { %4415 = vmatprep.subr.bf16.mxu1 %v8010_v19 }
 0x265   : > { %4371 = vmatpush1.bf16.msra.mxu0 %v8015_v8 }
 0x266   : > { %4372 = vmatprep.subr.bf16.mxu0 %v8008_v61 }
 0x267   : > { %4416 = vmatpush1.bf16.msra.mxu1 %v8009_v11 }
 0x268   : > { %4487 = vmatprep.subr.bf16.mxu1 %v8070_v28 }
 0x269   : > { %4373 = vmatpush1.bf16.msra.mxu0 %v8007_v58 }
 0x26a   : > { %4444 = vmatprep.subr.bf16.mxu0 %v8068_v51 }
 0x2c5   : > { %v10014_v26 = vpop.f32.mrf.mxu0  ;;  %v10016_v63 = vpop.f32.mrf.mxu1 }
 0x2c7   : > { %v10018_v40 = vpop.f32.mrf.mxu0  ;;  %v10020_v14 = vpop.f32.mrf.mxu1 }
 0x2c9   : > { %v10022_v32 = vpop.f32.mrf.mxu0  ;;  %v10024_v1 = vpop.f32.mrf.mxu1 }
 0x2cb   : > { %v10026_v46 = vpop.f32.mrf.mxu0  ;;  %v10028_v56 = vpop.f32.mrf.mxu1 }
 0x2cd   : > { %v10036_v47 = vpop.f32.mrf.mxu0  ;;  %v10038_v50 = vpop.f32.mrf.mxu1 }
 0x2cf   : > { %v10046_v44 = vpop.f32.mrf.mxu0  ;;  %v10048_v41 = vpop.f32.mrf.mxu1 }
 0x2d1   : > { %v10054_v27 = vpop.f32.mrf.mxu0  ;;  %v10056_v25 = vpop.f32.mrf.mxu1 }
 0x2d3   : > { %v10058_v59 = vpop.f32.mrf.mxu0  ;;  %v10060_v17 = vpop.f32.mrf.mxu1 }
 0x2e5   : > { %v3109_v29 = vpop.f32.mrf.mxu0  ;;  %v3162_v23 = vpop.f32.mrf.mxu1 }
 0x2e6   : > { %v3110_v55 = vadd.f32 %v3109_v29, %v10014_v26  ;;  %v3163_v53 = vadd.f32 %v3162_v23, %v10016_v63 }
 0x2e7   : > { %v3111_v4 = vpop.f32.mrf.mxu0  ;;  %v3164_v6 = vpop.f32.mrf.mxu1 }
 0x2e8   : > { %v3112_v8 = vadd.f32 %v3111_v4, %v10018_v40  ;;  %v3165_v26 = vadd.f32 %v3164_v6, %v10020_v14 }
 0x2e9   : > { %v3113_v45 = vpop.f32.mrf.mxu0  ;;  %v3166_v60 = vpop.f32.mrf.mxu1 }
 0x2ea   : > { %v3114_v29 = vadd.f32 %v3113_v45, %v10022_v32  ;;  %v3167_v23 = vadd.f32 %v3166_v60, %v10024_v1 }
 0x2eb   : > { %v3115_v7 = vpop.f32.mrf.mxu0  ;;  %v3168_v36 = vpop.f32.mrf.mxu1 }
 0x2ec   : > { %v3116_v20 = vadd.f32 %v3115_v7, %v10026_v46  ;;  %v3169_v40 = vadd.f32 %v3168_v36, %v10028_v56 }
 0x2ed   : > { %v3119_v43 = vpop.f32.mrf.mxu0  ;;  %v3172_v22 = vpop.f32.mrf.mxu1 }
 0x2ee   : > { %v3120_v6 = vadd.f32 %v3119_v43, %v10036_v47 }
 0x2ef   : > { %v3121_v12 = vpop.f32.mrf.mxu0  ;;  %v3174_v5 = vpop.f32.mrf.mxu1 }
 0x2f0   : > { %v3122_v36 = vadd.f32 %v3121_v12, %v10046_v44  ;;  %v3175_v47 = vadd.f32 %v3174_v5, %v10048_v41 }
 0x2f1   : > { %v10062_v21 = vpop.f32.mrf.mxu0  ;;  %v10064_v62 = vpop.f32.mrf.mxu1 }
 0x2f3   : > { %v10069_v30 = vpop.f32.mrf.mxu0  ;;  %v10071_v35 = vpop.f32.mrf.mxu1 }
 0x305   : > { %v3419_v39 = vpop.f32.mrf.mxu0  ;;  %v3472_v34 = vpop.f32.mrf.mxu1 }
 0x306   : > { %v3491_v57 = vadd.f32 %v3419_v39, %v3110_v55  ;;  %v3493_v63 = vadd.f32 %v3472_v34, %v3163_v53  ;;  %v3173_v55 = vadd.f32 %v3172_v22, %v10038_v50 }
 0x307   : > { %v3421_v61 = vpop.f32.mrf.mxu0  ;;  %v3474_v19 = vpop.f32.mrf.mxu1 }
 0x308   : > { %v3529_v58 = vadd.f32 %v10076_v37, %v3491_v57  ;;  %v3531_v11 = vadd.f32 %v10079_v18, %v3493_v63  ;;  %v3492_v51 = vadd.f32 %v3421_v61, %v3112_v8  ;;  %v3494_v28 = vadd.f32 %v3474_v19, %v3165_v26 }
 0x309   : > { %v3423_v4 = vpop.f32.mrf.mxu0  ;;  %v3476_v14 = vpop.f32.mrf.mxu1 }
 0x30a   : > { %v3530_v53 = vadd.f32 %v10082_v42, %v3492_v51  ;;  %v3532_v39 = vadd.f32 %v10085_v9, %v3494_v28  ;;  %v3545_v34 = vmax.f32 %v3529_v58, 0.0  ;;  %v3547_v8 = vmax.f32 %v3531_v11, 0.0 }
 0x30b   : > { %v3495_v26 = vadd.f32 %v3423_v4, %v3114_v29  ;;  %v3497_v32 = vadd.f32 %v3476_v14, %v3167_v23  ;;  %v3425_v45 = vpop.f32.mrf.mxu0  ;;  %v3478_v1 = vpop.f32.mrf.mxu1 }
 0x30c   : > { %v3546_v60 = vmax.f32 %v3530_v53, 0.0  ;;  %v3548_v46 = vmax.f32 %v3532_v39, 0.0  ;;  %v3496_v7 = vadd.f32 %v3425_v45, %v3116_v20  ;;  %v3498_v56 = vadd.f32 %v3478_v1, %v3169_v40 }
 0x30d   : > { %v3533_v50 = vadd.f32 %v10076_v37, %v3495_v26  ;;  %v3535_v43 = vadd.f32 %v10079_v18, %v3497_v32  ;;  %v3429_v22 = vpop.f32.mrf.mxu0  ;;  %v3482_v57 = vpop.f32.mrf.mxu1 }
 0x30e   : > { %v3561_v63 = vmax.f32 %v3545_v34, %v3546_v60  ;;  %v3565_v61 = vmax.f32 %v3547_v8, %v3548_v46  ;;  %v3534_v19 = vadd.f32 %v10082_v42, %v3496_v7  ;;  %v3536_v58 = vadd.f32 %v10085_v9, %v3498_v56 }
 0x30f   : > { %v3549_v11 = vmax.f32 %v3533_v50, 0.0  ;;  %v3551_v51 = vmax.f32 %v3535_v43, 0.0  ;;  %v3499_v28 = vadd.f32 %v3429_v22, %v3120_v6  ;;  %v3501_v29 = vadd.f32 %v3482_v57, %v3173_v55  ;;  %v3431_v23 = vpop.f32.mrf.mxu0  ;;  %v3484_v44 = vpop.f32.mrf.mxu1 }
 0x310   : > { %v3569_v12 = vmax.f32 %v3561_v63, %v3565_v61  ;;  %v3550_v41 = vmax.f32 %v3534_v19, 0.0  ;;  %v3552_v5 = vmax.f32 %v3536_v58, 0.0  ;;  %v3500_v20 = vadd.f32 %v3431_v23, %v3122_v36 }
 0x311   : > { %v3537_v40 = vadd.f32 %v10076_v37, %v3499_v28  ;;  %v3539_v4 = vadd.f32 %v10079_v18, %v3501_v29  ;;  %v3502_v14 = vadd.f32 %v3484_v44, %v3175_v47  ;;  %v10110_v6 = vadd.f32 %v10062_v21, %v10054_v27 }
 0x312   : > { %v3577_v53 = vcombine.high %v3569_v12, %v3569_v12  ;;  %v3584_v39 = vrot.slane %v3569_v12, %v9796_v15  ;;  %v3562_v34 = vmax.f32 %v3549_v11, %v3550_v41  ;;  %v3566_v8 = vmax.f32 %v3551_v51, %v3552_v5 }
 0x313   : > { %v3553_v55 = vmax.f32 %v3537_v40, 0.0  ;;  %v3538_v26 = vadd.f32 %v10082_v42, %v3500_v20  ;;  %v3540_v32 = vadd.f32 %v10085_v9, %v3502_v14  ;;  %v3555_v56 = vmax.f32 %v3539_v4, 0.0 }
 0x314   : > { %v3591_v45 = vrot.slane %v3577_v53, %v9796_v15  ;;  %v3592_v1 = vcombine.high %v3584_v39, %v3584_v39  ;;  %v3661_v60 = vsel %vm2098_vm11, %v3584_v39, -inf  ;;  %v3570_v46 = vmax.f32 %v3562_v34, %v3566_v8 }
 0x315   : > { %v3662_v7 = vrot.slane %v3661_v60, 4  ;;  %v3554_v36 = vmax.f32 %v3538_v26, 0.0  ;;  %v3556_v47 = vmax.f32 %v3540_v32, 0.0 }
 0x316   : > { %v3593_v50 = vcombine.high %v3591_v45, %v3591_v45  ;;  %v3668_v43 = vsel %vm2098_vm11, %v3592_v1, -inf  ;;  %v3675_v27 = vsel %vm2098_vm11, %v3591_v45, -inf  ;;  %v3594_v21 = vcombine.high %v3570_v46, %v3570_v46 }
 0x317   : > { %v3663_v22 = vmax.f32 %v3661_v60, %v3662_v7  ;;  %v3669_v57 = vrot.slane %v3668_v43, 4  ;;  %v3676_v63 = vrot.slane %v3675_v27, 4  ;;  %v3601_v61 = vrot.slane %v3570_v46, %v9796_v15 }
 0x318   : > { %v3682_v19 = vsel %vm2098_vm11, %v3593_v50, -inf  ;;  %v3608_v58 = vrot.slane %v3594_v21, %v9796_v15  ;;  %v3563_v11 = vmax.f32 %v3553_v55, %v3554_v36  ;;  %v3567_v51 = vmax.f32 %v3555_v56, %v3556_v47 }
 0x319   : > { %v3664_v28 = vrot.slane %v3663_v22, 2  ;;  %v3670_v29 = vmax.f32 %v3668_v43, %v3669_v57  ;;  %v3677_v23 = vmax.f32 %v3675_v27, %v3676_v63  ;;  %v3683_v44 = vrot.slane %v3682_v19, 4 }
 0x31a   : > { %v3609_v12 = vcombine.high %v3601_v61, %v3601_v61  ;;  %v3610_v41 = vcombine.high %v3608_v58, %v3608_v58  ;;  %v3689_v5 = vsel %vm2098_vm11, %v3601_v61, -inf  ;;  %v3703_v20 = vsel %vm2098_vm11, %v3608_v58, -inf }
 0x31b   : > { %v3665_v40 = vmax.f32 %v3663_v22, %v3664_v28  ;;  %v3671_v4 = vrot.slane %v3670_v29, 2  ;;  %v3678_v14 = vrot.slane %v3677_v23, 2  ;;  %v3684_v53 = vmax.f32 %v3682_v19, %v3683_v44 }
 0x31c   : > { %v3690_v39 = vrot.slane %v3689_v5, 4  ;;  %v3696_v34 = vsel %vm2098_vm11, %v3609_v12, -inf  ;;  %v3704_v8 = vrot.slane %v3703_v20, 4  ;;  %v3710_v55 = vsel %vm2098_vm11, %v3610_v41, -inf }
 0x31d   : > { %v3666_v26 = vrot.slane %v3665_v40, 1  ;;  %v3672_v32 = vmax.f32 %v3670_v29, %v3671_v4  ;;  %v3679_v45 = vmax.f32 %v3677_v23, %v3678_v14  ;;  %v3685_v1 = vrot.slane %v3684_v53, 2 }
 0x31e   : > { %v3691_v60 = vmax.f32 %v3689_v5, %v3690_v39  ;;  %v3697_v46 = vrot.slane %v3696_v34, 4  ;;  %v3705_v7 = vmax.f32 %v3703_v20, %v3704_v8  ;;  %v3711_v56 = vrot.slane %v3710_v55, 4 }
 0x31f   : > { %v3667_v36 = vmax.f32 %v3665_v40, %v3666_v26  ;;  %v3673_v47 = vrot.slane %v3672_v32, 1  ;;  %v3680_v50 = vrot.slane %v3679_v45, 1  ;;  %v3686_v43 = vmax.f32 %v3684_v53, %v3685_v1 }
 0x320   : > { %v3692_v27 = vrot.slane %v3691_v60, 2  ;;  %v3698_v21 = vmax.f32 %v3696_v34, %v3697_v46  ;;  %v3706_v22 = vrot.slane %v3705_v7, 2  ;;  %v3712_v57 = vmax.f32 %v3710_v55, %v3711_v56 }
 0x321   : > { %v3674_v63 = vmax.f32 %v3672_v32, %v3673_v47  ;;  %v3681_v61 = vmax.f32 %v3679_v45, %v3680_v50  ;;  %v3687_v19 = vrot.slane %v3686_v43, 1  ;;  %v8392_v58 = vpack.c.bf16 %v3667_v36, %v3667_v36 }
 0x322   : > { %v3177_v28 = vadd.f32 %v10064_v62, %v10056_v25  ;;  %v3693_v29 = vmax.f32 %v3691_v60, %v3692_v27  ;;  %v3699_v23 = vrot.slane %v3698_v21, 2  ;;  %v3707_v44 = vmax.f32 %v3705_v7, %v3706_v22  ;;  %v3433_v7 = vpop.f32.mrf.mxu0 }
 0x323   : > { %v3688_v12 = vmax.f32 %v3686_v43, %v3687_v19  ;;  %v8393_v41 = vpack.c.bf16 %v3674_v63, %v3674_v63  ;;  %v8394_v5 = vpack.c.bf16 %v3681_v61, %v3681_v61  ;;  %v3713_v20 = vrot.slane %v3712_v57, 2  ;;  %v3486_v63 = vpop.f32.mrf.mxu1 }
 0x324   : > { %v3843_v40 = vunpack.c.l.b16 %v8392_v58  ;;  %v3694_v4 = vrot.slane %v3693_v29, 1  ;;  %v3700_v14 = vmax.f32 %v3698_v21, %v3699_v23  ;;  %v3708_v53 = vrot.slane %v3707_v44, 1 }
 0x325   : > { %v8395_v39 = vpack.c.bf16 %v3688_v12, %v3688_v12  ;;  %v3844_v34 = vunpack.c.l.b16 %v8393_v41  ;;  %v3845_v8 = vunpack.c.l.b16 %v8394_v5  ;;  %v3571_v55 = vmax.f32 %v3563_v11, %v3567_v51 }
 0x326   : > { %v3126_v26 = vadd.f32 %v10069_v30, %v10058_v59  ;;  %v3695_v32 = vmax.f32 %v3693_v29, %v3694_v4  ;;  %v3701_v25 = vrot.slane %v3700_v14, 1  ;;  %v3709_v62 = vmax.f32 %v3707_v44, %v3708_v53 }
 0x327   : > { %v3846_v45 = vunpack.c.l.b16 %v8395_v39  ;;  %v3859_v1 = vsel %vm2489_vm12, %v3844_v34, %v3843_v40  ;;  %v3611_v60 = vcombine.high %v3571_v55, %v3571_v55  ;;  %v3618_v46 = vrot.slane %v3571_v55, %v9796_v15  ;;  %v3435_v39 = vpop.f32.mrf.mxu0  ;;  %v3488_v34 = vpop.f32.mrf.mxu1 }
 0x328   : > { %v3860_v56 = vsel %vm2491_vm13, %v3845_v8, %v3859_v1  ;;  %v3702_v36 = vmax.f32 %v3700_v14, %v3701_v25  ;;  %v3714_v47 = vmax.f32 %v3712_v57, %v3713_v20  ;;  %v8396_v50 = vpack.c.bf16 %v3695_v32, %v3695_v32 }
 0x329   : > { %v8398_v43 = vpack.c.bf16 %v3709_v62, %v3709_v62  ;;  %v3861_v11 = vsel %vm2493_vm14, %v3846_v45, %v3860_v56  ;;  %v3625_v59 = vrot.slane %v3611_v60, %v9796_v15  ;;  %v3626_v30 = vcombine.high %v3618_v46, %v3618_v46 }
 0x32a   : > { %v8397_v51 = vpack.c.bf16 %v3702_v36, %v3702_v36  ;;  %v3847_v27 = vunpack.c.l.b16 %v8396_v50  ;;  %v3717_v21 = vsel %vm2098_vm11, %v3618_v46, -inf  ;;  %v3503_v22 = vadd.f32 %v3433_v7, %v10110_v6 }
 0x32b   : > { %v3849_v61 = vunpack.c.l.b16 %v8398_v43  ;;  %v3627_v19 = vcombine.high %v3625_v59, %v3625_v59  ;;  %v3718_v58 = vrot.slane %v3717_v21, 4  ;;  %v3724_v29 = vsel %vm2098_vm11, %v3626_v30, -inf }
 0x32c   : > { %v3179_v57 = vadd.f32 %v10071_v35, %v10060_v17  ;;  %v3848_v23 = vunpack.c.l.b16 %v8397_v51  ;;  %v3862_v44 = vsel %vm2495_vm15, %v3847_v27, %v3861_v11  ;;  %v3725_v12 = vrot.slane %v3724_v29, 4  ;;  %v3878_v17 = vld [vmem:[#allocation4] sm:$0xf] }
 0x32d   : > { %v3715_v41 = vrot.slane %v3714_v47, 1  ;;  %v3719_v5 = vmax.f32 %v3717_v21, %v3718_v58  ;;  %v3731_v20 = vsel %vm2098_vm11, %v3625_v59, -inf  ;;  %v3738_v40 = vsel %vm2098_vm11, %v3627_v19, -inf }
 0x32e   : > { %v3863_v6 = vsel %vm2497_vm0, %v3848_v23, %v3862_v44  ;;  %v3726_v4 = vmax.f32 %v3724_v29, %v3725_v12  ;;  %v3732_v14 = vrot.slane %v3731_v20, 4  ;;  %v3739_v53 = vrot.slane %v3738_v40, 4 }
 0x32f   : > { %v3864_v8 = vsel %vm2499_vm1, %v3849_v61, %v3863_v6  ;;  %v3720_v35 = vrot.slane %v3719_v5, 2  ;;  %v3541_v55 = vadd.f32 %v10076_v37, %v3503_v22  ;;  %v3505_v32 = vadd.f32 %v3486_v63, %v3177_v28 }
 0x330   : > { %v3872_v25 = vpack.c.b16 %v3864_v8, %v3864_v8  ;;  %v3727_v62 = vrot.slane %v3726_v4, 2  ;;  %v3733_v45 = vmax.f32 %v3731_v20, %v3732_v14  ;;  %v3740_v1 = vmax.f32 %v3738_v40, %v3739_v53 }
 0x331   : > { %v3721_v60 = vmax.f32 %v3719_v5, %v3720_v35  ;;  %v3543_v46 = vadd.f32 %v10079_v18, %v3505_v32  ;;  %v3504_v7 = vadd.f32 %v3435_v39, %v3126_v26  ;;  %v3506_v56 = vadd.f32 %v3488_v34, %v3179_v57 }
 0x332   : > { %v3879_v36 = vsel %vm9523_vm7, %v3872_v25, %v3878_v17  ;;  %v3728_v50 = vmax.f32 %v3726_v4, %v3727_v62  ;;  %v3734_v43 = vrot.slane %v3733_v45, 2  ;;  %v3741_v11 = vrot.slane %v3740_v1, 2 }
 0x333   : > { %3880 = vst [vmem:[#allocation4] sm:$0xf] %v3879_v36  ;;  %v3722_v59 = vrot.slane %v3721_v60, 1  ;;  %v3542_v37 = vadd.f32 %v10082_v42, %v3504_v7  ;;  %v3544_v28 = vadd.f32 %v10085_v9, %v3506_v56  ;;  %v3716_v30 = vmax.f32 %v3714_v47, %v3715_v41 }
 0x334   : > { %v3729_v51 = vrot.slane %v3728_v50, 1  ;;  %v3735_v27 = vmax.f32 %v3733_v45, %v3734_v43  ;;  %v3557_v21 = vmax.f32 %v3541_v55, 0.0  ;;  %v3559_v18 = vmax.f32 %v3543_v46, 0.0 }
 0x335   : > { %v3723_v22 = vmax.f32 %v3721_v60, %v3722_v59  ;;  %v3558_v26 = vmax.f32 %v3542_v37, 0.0  ;;  %v3560_v63 = vmax.f32 %v3544_v28, 0.0  ;;  %v3742_v13 = vmax.f32 %v3740_v1, %v3741_v11 }
 0x336   : > { %v3736_v61 = vrot.slane %v3735_v27, 1  ;;  %v3730_v19 = vmax.f32 %v3728_v50, %v3729_v51  ;;  %v8399_v57 = vpack.c.bf16 %v3716_v30, %v3716_v30 }
 0x337   : > { %v3564_v58 = vmax.f32 %v3557_v21, %v3558_v26  ;;  %v3568_v29 = vmax.f32 %v3559_v18, %v3560_v63  ;;  %v8400_v23 = vpack.c.bf16 %v3723_v22, %v3723_v22  ;;  %v3743_v42 = vrot.slane %v3742_v13, 1 }
 0x338   : > { %v3737_v12 = vmax.f32 %v3735_v27, %v3736_v61  ;;  %v8401_v5 = vpack.c.bf16 %v3730_v19, %v3730_v19  ;;  %v3850_v41 = vunpack.c.l.b16 %v8399_v57 }
 0x339   : > { %v3572_v44 = vmax.f32 %v3564_v58, %v3568_v29  ;;  %v3851_v20 = vunpack.c.l.b16 %v8400_v23  ;;  %v3744_v14 = vmax.f32 %v3742_v13, %v3743_v42 }
 0x33a   : > { %v8402_v53 = vpack.c.bf16 %v3737_v12, %v3737_v12  ;;  %v3852_v34 = vunpack.c.l.b16 %v8401_v5  ;;  %v3882_v5 = vld [vmem:[#allocation4 + $0x8] sm:$0x1] }
 0x33b   : > { %v3628_v9 = vcombine.high %v3572_v44, %v3572_v44  ;;  %v3635_v47 = vrot.slane %v3572_v44, %v9796_v15  ;;  %v3865_v55 = vsel %vm2501_vm3, %v3851_v20, %v3850_v41  ;;  %v8403_v56 = vpack.c.bf16 %v3744_v14, %v3744_v14 }
 0x33c   : > { %v3853_v36 = vunpack.c.l.b16 %v8402_v53  ;;  %v3866_v50 = vsel %vm2489_vm12, %v3852_v34, %v3865_v55 }
 0x33d   : > { %v3642_v40 = vrot.slane %v3628_v9, %v9796_v15  ;;  %v3643_v6 = vcombine.high %v3635_v47, %v3635_v47  ;;  %v3745_v4 = vsel %vm2098_vm11, %v3635_v47, -inf  ;;  %v3854_v21 = vunpack.c.l.b16 %v8403_v56 }
 0x33e   : > { %v3746_v39 = vrot.slane %v3745_v4, 4  ;;  %v3867_v22 = vsel %vm2491_vm13, %v3853_v36, %v3866_v50 }
 0x33f   : > { %v3644_v8 = vcombine.high %v3642_v40, %v3642_v40  ;;  %v3752_v17 = vsel %vm2098_vm11, %v3643_v6, -inf  ;;  %v3759_v35 = vsel %vm2098_vm11, %v3642_v40, -inf  ;;  %v3868_v57 = vsel %vm2493_vm14, %v3854_v21, %v3867_v22 }
 0x340   : > { %v3747_v32 = vmax.f32 %v3745_v4, %v3746_v39  ;;  %v3753_v25 = vrot.slane %v3752_v17, 4  ;;  %v3760_v62 = vrot.slane %v3759_v35, 4  ;;  %v3885_v39 = vld [vmem:[#allocation4] sm:$0xf] }
 0x341   : > { %v3766_v45 = vsel %vm2098_vm11, %v3644_v8, -inf }
 0x342   : > { %v3748_v1 = vrot.slane %v3747_v32, 2  ;;  %v3754_v60 = vmax.f32 %v3752_v17, %v3753_v25  ;;  %v3761_v46 = vmax.f32 %v3759_v35, %v3760_v62  ;;  %v3767_v7 = vrot.slane %v3766_v45, 4  ;;  %v5023_v17 = vld [vmem:[#allocation4] sm:$0xe] }
 0x343   : > { %v4003_v25 = vld [vmem:[#allocation9 + $0x390] sm:$0xff] }
 0x344   : > { %v3749_v43 = vmax.f32 %v3747_v32, %v3748_v1  ;;  %v3755_v11 = vrot.slane %v3754_v60, 2  ;;  %v3762_v59 = vrot.slane %v3761_v46, 2  ;;  %v3768_v37 = vmax.f32 %v3766_v45, %v3767_v7  ;;  %v4008_v7 = vld [vmem:[#allocation9 + $0x3b8] sm:$0xff] }
 0x346   : > { %v3750_v28 = vrot.slane %v3749_v43, 1  ;;  %v3756_v30 = vmax.f32 %v3754_v60, %v3755_v11  ;;  %v3763_v51 = vmax.f32 %v3761_v46, %v3762_v59  ;;  %v3769_v27 = vrot.slane %v3768_v37, 2  ;;  %v4007_v60 = vld [vmem:[#allocation9 + $0x3b0] sm:$0xff]  ;;  %v4004_v46 = vld [vmem:[#allocation9 + $0x398] sm:$0xff] }
 0x347   : > { %v8062_v11 = vcombine.high %v4004_v46, %v4008_v7  ;;  %v3995_v59 = vld [vmem:[#allocation9 + $0x350] sm:$0xff]  ;;  %v8061_v21 = vcombine.low %v4004_v46, %v4008_v7  ;;  %v3943_v46 = vld [vmem:[#allocation9 + $0x1c0] sm:$0xff] }
 0x348   : > { %v3751_v18 = vmax.f32 %v3749_v43, %v3750_v28  ;;  %v3757_v26 = vrot.slane %v3756_v30, 1  ;;  %v3764_v63 = vrot.slane %v3763_v51, 1  ;;  %v3770_v61 = vmax.f32 %v3768_v37, %v3769_v27  ;;  %v3999_v28 = vld [vmem:[#allocation9 + $0x370] sm:$0xff]  ;;  %v3947_v7 = vld [vmem:[#allocation9 + $0x1e0] sm:$0xff] }
 0x349   : > { %v8060_v43 = vcombine.high %v4003_v25, %v4007_v60  ;;  %v8059_v27 = vcombine.low %v4003_v25, %v4007_v60  ;;  %v8052_v22 = vcombine.high %v3995_v59, %v3999_v28  ;;  %v8051_v3 = vcombine.low %v3995_v59, %v3999_v28  ;;  %v3956_v25 = vld [vmem:[#allocation9 + $0x218] sm:$0xff] }
 0x34a   : > { %v3758_v13 = vmax.f32 %v3756_v30, %v3757_v26  ;;  %v3765_v19 = vmax.f32 %v3763_v51, %v3764_v63  ;;  %v3771_v58 = vrot.slane %v3770_v61, 1  ;;  %v8404_v29 = vpack.c.bf16 %v3751_v18, %v3751_v18  ;;  %v3996_v30 = vld [vmem:[#allocation9 + $0x358] sm:$0xff]  ;;  %v3987_v26 = vld [vmem:[#allocation9 + $0x310] sm:$0xff] }
 0x34b   : > { %v4000_v51 = vld [vmem:[#allocation9 + $0x378] sm:$0xff]  ;;  %v3991_v63 = vld [vmem:[#allocation9 + $0x330] sm:$0xff]  ;;  %v8128_v59 = vcombine.high %v3943_v46, %v3947_v7 }
 0x34c   : > { %v3772_v23 = vmax.f32 %v3770_v61, %v3771_v58  ;;  %v8405_v44 = vpack.c.bf16 %v3758_v13, %v3758_v13  ;;  %v8406_v12 = vpack.c.bf16 %v3765_v19, %v3765_v19  ;;  %v3855_v42 = vunpack.c.l.b16 %v8404_v29  ;;  %v3988_v61 = vld [vmem:[#allocation9 + $0x318] sm:$0xff] }
 0x34d   : > { %v8054_v18 = vcombine.high %v3996_v30, %v4000_v51  ;;  %v3992_v13 = vld [vmem:[#allocation9 + $0x338] sm:$0xff]  ;;  %v8053_v49 = vcombine.low %v3996_v30, %v4000_v51  ;;  %v8044_v10 = vcombine.high %v3987_v26, %v3991_v63  ;;  %v8043_v29 = vcombine.low %v3987_v26, %v3991_v63  ;;  %v3935_v30 = vld [vmem:[#allocation9 + $0x180] sm:$0xff] }
 0x34e   : > { %v3856_v9 = vunpack.c.l.b16 %v8405_v44  ;;  %v3857_v47 = vunpack.c.l.b16 %v8406_v12  ;;  %v3869_v41 = vsel %vm2495_vm15, %v3855_v42, %v3868_v57  ;;  %v8408_v20 = vpack.c.bf16 %v3772_v23, %v3772_v23  ;;  %v3980_v19 = vld [vmem:[#allocation9 + $0x2d8] sm:$0xff]  ;;  %v3971_v12 = vld [vmem:[#allocation9 + $0x290] sm:$0xff]  ;;  %v3939_v51 = vld [vmem:[#allocation9 + $0x1a0] sm:$0xff] }
 0x34f   : > { %v3984_v58 = vld [vmem:[#allocation9 + $0x2f8] sm:$0xff]  ;;  %v8045_v57 = vcombine.low %v3988_v61, %v3992_v13  ;;  %v3975_v42 = vld [vmem:[#allocation9 + $0x2b0] sm:$0xff]  ;;  %v8120_v26 = vcombine.high %v3935_v30, %v3939_v51 }
 0x350   : > { %v3870_v40 = vsel %vm2497_vm0, %v3856_v9, %v3869_v41  ;;  %v3883_v6 = vsel %vm9505_vm2, %v8408_v20, %v3882_v5  ;;  %v8038_v44 = vcombine.high %v3980_v19, %v3984_v58  ;;  %v3972_v5 = vld [vmem:[#allocation9 + $0x298] sm:$0xff]  ;;  %v8037_v41 = vcombine.low %v3980_v19, %v3984_v58  ;;  %v3919_v19 = vld [vmem:[#allocation9 + $0x100] sm:$0xff] }
 0x351   : > { %v3871_v4 = vsel %vm2499_vm1, %v3857_v47, %v3870_v40  ;;  %3884 = vst [vmem:[#allocation4 + $0x8] sm:$0x1] %v3883_v6  ;;  %v3976_v9 = vld [vmem:[#allocation9 + $0x2b8] sm:$0xff]  ;;  %v8028_v20 = vcombine.high %v3971_v12, %v3975_v42  ;;  %v3963_v6 = vld [vmem:[#allocation9 + $0x250] sm:$0xff]  ;;  %v3923_v58 = vld [vmem:[#allocation9 + $0x120] sm:$0xff]  ;;  %vm9325_vm2 = vmmov 0  }
 0x352   : > { %v3873_v14 = vpack.c.b16 %v3871_v4, %v3871_v4  ;;  %v8030_v40 = vcombine.high %v3972_v5, %v3976_v9  ;;  %v3967_v4 = vld [vmem:[#allocation9 + $0x270] sm:$0xff] }
 0x354   : > { %3881 = vst [vmem:[#allocation4 + $0x4] sm:$0xf] %v3873_v14  ;;  %v3964_v14 = vld [vmem:[#allocation9 + $0x258] sm:$0xff] }
 0x358   : > { %v9030_v53 = vld [vmem:[#allocation4 + $0x8] ss:$0 sps:$4 sm:$0x11]  }
 0x359   : > { %v4033_v32 = vshll.u32 %v9030_v53, 16  ;;  %v5093_v45 = vrot.slane %v9030_v53, 1  ;;  %v3968_v53 = vld [vmem:[#allocation9 + $0x278] sm:$0xff] }
 0x35b   : > { %v3886_v34 = vld [vmem:[#allocation4 + $0x4] sm:$0xf]  ;;  %v4035_v50 = vrot.slane %v4033_v32, 1  ;;  %v3959_v32 = vld [vmem:[#allocation9 + $0x230] sm:$0xff] }
 0x35c   : > { %v10165_v8 = vcombine.low %v3885_v39, %v3886_v34  ;;  %v8135_v35 = vcombine.low %v5023_v17, %v3886_v34  ;;  %v8027_v39 = vcombine.low %v3971_v12, %v3975_v42  ;;  %v8029_v34 = vcombine.low %v3972_v5, %v3976_v9  ;;  %v3911_v42 = vld [vmem:[#allocation9 + $0xc0] sm:$0xff]  ;;  %v3912_v9 = vld [vmem:[#allocation9 + $0xc8] sm:$0xff] }
 0x35d   : > { %v8020_v17 = vcombine.high %v3963_v6, %v3967_v4  ;;  %v3915_v5 = vld [vmem:[#allocation9 + $0xe0] sm:$0xff] }
 0x35e   : > { %v4028_v55 = vshll.u32 %v10165_v8, 16  ;;  %v5092_v62 = vrot.slane %v8135_v35, 1  ;;  %v4026_v54 = vshrl.u32 %v10165_v8, 16  ;;  %v8022_v35 = vcombine.high %v3964_v14, %v3968_v53 }
 0x360   : > { %v4030_v1 = vrot.slane %v4028_v55, 1  ;;  %v10170_v56 = vsel %vm1460_vm10, %v5092_v62, %v5093_v45  ;;  %v3955_v55 = vld [vmem:[#allocation9 + $0x210] sm:$0xff]  ;;  %v3960_v62 = vld [vmem:[#allocation9 + $0x238] sm:$0xff]  ;;  %v8019_v45 = vcombine.low %v3963_v6, %v3967_v4  ;;  %v3903_v4 = vld [vmem:[#allocation9 + $0x80] sm:$0xff] }
 0x361   : > { %v8014_v60 = vcombine.high %v3956_v25, %v3960_v62 }
 0x362   : > { %v4031_v36 = vor.u32 %v4030_v1, %v4026_v54  ;;  %v8021_v54 = vcombine.low %v3964_v14, %v3968_v53  ;;  %v8012_v1 = vcombine.high %v3955_v55, %v3959_v32  ;;  %v3907_v14 = vld [vmem:[#allocation9 + $0xa0] sm:$0xff]  ;;  %v3904_v53 = vld [vmem:[#allocation9 + $0x88] sm:$0xff] }
 0x364   : > { %v10173_v37 = vsel %vm766_vm9, %v4031_v36, %v4035_v50  ;;  %v3944_v36 = vld [vmem:[#allocation9 + $0x1c8] sm:$0xff] }
 0x365   : > { %4391 = vmatmul.mubr.bf16.vlgmr.msra.gmra.mxu0 %v10173_v37  ;;  %4434 = vmatmul.mubr.bf16.vlgmr.msra.gmra.mxu1 %v10173_v37  ;;  %v3948_v50 = vld [vmem:[#allocation9 + $0x1e8] sm:$0xff] }
 0x366   : > { %4445 = vmatpush1.bf16.msra.mxu0 %v8067_v0  ;;  %4488 = vmatpush1.bf16.msra.mxu1 %v8069_v52  ;;  %v8046_v0 = vcombine.high %v3988_v61, %v3992_v13  ;;  %v3983_v52 = vld [vmem:[#allocation9 + $0x2f0] sm:$0xff]  ;;  %v8130_v28 = vcombine.high %v3944_v36, %v3948_v50  ;;  %v3927_v61 = vld [vmem:[#allocation9 + $0x140] sm:$0xff] }
 0x367   : > { %4446 = vmatprep.subr.bf16.mxu0 %v8060_v43  ;;  %4489 = vmatprep.subr.bf16.mxu1 %v8062_v11  ;;  %v8036_v23 = vcombine.high %v3979_v31, %v3983_v52  ;;  %v8035_v47 = vcombine.low %v3979_v31, %v3983_v52  ;;  %v8011_v43 = vcombine.low %v3955_v55, %v3959_v32  ;;  %v3931_v13 = vld [vmem:[#allocation9 + $0x160] sm:$0xff] }
 0x368   : > { %4476 = vmatprep.mubr.bf16.mxu0 %v10512_v24  ;;  %4519 = vmatprep.mubr.bf16.mxu1 %v10512_v24  ;;  %v8013_v11 = vcombine.low %v3956_v25, %v3960_v62  ;;  %v8112_v31 = vcombine.high %v3927_v61, %v3931_v13  ;;  %v3895_v32 = vld [vmem:[#allocation9 + $0x40] sm:$0xff]  ;;  %v3896_v62 = vld [vmem:[#allocation9 + $0x48] sm:$0xff] }
 0x369   : > { %v3899_v25 = vld [vmem:[#allocation9 + $0x60] sm:$0xff] }
 0x36a   : > { %4447 = vmatpush1.bf16.msra.mxu0 %v8059_v27  ;;  %4490 = vmatpush1.bf16.msra.mxu1 %v8061_v21  ;;  %v3936_v27 = vld [vmem:[#allocation9 + $0x188] sm:$0xff] }
 0x36b   : > { %4448 = vmatprep.subr.bf16.mxu0 %v8052_v22  ;;  %4491 = vmatprep.subr.bf16.mxu1 %v8054_v18  ;;  %v3940_v21 = vld [vmem:[#allocation9 + $0x1a8] sm:$0xff]  ;;  %v8127_v22 = vcombine.low %v3943_v46, %v3947_v7  ;;  %v8129_v18 = vcombine.low %v3944_v36, %v3948_v50  ;;  %v3887_v7 = vld [vmem:[#allocation9] sm:$0xff] }
 0x36c   : > { %v8122_v63 = vcombine.high %v3936_v27, %v3940_v21  ;;  %v3891_v36 = vld [vmem:[#allocation9 + $0x20] sm:$0xff]  ;;  %v3888_v50 = vld [vmem:[#allocation9 + $0x8] sm:$0xff] }
 0x36e   : > { %4449 = vmatpush1.bf16.msra.mxu0 %v8051_v3  ;;  %4492 = vmatpush1.bf16.msra.mxu1 %v8053_v49  ;;  %v3928_v3 = vld [vmem:[#allocation9 + $0x148] sm:$0xff] }
 0x36f   : > { %4450 = vmatprep.subr.bf16.mxu0 %v8044_v10  ;;  %4493 = vmatprep.subr.bf16.mxu1 %v8046_v0  ;;  %v3932_v49 = vld [vmem:[#allocation9 + $0x168] sm:$0xff]  ;;  %v8119_v10 = vcombine.low %v3935_v30, %v3939_v51  ;;  %v8121_v0 = vcombine.low %v3936_v27, %v3940_v21  ;;  %v3945_v51 = vld [vmem:[#allocation9 + $0x1d0] sm:$0xff]  ;;  %v3946_v21 = vld [vmem:[#allocation9 + $0x1d8] sm:$0xff] }
 0x370   : > { %v8114_v52 = vcombine.high %v3928_v3, %v3932_v49  ;;  %v3949_v27 = vld [vmem:[#allocation9 + $0x1f0] sm:$0xff] }
 0x372   : > { %4451 = vmatpush1.bf16.msra.mxu0 %v8043_v29  ;;  %4494 = vmatpush1.bf16.msra.mxu1 %v8045_v57  ;;  %v3920_v29 = vld [vmem:[#allocation9 + $0x108] sm:$0xff] }
 0x373   : > { %4452 = vmatprep.subr.bf16.mxu0 %v8036_v23  ;;  %4495 = vmatprep.subr.bf16.mxu1 %v8038_v44  ;;  %v3924_v57 = vld [vmem:[#allocation9 + $0x128] sm:$0xff]  ;;  %v8111_v23 = vcombine.low %v3927_v61, %v3931_v13  ;;  %v8104_v44 = vcombine.high %v3919_v19, %v3923_v58  ;;  %v3937_v13 = vld [vmem:[#allocation9 + $0x190] sm:$0xff] }
 0x374   : > { %v8106_v12 = vcombine.high %v3920_v29, %v3924_v57 }
 0x376   : > { %4453 = vmatpush1.bf16.msra.mxu0 %v8035_v47  ;;  %4496 = vmatpush1.bf16.msra.mxu1 %v8037_v41  ;;  %v3916_v47 = vld [vmem:[#allocation9 + $0xe8] sm:$0xff]  ;;  %v8103_v41 = vcombine.low %v3919_v19, %v3923_v58  ;;  %v3929_v58 = vld [vmem:[#allocation9 + $0x150] sm:$0xff] }
 0x377   : > { %4454 = vmatprep.subr.bf16.mxu0 %v8028_v20  ;;  %4497 = vmatprep.subr.bf16.mxu1 %v8030_v40  ;;  %v8105_v20 = vcombine.low %v3920_v29, %v3924_v57  ;;  %v8096_v40 = vcombine.high %v3911_v42, %v3915_v5  ;;  %v8098_v6 = vcombine.high %v3912_v9, %v3916_v47  ;;  %v3933_v29 = vld [vmem:[#allocation9 + $0x170] sm:$0xff]  ;;  %v3930_v57 = vld [vmem:[#allocation9 + $0x158] sm:$0xff] }
 0x37a   : > { %4455 = vmatpush1.bf16.msra.mxu0 %v8027_v39  ;;  %4498 = vmatpush1.bf16.msra.mxu1 %v8029_v34  ;;  %v3908_v39 = vld [vmem:[#allocation9 + $0xa8] sm:$0xff]  ;;  %v8095_v34 = vcombine.low %v3911_v42, %v3915_v5  ;;  %v3921_v5 = vld [vmem:[#allocation9 + $0x110] sm:$0xff] }
 0x37b   : > { %4456 = vmatprep.subr.bf16.mxu0 %v8020_v17  ;;  %4499 = vmatprep.subr.bf16.mxu1 %v8022_v35  ;;  %v8097_v17 = vcombine.low %v3912_v9, %v3916_v47  ;;  %v8088_v35 = vcombine.high %v3903_v4, %v3907_v14  ;;  %v8090_v55 = vcombine.high %v3904_v53, %v3908_v39  ;;  %v3925_v9 = vld [vmem:[#allocation9 + $0x130] sm:$0xff]  ;;  %v3922_v47 = vld [vmem:[#allocation9 + $0x118] sm:$0xff] }
 0x37e   : > { %4457 = vmatpush1.bf16.msra.mxu0 %v8019_v45  ;;  %4500 = vmatpush1.bf16.msra.mxu1 %v8021_v54  ;;  %v3900_v45 = vld [vmem:[#allocation9 + $0x68] sm:$0xff]  ;;  %v8087_v54 = vcombine.low %v3903_v4, %v3907_v14  ;;  %v3913_v14 = vld [vmem:[#allocation9 + $0xd0] sm:$0xff] }
 0x37f   : > { %4458 = vmatprep.subr.bf16.mxu0 %v8012_v1  ;;  %4501 = vmatprep.subr.bf16.mxu1 %v8014_v60  ;;  %v8089_v1 = vcombine.low %v3904_v53, %v3908_v39  ;;  %v8080_v60 = vcombine.high %v3895_v32, %v3899_v25  ;;  %v8082_v46 = vcombine.high %v3896_v62, %v3900_v45  ;;  %v3917_v53 = vld [vmem:[#allocation9 + $0xf0] sm:$0xff]  ;;  %v3914_v39 = vld [vmem:[#allocation9 + $0xd8] sm:$0xff] }
 0x382   : > { %4459 = vmatpush1.bf16.msra.mxu0 %v8011_v43  ;;  %4502 = vmatpush1.bf16.msra.mxu1 %v8013_v11  ;;  %v3892_v43 = vld [vmem:[#allocation9 + $0x28] sm:$0xff]  ;;  %v8079_v11 = vcombine.low %v3895_v32, %v3899_v25  ;;  %v3905_v25 = vld [vmem:[#allocation9 + $0x90] sm:$0xff] }
 0x383   : > { %4851 = vmatprep.subr.bf16.mxu0 %v8128_v59  ;;  %4894 = vmatprep.subr.bf16.mxu1 %v8130_v28  ;;  %v8081_v59 = vcombine.low %v3896_v62, %v3900_v45  ;;  %v8072_v28 = vcombine.high %v3887_v7, %v3891_v36  ;;  %v8074_v30 = vcombine.high %v3888_v50, %v3892_v43  ;;  %v3909_v62 = vld [vmem:[#allocation9 + $0xb0] sm:$0xff]  ;;  %v3906_v45 = vld [vmem:[#allocation9 + $0x98] sm:$0xff] }
 0x385   : > { %4477 = vmatmul.mubr.bf16.vlgmr.msra.gmra.mxu0 %v10173_v37  ;;  %4520 = vmatmul.mubr.bf16.vlgmr.msra.gmra.mxu1 %v10173_v37  ;;  %v8113_v37 = vcombine.low %v3928_v3, %v3932_v49  ;;  %v3941_v3 = vld [vmem:[#allocation9 + $0x1b0] sm:$0xff]  ;;  %v3938_v49 = vld [vmem:[#allocation9 + $0x198] sm:$0xff] }
 0x386   : > { %4852 = vmatpush1.bf16.msra.mxu0 %v8127_v22  ;;  %4895 = vmatpush1.bf16.msra.mxu1 %v8129_v18  ;;  %v3950_v22 = vld [vmem:[#allocation9 + $0x1f8] sm:$0xff]  ;;  %v8071_v18 = vcombine.low %v3887_v7, %v3891_v36  ;;  %v3897_v36 = vld [vmem:[#allocation9 + $0x50] sm:$0xff] }
 0x387   : > { %4853 = vmatprep.subr.bf16.mxu0 %v8120_v26  ;;  %4896 = vmatprep.subr.bf16.mxu1 %v8122_v63  ;;  %v8073_v26 = vcombine.low %v3888_v50, %v3892_v43  ;;  %v8132_v63 = vcombine.high %v3945_v51, %v3949_v27  ;;  %v8134_v61 = vcombine.high %v3946_v21, %v3950_v22  ;;  %v3901_v50 = vld [vmem:[#allocation9 + $0x70] sm:$0xff]  ;;  %v3898_v43 = vld [vmem:[#allocation9 + $0x58] sm:$0xff] }
 0x388   : > { %4883 = vmatprep.mubr.bf16.mxu0 %v10512_v24  ;;  %4926 = vmatprep.mubr.bf16.mxu1 %v10512_v24 }
 0x38a   : > { %4854 = vmatpush1.bf16.msra.mxu0 %v8119_v10  ;;  %4897 = vmatpush1.bf16.msra.mxu1 %v8121_v0  ;;  %v3942_v10 = vld [vmem:[#allocation9 + $0x1b8] sm:$0xff]  ;;  %v8131_v0 = vcombine.low %v3945_v51, %v3949_v27  ;;  %v3889_v27 = vld [vmem:[#allocation9 + $0x10] sm:$0xff] }
 0x38b   : > { %4855 = vmatprep.subr.bf16.mxu0 %v8112_v31  ;;  %4898 = vmatprep.subr.bf16.mxu1 %v8114_v52  ;;  %v8133_v31 = vcombine.low %v3946_v21, %v3950_v22  ;;  %v8124_v52 = vcombine.high %v3937_v13, %v3941_v3  ;;  %v8126_v19 = vcombine.high %v3938_v49, %v3942_v10  ;;  %v3893_v21 = vld [vmem:[#allocation9 + $0x30] sm:$0xff]  ;;  %v3890_v22 = vld [vmem:[#allocation9 + $0x18] sm:$0xff] }
 0x38e   : > { %4856 = vmatpush1.bf16.msra.mxu0 %v8111_v23  ;;  %4899 = vmatpush1.bf16.msra.mxu1 %v8113_v37  ;;  %v3934_v23 = vld [vmem:[#allocation9 + $0x178] sm:$0xff]  ;;  %v8123_v37 = vcombine.low %v3937_v13, %v3941_v3  ;;  %v5081_v3 = vld [vmem:[#allocation9 + $0x5c0] sm:$0xff] }
 0x38f   : > { %4857 = vmatprep.subr.bf16.mxu0 %v8104_v44  ;;  %4900 = vmatprep.subr.bf16.mxu1 %v8106_v12  ;;  %v8125_v44 = vcombine.low %v3938_v49, %v3942_v10  ;;  %v8116_v12 = vcombine.high %v3929_v58, %v3933_v29  ;;  %v8118_v42 = vcombine.high %v3930_v57, %v3934_v23  ;;  %v5085_v49 = vld [vmem:[#allocation9 + $0x5e0] sm:$0xff]  ;;  %v5082_v10 = vld [vmem:[#allocation9 + $0x5c8] sm:$0xff] }
 0x392   : > { %4858 = vmatpush1.bf16.msra.mxu0 %v8103_v41  ;;  %4901 = vmatpush1.bf16.msra.mxu1 %v8105_v20  ;;  %v3926_v41 = vld [vmem:[#allocation9 + $0x138] sm:$0xff]  ;;  %v8115_v20 = vcombine.low %v3929_v58, %v3933_v29  ;;  %v5073_v29 = vld [vmem:[#allocation9 + $0x580] sm:$0xff] }
 0x393   : > { %4859 = vmatprep.subr.bf16.mxu0 %v8096_v40  ;;  %4902 = vmatprep.subr.bf16.mxu1 %v8098_v6  ;;  %v8117_v40 = vcombine.low %v3930_v57, %v3934_v23  ;;  %v8108_v6 = vcombine.high %v3921_v5, %v3925_v9  ;;  %v8110_v4 = vcombine.high %v3922_v47, %v3926_v41  ;;  %v5077_v57 = vld [vmem:[#allocation9 + $0x5a0] sm:$0xff]  ;;  %v5074_v23 = vld [vmem:[#allocation9 + $0x588] sm:$0xff] }
 0x396   : > { %4860 = vmatpush1.bf16.msra.mxu0 %v8095_v34  ;;  %4903 = vmatpush1.bf16.msra.mxu1 %v8097_v17  ;;  %v3918_v34 = vld [vmem:[#allocation9 + $0xf8] sm:$0xff]  ;;  %v8107_v17 = vcombine.low %v3921_v5, %v3925_v9  ;;  %v5065_v9 = vld [vmem:[#allocation9 + $0x540] sm:$0xff] }
 0x397   : > { %4861 = vmatprep.subr.bf16.mxu0 %v8088_v35  ;;  %4904 = vmatprep.subr.bf16.mxu1 %v8090_v55  ;;  %v8109_v35 = vcombine.low %v3922_v47, %v3926_v41  ;;  %v8100_v55 = vcombine.high %v3913_v14, %v3917_v53  ;;  %v8102_v32 = vcombine.high %v3914_v39, %v3918_v34  ;;  %v5069_v47 = vld [vmem:[#allocation9 + $0x560] sm:$0xff]  ;;  %v5066_v41 = vld [vmem:[#allocation9 + $0x548] sm:$0xff] }
 0x39a   : > { %4862 = vmatpush1.bf16.msra.mxu0 %v8087_v54  ;;  %4905 = vmatpush1.bf16.msra.mxu1 %v8089_v1  ;;  %v3910_v54 = vld [vmem:[#allocation9 + $0xb8] sm:$0xff]  ;;  %v8099_v1 = vcombine.low %v3913_v14, %v3917_v53  ;;  %v5057_v53 = vld [vmem:[#allocation9 + $0x500] sm:$0xff] }
 0x39b   : > { %4863 = vmatprep.subr.bf16.mxu0 %v8080_v60  ;;  %4906 = vmatprep.subr.bf16.mxu1 %v8082_v46  ;;  %v8101_v60 = vcombine.low %v3914_v39, %v3918_v34  ;;  %v8092_v46 = vcombine.high %v3905_v25, %v3909_v62  ;;  %v8094_v7 = vcombine.high %v3906_v45, %v3910_v54  ;;  %v5061_v39 = vld [vmem:[#allocation9 + $0x520] sm:$0xff]  ;;  %v5058_v34 = vld [vmem:[#allocation9 + $0x508] sm:$0xff] }
 0x39e   : > { %4864 = vmatpush1.bf16.msra.mxu0 %v8079_v11  ;;  %4907 = vmatpush1.bf16.msra.mxu1 %v8081_v59  ;;  %v3902_v11 = vld [vmem:[#allocation9 + $0x78] sm:$0xff]  ;;  %v8091_v59 = vcombine.low %v3905_v25, %v3909_v62  ;;  %v5049_v25 = vld [vmem:[#allocation9 + $0x4c0] sm:$0xff] }
 0x39f   : > { %4865 = vmatprep.subr.bf16.mxu0 %v8072_v28  ;;  %4908 = vmatprep.subr.bf16.mxu1 %v8074_v30  ;;  %v8093_v28 = vcombine.low %v3906_v45, %v3910_v54  ;;  %v8084_v30 = vcombine.high %v3897_v36, %v3901_v50  ;;  %v8086_v51 = vcombine.high %v3898_v43, %v3902_v11  ;;  %v5053_v62 = vld [vmem:[#allocation9 + $0x4e0] sm:$0xff]  ;;  %v5050_v45 = vld [vmem:[#allocation9 + $0x4c8] sm:$0xff] }
 0x3a0   : > { %v5054_v54 = vld [vmem:[#allocation9 + $0x4e8] sm:$0xff] }
 0x3a2   : > { %4866 = vmatpush1.bf16.msra.mxu0 %v8071_v18  ;;  %4909 = vmatpush1.bf16.msra.mxu1 %v8073_v26  ;;  %v3894_v18 = vld [vmem:[#allocation9 + $0x38] sm:$0xff]  ;;  %v8083_v26 = vcombine.low %v3897_v36, %v3901_v50  ;;  %v5041_v36 = vld [vmem:[#allocation9 + $0x480] sm:$0xff] }
 0x3a3   : > { %4937 = vmatprep.subr.bf16.mxu0 %v8132_v63  ;;  %4980 = vmatprep.subr.bf16.mxu1 %v8134_v61  ;;  %v8085_v63 = vcombine.low %v3898_v43, %v3902_v11  ;;  %v8076_v61 = vcombine.high %v3889_v27, %v3893_v21  ;;  %v8078_v13 = vcombine.high %v3890_v22, %v3894_v18  ;;  %v5045_v50 = vld [vmem:[#allocation9 + $0x4a0] sm:$0xff]  ;;  %v5042_v43 = vld [vmem:[#allocation9 + $0x488] sm:$0xff] }
 0x3a4   : > { %v5046_v11 = vld [vmem:[#allocation9 + $0x4a8] sm:$0xff] }
 0x3a5   : > { %4884 = vmatmul.mubr.bf16.vlgmr.msra.gmra.mxu0 %v10165_v8  ;;  %4927 = vmatmul.mubr.bf16.vlgmr.msra.gmra.mxu1 %v10165_v8 }
 0x3a6   : > { %4938 = vmatpush1.bf16.msra.mxu0 %v8131_v0  ;;  %4981 = vmatpush1.bf16.msra.mxu1 %v8133_v31  ;;  %v5086_v0 = vld [vmem:[#allocation9 + $0x5e8] sm:$0xff]  ;;  %v8075_v31 = vcombine.low %v3889_v27, %v3893_v21  ;;  %v5033_v27 = vld [vmem:[#allocation9 + $0x440] sm:$0xff] }
 0x3a7   : > { %4939 = vmatprep.subr.bf16.mxu0 %v8124_v52  ;;  %4982 = vmatprep.subr.bf16.mxu1 %v8126_v19  ;;  %v8077_v52 = vcombine.low %v3890_v22, %v3894_v18  ;;  %v8193_v19 = vcombine.high %v5081_v3, %v5085_v49  ;;  %v8195_v58 = vcombine.high %v5082_v10, %v5086_v0  ;;  %v5037_v21 = vld [vmem:[#allocation9 + $0x460] sm:$0xff]  ;;  %v5034_v22 = vld [vmem:[#allocation9 + $0x448] sm:$0xff] }
 0x3a8   : > { %4969 = vmatprep.mubr.bf16.mxu0 %v10512_v24  ;;  %5012 = vmatprep.mubr.bf16.mxu1 %v10512_v24  ;;  %v5038_v18 = vld [vmem:[#allocation9 + $0x468] sm:$0xff] }
 0x3aa   : > { %4940 = vmatpush1.bf16.msra.mxu0 %v8123_v37  ;;  %4983 = vmatpush1.bf16.msra.mxu1 %v8125_v44  ;;  %v5078_v37 = vld [vmem:[#allocation9 + $0x5a8] sm:$0xff]  ;;  %v8192_v44 = vcombine.low %v5081_v3, %v5085_v49  ;;  %v5025_v3 = vld [vmem:[#allocation9 + $0x400] sm:$0xff] }
 0x3ab   : > { %4941 = vmatprep.subr.bf16.mxu0 %v8116_v12  ;;  %4984 = vmatprep.subr.bf16.mxu1 %v8118_v42  ;;  %v8194_v12 = vcombine.low %v5082_v10, %v5086_v0  ;;  %v8185_v42 = vcombine.high %v5073_v29, %v5077_v57  ;;  %v8187_v5 = vcombine.high %v5074_v23, %v5078_v37  ;;  %v5029_v49 = vld [vmem:[#allocation9 + $0x420] sm:$0xff]  ;;  %v5026_v10 = vld [vmem:[#allocation9 + $0x408] sm:$0xff] }
 0x3ac   : > { %v5030_v0 = vld [vmem:[#allocation9 + $0x428] sm:$0xff] }
 0x3ae   : > { %4942 = vmatpush1.bf16.msra.mxu0 %v8115_v20  ;;  %4985 = vmatpush1.bf16.msra.mxu1 %v8117_v40  ;;  %v5070_v20 = vld [vmem:[#allocation9 + $0x568] sm:$0xff]  ;;  %v8184_v40 = vcombine.low %v5073_v29, %v5077_v57  ;;  %v5083_v29 = vld [vmem:[#allocation9 + $0x5d0] sm:$0xff] }
 0x3af   : > { %4943 = vmatprep.subr.bf16.mxu0 %v8108_v6  ;;  %4986 = vmatprep.subr.bf16.mxu1 %v8110_v4  ;;  %v8186_v6 = vcombine.low %v5074_v23, %v5078_v37  ;;  %v8177_v4 = vcombine.high %v5065_v9, %v5069_v47  ;;  %v8179_v14 = vcombine.high %v5066_v41, %v5070_v20  ;;  %v5087_v57 = vld [vmem:[#allocation9 + $0x5f0] sm:$0xff]  ;;  %v5084_v23 = vld [vmem:[#allocation9 + $0x5d8] sm:$0xff] }
 0x3b0   : > { %v5088_v37 = vld [vmem:[#allocation9 + $0x5f8] sm:$0xff] }
 0x3b2   : > { %4944 = vmatpush1.bf16.msra.mxu0 %v8107_v17  ;;  %4987 = vmatpush1.bf16.msra.mxu1 %v8109_v35  ;;  %v5062_v17 = vld [vmem:[#allocation9 + $0x528] sm:$0xff]  ;;  %v8176_v35 = vcombine.low %v5065_v9, %v5069_v47  ;;  %v5075_v9 = vld [vmem:[#allocation9 + $0x590] sm:$0xff] }
 0x3b3   : > { %4945 = vmatprep.subr.bf16.mxu0 %v8100_v55  ;;  %4988 = vmatprep.subr.bf16.mxu1 %v8102_v32  ;;  %v8169_v55 = vcombine.high %v5057_v53, %v5061_v39  ;;  %v8171_v32 = vcombine.high %v5058_v34, %v5062_v17  ;;  %v5079_v47 = vld [vmem:[#allocation9 + $0x5b0] sm:$0xff] }
 0x3b6   : > { %4946 = vmatpush1.bf16.msra.mxu0 %v8099_v1  ;;  %4989 = vmatpush1.bf16.msra.mxu1 %v8101_v60  ;;  %v8168_v1 = vcombine.low %v5057_v53, %v5061_v39  ;;  %v8170_v60 = vcombine.low %v5058_v34, %v5062_v17  ;;  %v5067_v53 = vld [vmem:[#allocation9 + $0x550] sm:$0xff]  ;;  %v5068_v34 = vld [vmem:[#allocation9 + $0x558] sm:$0xff] }
 0x3b7   : > { %4947 = vmatprep.subr.bf16.mxu0 %v8092_v46  ;;  %4990 = vmatprep.subr.bf16.mxu1 %v8094_v7  ;;  %v8161_v46 = vcombine.high %v5049_v25, %v5053_v62  ;;  %v8163_v7 = vcombine.high %v5050_v45, %v5054_v54  ;;  %v5071_v39 = vld [vmem:[#allocation9 + $0x570] sm:$0xff]  ;;  %v5072_v17 = vld [vmem:[#allocation9 + $0x578] sm:$0xff] }
 0x3ba   : > { %4948 = vmatpush1.bf16.msra.mxu0 %v8091_v59  ;;  %4991 = vmatpush1.bf16.msra.mxu1 %v8093_v28  ;;  %v8160_v59 = vcombine.low %v5049_v25, %v5053_v62  ;;  %v8162_v28 = vcombine.low %v5050_v45, %v5054_v54  ;;  %v5059_v25 = vld [vmem:[#allocation9 + $0x510] sm:$0xff]  ;;  %v5060_v45 = vld [vmem:[#allocation9 + $0x518] sm:$0xff] }
 0x3bb   : > { %4949 = vmatprep.subr.bf16.mxu0 %v8084_v30  ;;  %4992 = vmatprep.subr.bf16.mxu1 %v8086_v51  ;;  %v8153_v30 = vcombine.high %v5041_v36, %v5045_v50  ;;  %v8155_v51 = vcombine.high %v5042_v43, %v5046_v11  ;;  %v5063_v62 = vld [vmem:[#allocation9 + $0x530] sm:$0xff]  ;;  %v5064_v54 = vld [vmem:[#allocation9 + $0x538] sm:$0xff] }
 0x3be   : > { %4950 = vmatpush1.bf16.msra.mxu0 %v8083_v26  ;;  %4993 = vmatpush1.bf16.msra.mxu1 %v8085_v63  ;;  %v8152_v26 = vcombine.low %v5041_v36, %v5045_v50  ;;  %v8154_v63 = vcombine.low %v5042_v43, %v5046_v11  ;;  %v5051_v36 = vld [vmem:[#allocation9 + $0x4d0] sm:$0xff]  ;;  %v5052_v43 = vld [vmem:[#allocation9 + $0x4d8] sm:$0xff] }
 0x3bf   : > { %4951 = vmatprep.subr.bf16.mxu0 %v8076_v61  ;;  %4994 = vmatprep.subr.bf16.mxu1 %v8078_v13  ;;  %v8145_v61 = vcombine.high %v5033_v27, %v5037_v21  ;;  %v8147_v13 = vcombine.high %v5034_v22, %v5038_v18  ;;  %v5055_v50 = vld [vmem:[#allocation9 + $0x4f0] sm:$0xff]  ;;  %v5056_v11 = vld [vmem:[#allocation9 + $0x4f8] sm:$0xff] }
 0x3c2   : > { %4952 = vmatpush1.bf16.msra.mxu0 %v8075_v31  ;;  %4995 = vmatpush1.bf16.msra.mxu1 %v8077_v52  ;;  %v8144_v31 = vcombine.low %v5033_v27, %v5037_v21  ;;  %v8146_v52 = vcombine.low %v5034_v22, %v5038_v18  ;;  %v5047_v27 = vld [vmem:[#allocation9 + $0x4b0] sm:$0xff]  ;;  %v5044_v21 = vld [vmem:[#allocation9 + $0x498] sm:$0xff]  ;;  %v8164_v18 = vcombine.low %v5051_v36, %v5055_v50 }
 0x3c3   : > { %5416 = vmatprep.subr.bf16.mxu0 %v8193_v19  ;;  %5459 = vmatprep.subr.bf16.mxu1 %v8195_v58  ;;  %v8137_v19 = vcombine.high %v5025_v3, %v5029_v49  ;;  %v8139_v58 = vcombine.high %v5026_v10, %v5030_v0  ;;  %v5048_v22 = vld [vmem:[#allocation9 + $0x4b8] sm:$0xff] }
 0x3c5   : > { %4970 = vmatmul.mubr.bf16.vlgmr.msra.gmra.mxu0 %v10165_v8  ;;  %5013 = vmatmul.mubr.bf16.vlgmr.msra.gmra.mxu1 %v10165_v8  ;;  %v8178_v8 = vcombine.low %v5066_v41, %v5070_v20  ;;  %v5076_v41 = vld [vmem:[#allocation9 + $0x598] sm:$0xff] }
 0x3c6   : > { %5417 = vmatpush1.bf16.msra.mxu0 %v8192_v44  ;;  %5460 = vmatpush1.bf16.msra.mxu1 %v8194_v12  ;;  %v8136_v44 = vcombine.low %v5025_v3, %v5029_v49  ;;  %v8138_v12 = vcombine.low %v5026_v10, %v5030_v0  ;;  %v5080_v20 = vld [vmem:[#allocation9 + $0x5b8] sm:$0xff]  ;;  %v5039_v3 = vld [vmem:[#allocation9 + $0x470] sm:$0xff] }
 0x3c7   : > { %5418 = vmatprep.subr.bf16.mxu0 %v8185_v42  ;;  %5461 = vmatprep.subr.bf16.mxu1 %v8187_v5  ;;  %v8197_v42 = vcombine.high %v5083_v29, %v5087_v57  ;;  %v8199_v5 = vcombine.high %v5084_v23, %v5088_v37  ;;  %v5036_v49 = vld [vmem:[#allocation9 + $0x458] sm:$0xff] }
 0x3c8   : > { %5448 = vmatprep.mubr.bf16.mxu0 %v10512_v24  ;;  %5491 = vmatprep.mubr.bf16.mxu1 %v10512_v24  ;;  %v5040_v10 = vld [vmem:[#allocation9 + $0x478] sm:$0xff] }
 0x3ca   : > { %5419 = vmatpush1.bf16.msra.mxu0 %v8184_v40  ;;  %5462 = vmatpush1.bf16.msra.mxu1 %v8186_v6  ;;  %v8196_v40 = vcombine.low %v5083_v29, %v5087_v57  ;;  %v8198_v6 = vcombine.low %v5084_v23, %v5088_v37  ;;  %v5031_v29 = vld [vmem:[#allocation9 + $0x430] sm:$0xff]  ;;  %v5028_v57 = vld [vmem:[#allocation9 + $0x418] sm:$0xff] }
 0x3cb   : > { %5420 = vmatprep.subr.bf16.mxu0 %v8177_v4  ;;  %5463 = vmatprep.subr.bf16.mxu1 %v8179_v14  ;;  %v8189_v4 = vcombine.high %v5075_v9, %v5079_v47  ;;  %v8191_v14 = vcombine.high %v5076_v41, %v5080_v20  ;;  %v5032_v23 = vld [vmem:[#allocation9 + $0x438] sm:$0xff] }
 0x3ce   : > { %5421 = vmatpush1.bf16.msra.mxu0 %v8176_v35  ;;  %5464 = vmatpush1.bf16.msra.mxu1 %v8178_v8  ;;  %v8188_v35 = vcombine.low %v5075_v9, %v5079_v47  ;;  %v8190_v8 = vcombine.low %v5076_v41, %v5080_v20  ;;  %v8142_v9 = vcombine.low %v5028_v57, %v5032_v23  ;;  %v9032_v47 = vld [vmem:[#allocation10 + $0x78] sm:$0xff]  }
 0x3cf   : > { %5422 = vmatprep.subr.bf16.mxu0 %v8169_v55  ;;  %5465 = vmatprep.subr.bf16.mxu1 %v8171_v32  ;;  %v8181_v55 = vcombine.high %v5067_v53, %v5071_v39  ;;  %v8183_v32 = vcombine.high %v5068_v34, %v5072_v17  ;;  %v9033_v41 = vld [vmem:[#allocation10 + $0x38] sm:$0xff]  }
 0x3d0   : > { %v9034_v20 = vld [vmem:[#allocation10 + $0xf8] sm:$0xff]  }
 0x3d2   : > { %5423 = vmatpush1.bf16.msra.mxu0 %v8168_v1  ;;  %5466 = vmatpush1.bf16.msra.mxu1 %v8170_v60  ;;  %v8180_v1 = vcombine.low %v5067_v53, %v5071_v39  ;;  %v8182_v60 = vcombine.low %v5068_v34, %v5072_v17  ;;  %v9039_v53 = vld [vmem:[#allocation10 + $0xb0] sm:$0xff]   ;;  %v9040_v39 = vld [vmem:[#allocation10 + $0x68] sm:$0xff]  }
 0x3d3   : > { %5424 = vmatprep.subr.bf16.mxu0 %v8161_v46  ;;  %5467 = vmatprep.subr.bf16.mxu1 %v8163_v7  ;;  %v8173_v46 = vcombine.high %v5059_v25, %v5063_v62  ;;  %v8175_v7 = vcombine.high %v5060_v45, %v5064_v54  ;;  %v9041_v34 = vld [vmem:[#allocation10 + $0x28] sm:$0xff]  }
 0x3d4   : > { %v9043_v17 = vld [vmem:[#allocation10 + $0xa8] sm:$0xff]  }
 0x3d6   : > { %5425 = vmatpush1.bf16.msra.mxu0 %v8160_v59  ;;  %5468 = vmatpush1.bf16.msra.mxu1 %v8162_v28  ;;  %v8172_v59 = vcombine.low %v5059_v25, %v5063_v62  ;;  %v8174_v28 = vcombine.low %v5060_v45, %v5064_v54  ;;  %v9048_v25 = vld [vmem:[#allocation10 + $0x58] sm:$0xff]  }
 0x3d7   : > { %5426 = vmatprep.subr.bf16.mxu0 %v8153_v30  ;;  %5469 = vmatprep.subr.bf16.mxu1 %v8155_v51  ;;  %v8165_v30 = vcombine.high %v5051_v36, %v5055_v50  ;;  %v5043_v51 = vld [vmem:[#allocation9 + $0x490] sm:$0xff]  ;;  %v9049_v62 = vld [vmem:[#allocation10 + $0x18] sm:$0xff]   ;;  %v9058_v50 = vld [vmem:[#allocation10 + $0xc8] sm:$0xff]  }
 0x3d8   : > { %v8156_v0 = vcombine.low %v5043_v51, %v5047_v27  ;;  %v9050_v45 = vld [vmem:[#allocation10 + $0xd8] sm:$0xff]   ;;  %v9055_v36 = vld [vmem:[#allocation10 + $0x90] sm:$0xff]  }
 0x3d9   : > { %v9051_v54 = vld [vmem:[#allocation10 + $0x98] sm:$0xff]  }
 0x3da   : > { %5427 = vmatpush1.bf16.msra.mxu0 %v8152_v26  ;;  %5470 = vmatpush1.bf16.msra.mxu1 %v8154_v63  ;;  %v8166_v26 = vcombine.low %v5052_v43, %v5056_v11  ;;  %v8157_v63 = vcombine.high %v5043_v51, %v5047_v27  ;;  %v9064_v51 = vld [vmem:[#allocation10 + $0x1f8] sm:$0xff]  }
 0x3db   : > { %5428 = vmatprep.subr.bf16.mxu0 %v8145_v61  ;;  %5471 = vmatprep.subr.bf16.mxu1 %v8147_v13  ;;  %v8159_v61 = vcombine.high %v5044_v21, %v5048_v22  ;;  %v5035_v13 = vld [vmem:[#allocation9 + $0x450] sm:$0xff]  ;;  %v9066_v27 = vld [vmem:[#allocation10 + $0x178] sm:$0xff]  }
 0x3dc   : > { %v8148_v37 = vcombine.low %v5035_v13, %v5039_v3 }
 0x3de   : > { %5429 = vmatpush1.bf16.msra.mxu0 %v8144_v31  ;;  %5472 = vmatpush1.bf16.msra.mxu1 %v8146_v52  ;;  %v8158_v31 = vcombine.low %v5044_v21, %v5048_v22  ;;  %v8149_v52 = vcombine.high %v5035_v13, %v5039_v3 }
 0x3df   : > { %5430 = vmatprep.subr.bf16.mxu0 %v8137_v19  ;;  %5473 = vmatprep.subr.bf16.mxu1 %v8139_v58  ;;  %v8151_v19 = vcombine.high %v5036_v49, %v5040_v10  ;;  %v5027_v58 = vld [vmem:[#allocation9 + $0x410] sm:$0xff] }
 0x3e2   : > { %5431 = vmatpush1.bf16.msra.mxu0 %v8136_v44  ;;  %5474 = vmatpush1.bf16.msra.mxu1 %v8138_v12  ;;  %v8150_v44 = vcombine.low %v5036_v49, %v5040_v10  ;;  %v8141_v12 = vcombine.high %v5027_v58, %v5031_v29 }
 0x3e3   : > { %5502 = vmatprep.subr.bf16.mxu0 %v8197_v42  ;;  %5545 = vmatprep.subr.bf16.mxu1 %v8199_v5  ;;  %v8143_v42 = vcombine.high %v5028_v57, %v5032_v23  ;;  %v8140_v5 = vcombine.low %v5027_v58, %v5031_v29 }
 0x3e5   : > { %5449 = vmatmul.mubr.bf16.vlgmr.msra.gmra.mxu0 %v10170_v56  ;;  %5492 = vmatmul.mubr.bf16.vlgmr.msra.gmra.mxu1 %v10170_v56 }
 0x3e6   : > { %5503 = vmatpush1.bf16.msra.mxu0 %v8196_v40  ;;  %5546 = vmatpush1.bf16.msra.mxu1 %v8198_v6  ;;  %v9035_v40 = vld [vmem:[#allocation10 + $0xb8] sm:$0xff]   ;;  %v9036_v6 = vld [vmem:[#allocation10 + $0x70] sm:$0xff]  }
 0x3e7   : > { %5504 = vmatprep.subr.bf16.mxu0 %v8189_v4  ;;  %5547 = vmatprep.subr.bf16.mxu1 %v8191_v14  ;;  %v9037_v4 = vld [vmem:[#allocation10 + $0x30] sm:$0xff]  }
 0x3e8   : > { %5534 = vmatprep.mubr.bf16.mxu0 %v10512_v24  ;;  %5577 = vmatprep.mubr.bf16.mxu1 %v10512_v24  ;;  %v8167_v24 = vcombine.high %v5052_v43, %v5056_v11  ;;  %v9038_v14 = vld [vmem:[#allocation10 + $0xf0] sm:$0xff]   ;;  %v9057_v43 = vld [vmem:[#allocation10 + $0x8] sm:$0xff]   ;;  %v9060_v11 = vld [vmem:[#allocation10 + $0x40] sm:$0xff]  }
 0x3ea   : > { %5505 = vmatpush1.bf16.msra.mxu0 %v8188_v35  ;;  %5548 = vmatpush1.bf16.msra.mxu1 %v8190_v8  ;;  %v9044_v35 = vld [vmem:[#allocation10 + $0x60] sm:$0xff]  }
 0x3eb   : > { %5506 = vmatprep.subr.bf16.mxu0 %v8181_v55  ;;  %5549 = vmatprep.subr.bf16.mxu1 %v8183_v32  ;;  %v9045_v8 = vld [vmem:[#allocation10 + $0x20] sm:$0xff]  }
 0x3ec   : > { %v9046_v55 = vld [vmem:[#allocation10 + $0xe0] sm:$0xff]  }
 0x3ed   : > { %v9047_v32 = vld [vmem:[#allocation10 + $0xa0] sm:$0xff]  }
 0x3ee   : > { %5507 = vmatpush1.bf16.msra.mxu0 %v8180_v1  ;;  %5550 = vmatpush1.bf16.msra.mxu1 %v8182_v60  ;;  %v9052_v1 = vld [vmem:[#allocation10 + $0x50] sm:$0xff]  }
 0x3ef   : > { %5508 = vmatprep.subr.bf16.mxu0 %v8173_v46  ;;  %5551 = vmatprep.subr.bf16.mxu1 %v8175_v7  ;;  %v9053_v60 = vld [vmem:[#allocation10 + $0x10] sm:$0xff]   ;;  %v9056_v7 = vld [vmem:[#allocation10 + $0x48] sm:$0xff]  }
 0x3f0   : > { %v9054_v46 = vld [vmem:[#allocation10 + $0xd0] sm:$0xff]  }
 0x3f2   : > { %5509 = vmatpush1.bf16.msra.mxu0 %v8172_v59  ;;  %5552 = vmatpush1.bf16.msra.mxu1 %v8174_v28  ;;  %v9059_v59 = vld [vmem:[#allocation10 + $0x88] sm:$0xff]   ;;  %v9062_v28 = vld [vmem:[#allocation10 + $0xc0] sm:$0xff]  }
 0x3f3   : > { %5510 = vmatprep.subr.bf16.mxu0 %v8165_v30  ;;  %5553 = vmatprep.subr.bf16.mxu1 %v8167_v24  ;;  %v9061_v30 = vld [vmem:[#allocation10] sm:$0xff]  }
 0x3f4   : > { %v9063_v24 = vld [vmem:[#allocation10 + $0x80] sm:$0xff]  }
 0x3f6   : > { %5511 = vmatpush1.bf16.msra.mxu0 %v8164_v18  ;;  %5554 = vmatpush1.bf16.msra.mxu1 %v8166_v26 }
 0x3f7   : > { %5512 = vmatprep.subr.bf16.mxu0 %v8157_v63  ;;  %5555 = vmatprep.subr.bf16.mxu1 %v8159_v61 }
 0x3fa   : > { %5513 = vmatpush1.bf16.msra.mxu0 %v8156_v0  ;;  %5556 = vmatpush1.bf16.msra.mxu1 %v8158_v31 }
 0x3fb   : > { %5514 = vmatprep.subr.bf16.mxu0 %v8149_v52  ;;  %5557 = vmatprep.subr.bf16.mxu1 %v8151_v19 }
 0x3fe   : > { %5515 = vmatpush1.bf16.msra.mxu0 %v8148_v37  ;;  %5558 = vmatpush1.bf16.msra.mxu1 %v8150_v44 }
 0x3ff   : > { %5516 = vmatprep.subr.bf16.mxu0 %v8141_v12  ;;  %5559 = vmatprep.subr.bf16.mxu1 %v8143_v42 }
 0x402   : > { %5517 = vmatpush1.bf16.msra.mxu0 %v8140_v5  ;;  %5560 = vmatpush1.bf16.msra.mxu1 %v8142_v9 }
 0x403   : > { %8431 = vmatprep.subr.bf16.mxu1 %v9032_v47  ;;  %8409 = vmatprep.subr.bf16.mxu0 %v9034_v20 }
 0x405   : > { %5535 = vmatmul.mubr.bf16.vlgmr.msra.gmra.mxu0 %v10170_v56  ;;  %5578 = vmatmul.mubr.bf16.vlgmr.msra.gmra.mxu1 %v10170_v56  ;;  %v9042_v56 = vld [vmem:[#allocation10 + $0xe8] sm:$0xff]  }
 0x406   : > { %8432 = vmatpush3.bf16.msra.mxu1 %v9033_v41  ;;  %8410 = vmatpush3.bf16.msra.mxu0 %v9035_v40 }
 0x407   : > { %8433 = vmatprep.subr.bf16.mxu1 %v9036_v6  ;;  %8411 = vmatprep.subr.bf16.mxu0 %v9038_v14 }
 0x40a   : > { %8434 = vmatpush3.bf16.msra.mxu1 %v9037_v4  ;;  %8412 = vmatpush3.bf16.msra.mxu0 %v9039_v53 }
 0x40b   : > { %8435 = vmatprep.subr.bf16.mxu1 %v9040_v39  ;;  %8413 = vmatprep.subr.bf16.mxu0 %v9042_v56  ;;  %v5604_v56 = vld [vmem:[%s10464_s6] sm:$0xff] }
 0x40e   : > { %8436 = vmatpush3.bf16.msra.mxu1 %v9041_v34  ;;  %8414 = vmatpush3.bf16.msra.mxu0 %v9043_v17 }
 0x40f   : > { %8437 = vmatprep.subr.bf16.mxu1 %v9044_v35  ;;  %8415 = vmatprep.subr.bf16.mxu0 %v9046_v55 }
 0x412   : > { %8438 = vmatpush3.bf16.msra.mxu1 %v9045_v8  ;;  %8416 = vmatpush3.bf16.msra.mxu0 %v9047_v32 }
 0x413   : > { %8439 = vmatprep.subr.bf16.mxu1 %v9048_v25  ;;  %8417 = vmatprep.subr.bf16.mxu0 %v9050_v45  ;;  %v5609_v45 = vrot.slane %v5604_v56, %v9737_v16 }
 0x416   : > { %8440 = vmatpush3.bf16.msra.mxu1 %v9049_v62  ;;  %8418 = vmatpush3.bf16.msra.mxu0 %v9051_v54 }
 0x417   : > { %8441 = vmatprep.subr.bf16.mxu1 %v9052_v1  ;;  %8419 = vmatprep.subr.bf16.mxu0 %v9054_v46  ;;  %v5617_v1 = vrot.slane %v5604_v56, %v9740_v48 }
 0x41a   : > { %8442 = vmatpush3.bf16.msra.mxu1 %v9053_v60  ;;  %8420 = vmatpush3.bf16.msra.mxu0 %v9055_v36 }
 0x41b   : > { %8443 = vmatprep.subr.bf16.mxu1 %v9056_v7  ;;  %8421 = vmatprep.subr.bf16.mxu0 %v9058_v50  ;;  %v5613_v50 = vrot.slane %v5604_v56, %v10513_v33  ;;  %v5632_v33 = vsub.s32 6, %v9726_v2 }
 0x41e   : > { %8444 = vmatpush3.bf16.msra.mxu1 %v9057_v43  ;;  %8422 = vmatpush3.bf16.msra.mxu0 %v9059_v59 }
 0x41f   : > { %8445 = vmatprep.subr.bf16.mxu1 %v9060_v11  ;;  %8423 = vmatprep.subr.bf16.mxu0 %v9062_v28  ;;  %v5621_v11 = vrot.slane %v5604_v56, %v10514_v38 }
 0x422   : > { %8446 = vmatpush3.bf16.msra.mxu1 %v9061_v30  ;;  %8424 = vmatpush3.bf16.msra.mxu0 %v9063_v24 }
 0x423   : > { %8475 = vmatprep.subr.bf16.mxu1 %v9064_v51  ;;  %8453 = vmatprep.subr.bf16.mxu0 %v9066_v27 }
 0x425   : > { %v10203_v21 = vpop.f32.mrf.mxu0  ;;  %v10205_v22 = vpop.f32.mrf.mxu1 }
 0x427   : > { %v10207_v18 = vpop.f32.mrf.mxu0  ;;  %v10209_v26 = vpop.f32.mrf.mxu1 }
 0x429   : > { %v4396_v63 = vpop.f32.mrf.mxu0  ;;  %v4439_v61 = vpop.f32.mrf.mxu1 }
 0x42b   : > { %v4398_v13 = vpop.f32.mrf.mxu0  ;;  %v4441_v3 = vpop.f32.mrf.mxu1 }
 0x445   : > { %v10211_v49 = vpop.f32.mrf.mxu0  ;;  %v10213_v10 = vpop.f32.mrf.mxu1 }
 0x447   : > { %v10215_v0 = vpop.f32.mrf.mxu0  ;;  %v10217_v31 = vpop.f32.mrf.mxu1 }
 0x449   : > { %v10219_v52 = vpop.f32.mrf.mxu0  ;;  %v10221_v19 = vpop.f32.mrf.mxu1 }
 0x44b   : > { %v10223_v58 = vpop.f32.mrf.mxu0  ;;  %v10225_v29 = vpop.f32.mrf.mxu1 }
 0x465   : > { %v4885_v57 = vpop.f32.mrf.mxu0  ;;  %v4928_v23 = vpop.f32.mrf.mxu1 }
 0x466   : > { %v4929_v38 = vadd.f32 %v4928_v23, %v10205_v22 }
 0x467   : > { %v4887_v37 = vpop.f32.mrf.mxu0  ;;  %v4930_v44 = vpop.f32.mrf.mxu1 }
 0x469   : > { %v4889_v12 = vpop.f32.mrf.mxu0  ;;  %v4932_v42 = vpop.f32.mrf.mxu1 }
 0x46a   : > { %v4890_v8 = vadd.f32 %v4889_v12, %v4396_v63  ;;  %v4933_v55 = vadd.f32 %v4932_v42, %v4439_v61  ;;  %v4886_v12 = vadd.f32 %v4885_v57, %v10203_v21  ;;  %v4888_v42 = vadd.f32 %v4887_v37, %v10207_v18 }
 0x46b   : > { %v4891_v5 = vpop.f32.mrf.mxu0  ;;  %v4934_v9 = vpop.f32.mrf.mxu1 }
 0x46c   : > { %v4892_v62 = vadd.f32 %v4891_v5, %v4398_v13  ;;  %v4935_v54 = vadd.f32 %v4934_v9, %v4441_v3  ;;  %v5624_v3 = vsub.s32 4, %v9726_v2  ;;  %v4931_v5 = vadd.f32 %v4930_v44, %v10209_v26 }
 0x46d   : > { %v5628_v9 = vsub.s32 5, %v9726_v2 }
 0x46f   : > { %v5629_v57 = vrot.slane %v5604_v56, %v5628_v9 }
 0x485   : > { %v4971_v47 = vpop.f32.mrf.mxu0  ;;  %v5014_v41 = vpop.f32.mrf.mxu1 }
 0x486   : > { %v5015_v21 = vadd.f32 %v5014_v41, %v10213_v10 }
 0x487   : > { %v4973_v20 = vpop.f32.mrf.mxu0  ;;  %v5016_v40 = vpop.f32.mrf.mxu1 }
 0x489   : > { %v10227_v6 = vpop.f32.mrf.mxu0  ;;  %v10229_v4 = vpop.f32.mrf.mxu1 }
 0x48b   : > { %v10231_v14 = vpop.f32.mrf.mxu0  ;;  %v10233_v53 = vpop.f32.mrf.mxu1 }
 0x48c   : > { %v4978_v10 = vadd.f32 %v10231_v14, %v10223_v58 }
 0x4a5   : > { %v5450_v39 = vpop.f32.mrf.mxu0  ;;  %v5493_v34 = vpop.f32.mrf.mxu1 }
 0x4a7   : > { %v5452_v17 = vpop.f32.mrf.mxu0  ;;  %v5495_v35 = vpop.f32.mrf.mxu1 }
 0x4a9   : > { %v5454_v32 = vpop.f32.mrf.mxu0  ;;  %v5497_v25 = vpop.f32.mrf.mxu1 }
 0x4aa   : > { %v5596_v60 = vadd.f32 %v5454_v32, %v4890_v8  ;;  %v5598_v46 = vadd.f32 %v5497_v25, %v4933_v55  ;;  %v5636_v8 = vsub.s32 7, %v9726_v2  ;;  %v5588_v55 = vadd.f32 %v5450_v39, %v4886_v12 }
 0x4ab   : > { %v5456_v7 = vpop.f32.mrf.mxu0  ;;  %v5499_v36 = vpop.f32.mrf.mxu1  ;;  %v5590_v32 = vadd.f32 %v5493_v34, %v4929_v38  ;;  %v5589_v25 = vadd.f32 %v5452_v17, %v4888_v42  ;;  %v4974_v2 = vadd.f32 %v4973_v20, %v10215_v0  ;;  %v5017_v39 = vadd.f32 %v5016_v40, %v10217_v31 }
 0x4ac   : > { %v5597_v43 = vadd.f32 %v5456_v7, %v4892_v62  ;;  %v5654_v59 = vadd.f32 %v5609_v45, %v5596_v60  ;;  %v5656_v28 = vadd.f32 %v5617_v1, %v5598_v46  ;;  %v5599_v30 = vadd.f32 %v5499_v36, %v4935_v54 }
 0x4ad   : > { %v5591_v62 = vadd.f32 %v5495_v35, %v4931_v5  ;;  %v5625_v54 = vrot.slane %v5604_v56, %v5624_v3  ;;  %v5633_v60 = vrot.slane %v5604_v56, %v5632_v33  ;;  %v4972_v46 = vadd.f32 %v4971_v47, %v10211_v49 }
 0x4ae   : > { %v5655_v24 = vadd.f32 %v5613_v50, %v5597_v43  ;;  %v5670_v51 = vmax.f32 %v5654_v59, 0.0  ;;  %v5672_v27 = vmax.f32 %v5656_v28, 0.0  ;;  %v5657_v63 = vadd.f32 %v5621_v11, %v5599_v30 }
 0x4af   : > { %v5637_v22 = vrot.slane %v5604_v56, %v5636_v8  ;;  %v5646_v23 = vadd.f32 %v5609_v45, %v5588_v55  ;;  %v5648_v18 = vadd.f32 %v5617_v1, %v5590_v32  ;;  %v5647_v37 = vadd.f32 %v5613_v50, %v5589_v25 }
 0x4b0   : > { %v5671_v16 = vmax.f32 %v5655_v24, 0.0  ;;  %v10242_v61 = vmax.f32 %v5670_v51, %v5672_v27  ;;  %v5673_v48 = vmax.f32 %v5657_v63, 0.0  ;;  %v5649_v26 = vadd.f32 %v5621_v11, %v5591_v62 }
 0x4b1   : > { %v4976_v35 = vadd.f32 %v10227_v6, %v10219_v52  ;;  %v5019_v49 = vadd.f32 %v10229_v4, %v10221_v19  ;;  %v5662_v0 = vmax.f32 %v5646_v23, 0.0  ;;  %v5664_v20 = vmax.f32 %v5648_v18, 0.0 }
 0x4b2   : > { %v10244_v13 = vmax.f32 %v5671_v16, %v5673_v48  ;;  %v5663_v31 = vmax.f32 %v5647_v37, 0.0  ;;  %v5665_v40 = vmax.f32 %v5649_v26, 0.0  ;;  %v5021_v19 = vadd.f32 %v10233_v53, %v10225_v29 }
 0x4b3   : > { %v5678_v3 = vmax.f32 %v5662_v0, %v5664_v20 }
 0x4b4   : > { %v5679_v33 = vmax.f32 %v5663_v31, %v5665_v40 }
 0x4c5   : > { %v5536_v44 = vpop.f32.mrf.mxu0  ;;  %v5579_v7 = vpop.f32.mrf.mxu1 }
 0x4c6   : > { %v5592_v34 = vadd.f32 %v5536_v44, %v4972_v46  ;;  %v5594_v17 = vadd.f32 %v5579_v7, %v5015_v21 }
 0x4c7   : > { %v5538_v47 = vpop.f32.mrf.mxu0  ;;  %v5581_v41 = vpop.f32.mrf.mxu1 }
 0x4c8   : > { %v5650_v56 = vadd.f32 %v5625_v54, %v5592_v34  ;;  %v5652_v45 = vadd.f32 %v5633_v60, %v5594_v17  ;;  %v5593_v1 = vadd.f32 %v5538_v47, %v4974_v2  ;;  %v5595_v36 = vadd.f32 %v5581_v41, %v5017_v39 }
 0x4c9   : > { %v5540_v50 = vpop.f32.mrf.mxu0  ;;  %v5583_v43 = vpop.f32.mrf.mxu1 }
 0x4ca   : > { %v5666_v11 = vmax.f32 %v5650_v56, 0.0  ;;  %v5668_v52 = vmax.f32 %v5652_v45, 0.0  ;;  %v5651_v6 = vadd.f32 %v5629_v57, %v5593_v1  ;;  %v5653_v59 = vadd.f32 %v5637_v22, %v5595_v36 }
 0x4cb   : > { %v5600_v58 = vadd.f32 %v5540_v50, %v4976_v35  ;;  %v5602_v4 = vadd.f32 %v5583_v43, %v5019_v49  ;;  %v5542_v14 = vpop.f32.mrf.mxu0  ;;  %v5585_v28 = vpop.f32.mrf.mxu1 }
 0x4cc   : > { %v5682_v30 = vmax.f32 %v5666_v11, %v5668_v52  ;;  %v5667_v24 = vmax.f32 %v5651_v6, 0.0  ;;  %v5669_v51 = vmax.f32 %v5653_v59, 0.0  ;;  %v5601_v27 = vadd.f32 %v5542_v14, %v4978_v10 }
 0x4cd   : > { %v5658_v63 = vadd.f32 %v5625_v54, %v5600_v58  ;;  %v5660_v16 = vadd.f32 %v5633_v60, %v5602_v4  ;;  %v5603_v48 = vadd.f32 %v5585_v28, %v5021_v19 }
 0x4ce   : > { %v5683_v12 = vmax.f32 %v5667_v24, %v5669_v51  ;;  %v5659_v38 = vadd.f32 %v5629_v57, %v5601_v27  ;;  %v5686_v8 = vmax.f32 %v5678_v3, %v5682_v30 }
 0x4cf   : > { %v5674_v42 = vmax.f32 %v5658_v63, 0.0  ;;  %v5676_v5 = vmax.f32 %v5660_v16, 0.0  ;;  %v5661_v9 = vadd.f32 %v5637_v22, %v5603_v48 }
 0x4d0   : > { %v5687_v29 = vmax.f32 %v5679_v33, %v5683_v12  ;;  %v5675_v53 = vmax.f32 %v5659_v38, 0.0 }
 0x4d1   : > { %v5684_v55 = vmax.f32 %v5674_v42, %v5676_v5  ;;  %v5677_v32 = vmax.f32 %v5661_v9, 0.0 }
 0x4d2   : > { %v5694_v25 = vcombine.low %v5686_v8, %v5687_v29  ;;  %v5695_v62 = vcombine.high %v5686_v8, %v5687_v29 }
 0x4d3   : > { %v5685_v46 = vmax.f32 %v5675_v53, %v5677_v32  ;;  %v10269_v60 = vmax.f32 %v10242_v61, %v5684_v55 }
 0x4d4   : > { %v5702_v21 = vrot.slane %v5694_v25, %v9796_v15  ;;  %v5709_v54 = vrot.slane %v5695_v62, %v9796_v15  ;;  %v9065_v62 = vld [vmem:[#allocation10 + $0x1b8] sm:$0xff]  }
 0x4d5   : > { %v10272_v57 = vmax.f32 %v10244_v13, %v5685_v46 }
 0x4d6   : > { %v5710_v23 = vcombine.high %v5702_v21, %v5702_v21  ;;  %v5711_v22 = vcombine.high %v5709_v54, %v5709_v54  ;;  %v5736_v18 = vrot.slane %v5702_v21, %v9796_v15  ;;  %v10276_v37 = vrot.slane %v5709_v54, %v9796_v15 }
 0x4d7   : > { %v5712_v26 = vcombine.low %v10269_v60, %v10272_v57  ;;  %v5713_v44 = vcombine.high %v10269_v60, %v10272_v57 }
 0x4d8   : > { %v5737_v7 = vcombine.high %v5736_v18, %v5736_v18  ;;  %v5810_v61 = vsel %vm2098_vm11, %v5736_v18, -inf  ;;  %v5744_v2 = vrot.slane %v5710_v23, %v9796_v15  ;;  %v10285_v13 = vrot.slane %v5711_v22, %v9796_v15  ;;  %v9068_v18 = vld [vmem:[#allocation10 + $0x1f0] sm:$0xff]  }
 0x4d9   : > { %v5811_v39 = vrot.slane %v5810_v61, 4  ;;  %v5753_v34 = vcombine.high %v10276_v37, %v10276_v37  ;;  %v5720_v43 = vrot.slane %v5712_v26, %v9796_v15  ;;  %v9067_v26 = vld [vmem:[#allocation10 + $0x138] sm:$0xff]  }
 0x4da   : > { %v5817_v17 = vsel %vm2098_vm11, %v5737_v7, -inf  ;;  %v5745_v35 = vcombine.high %v5744_v2, %v5744_v2  ;;  %v5761_v49 = vcombine.high %v10285_v13, %v10285_v13  ;;  %v5824_v10 = vsel %vm2098_vm11, %v5744_v2, -inf }
 0x4db   : > { %v5818_v47 = vrot.slane %v5817_v17, 4  ;;  %v5812_v41 = vmax.f32 %v5810_v61, %v5811_v39  ;;  %v5825_v0 = vrot.slane %v5824_v10, 4  ;;  %v5845_v20 = vsel %vm2098_vm11, %v5753_v34, -inf  ;;  %v9070_v61 = vld [vmem:[#allocation10 + $0x170] sm:$0xff]  }
 0x4dc   : > { %v5831_v56 = vsel %vm2098_vm11, %v5745_v35, -inf  ;;  %v5859_v45 = vsel %vm2098_vm11, %v5761_v49, -inf  ;;  %v5846_v50 = vrot.slane %v5845_v20, 4  ;;  %v5728_v27 = vcombine.high %v5720_v43, %v5720_v43  ;;  %v9069_v34 = vld [vmem:[#allocation10 + $0x1b0] sm:$0xff]  }
 0x4dd   : > { %v5832_v1 = vrot.slane %v5831_v56, 4  ;;  %v5860_v36 = vrot.slane %v5859_v45, 4  ;;  %v5819_v31 = vmax.f32 %v5817_v17, %v5818_v47  ;;  %v5813_v40 = vrot.slane %v5812_v41, 2  ;;  %v9072_v17 = vld [vmem:[#allocation10 + $0x1e8] sm:$0xff]   ;;  %v9071_v49 = vld [vmem:[#allocation10 + $0x130] sm:$0xff]  }
 0x4de   : > { %v5826_v6 = vmax.f32 %v5824_v10, %v5825_v0  ;;  %v5847_v58 = vmax.f32 %v5845_v20, %v5846_v50  ;;  %v10298_v32 = vrot.slane %v5728_v27, %v9796_v15  ;;  %v10301_v21 = vrot.slane %v5720_v43, %v9796_v15  ;;  %v9074_v47 = vld [vmem:[#allocation10 + $0x168] sm:$0xff]   ;;  %v9077_v50 = vld [vmem:[#allocation10 + $0x1a0] sm:$0xff]  }
 0x4df   : > { %v5833_v11 = vmax.f32 %v5831_v56, %v5832_v1  ;;  %v5861_v52 = vmax.f32 %v5859_v45, %v5860_v36  ;;  %v5820_v59 = vrot.slane %v5819_v31, 2  ;;  %v5814_v19 = vmax.f32 %v5812_v41, %v5813_v40  ;;  %v9073_v56 = vld [vmem:[#allocation10 + $0x1a8] sm:$0xff]   ;;  %v9076_v1 = vld [vmem:[#allocation10 + $0x1e0] sm:$0xff]  }
 0x4e0   : > { %v5827_v28 = vrot.slane %v5826_v6, 2  ;;  %v5848_v51 = vrot.slane %v5847_v58, 2  ;;  %v5777_v2 = vcombine.high %v10298_v32, %v10298_v32  ;;  %v5769_v35 = vcombine.high %v10301_v21, %v10301_v21  ;;  %v9075_v20 = vld [vmem:[#allocation10 + $0x128] sm:$0xff]   ;;  %v9078_v40 = vld [vmem:[#allocation10 + $0x160] sm:$0xff]  }
 0x4e1   : > { %v5834_v4 = vrot.slane %v5833_v11, 2  ;;  %v5862_v14 = vrot.slane %v5861_v52, 2  ;;  %v5821_v30 = vmax.f32 %v5819_v31, %v5820_v59  ;;  %v5815_v24 = vrot.slane %v5814_v19, 1  ;;  %v9082_v59 = vld [vmem:[#allocation10 + $0x158] sm:$0xff]  }
 0x4e2   : > { %v5828_v48 = vmax.f32 %v5826_v6, %v5827_v28  ;;  %v5849_v33 = vmax.f32 %v5847_v58, %v5848_v51  ;;  %v5852_v10 = vsel %vm2098_vm11, %v10285_v13, -inf  ;;  %v5887_v41 = vsel %vm2098_vm11, %v5777_v2, -inf  ;;  %v9079_v6 = vld [vmem:[#allocation10 + $0x120] sm:$0xff]   ;;  %v9081_v58 = vld [vmem:[#allocation10 + $0x198] sm:$0xff]   ;;  %v9086_v51 = vld [vmem:[#allocation10 + $0x150] sm:$0xff]  }
 0x4e3   : > { %v5835_v63 = vmax.f32 %v5833_v11, %v5834_v4  ;;  %v5863_v16 = vmax.f32 %v5861_v52, %v5862_v14  ;;  %v5822_v3 = vrot.slane %v5821_v30, 1  ;;  %v5816_v12 = vmax.f32 %v5814_v19, %v5815_v24  ;;  %v9080_v11 = vld [vmem:[#allocation10 + $0x1d8] sm:$0xff]   ;;  %v9084_v14 = vld [vmem:[#allocation10 + $0x1d0] sm:$0xff]  }
 0x4e4   : > { %v5829_v5 = vrot.slane %v5828_v48, 1  ;;  %v5850_v8 = vrot.slane %v5849_v33, 1  ;;  %v5838_v45 = vsel %vm2098_vm11, %v10276_v37, -inf  ;;  %v5853_v36 = vrot.slane %v5852_v10, 4  ;;  %v9097_v2 = vld [vmem:[#allocation10 + $0x2b8] sm:$0xff]  }
 0x4e5   : > { %v5836_v38 = vrot.slane %v5835_v63, 1  ;;  %v5864_v42 = vrot.slane %v5863_v16, 1  ;;  %v5823_v9 = vmax.f32 %v5821_v30, %v5822_v3  ;;  %v5922_v54 = vpack.c.bf16 %v5816_v12, %v5816_v12  ;;  %v9083_v30 = vld [vmem:[#allocation10 + $0x118] sm:$0xff]  }
 0x4e6   : > { %v5830_v55 = vmax.f32 %v5828_v48, %v5829_v5  ;;  %v5851_v46 = vmax.f32 %v5849_v33, %v5850_v8  ;;  %v5873_v0 = vsel %vm2098_vm11, %v5769_v35, -inf  ;;  %v5888_v31 = vrot.slane %v5887_v41, 4  ;;  %v9088_v48 = vld [vmem:[#allocation10 + $0x1c8] sm:$0xff]   ;;  %v9087_v33 = vld [vmem:[#allocation10 + $0x110] sm:$0xff]  }
 0x4e7   : > { %v5837_v29 = vmax.f32 %v5835_v63, %v5836_v38  ;;  %v5865_v53 = vmax.f32 %v5863_v16, %v5864_v42  ;;  %v5923_v25 = vpack.c.bf16 %v5823_v9, %v5823_v9  ;;  %v5839_v13 = vrot.slane %v5838_v45, 4  ;;  %v9085_v63 = vld [vmem:[#allocation10 + $0x190] sm:$0xff]   ;;  %v9090_v42 = vld [vmem:[#allocation10 + $0x148] sm:$0xff]  }
 0x4e8   : > { %v5924_v7 = vpack.c.bf16 %v5830_v55, %v5830_v55  ;;  %v5927_v39 = vpack.c.bf16 %v5851_v46, %v5851_v46  ;;  %v5874_v43 = vrot.slane %v5873_v0, 4  ;;  %v5854_v52 = vmax.f32 %v5852_v10, %v5853_v36  ;;  %v9089_v9 = vld [vmem:[#allocation10 + $0x188] sm:$0xff]   ;;  %v9094_v46 = vld [vmem:[#allocation10 + $0x140] sm:$0xff]   ;;  %v9100_v35 = vld [vmem:[#allocation10 + $0x2f0] sm:$0xff]  }
 0x4e9   : > { %v5925_v23 = vpack.c.bf16 %v5837_v29, %v5837_v29  ;;  %v5929_v22 = vpack.c.bf16 %v5865_v53, %v5865_v53  ;;  %6267 = vmatprep.mubr.bf16.mxu1 %v5923_v25  ;;  %v5889_v37 = vmax.f32 %v5887_v41, %v5888_v31  ;;  %v5840_v19 = vmax.f32 %v5838_v45, %v5839_v13  ;;  %v9092_v29 = vld [vmem:[#allocation10 + $0x1c0] sm:$0xff]   ;;  %v9091_v55 = vld [vmem:[#allocation10 + $0x108] sm:$0xff]   ;;  %v9099_v10 = vld [vmem:[#allocation10 + $0x238] sm:$0xff]  }
 0x4ea   : > { %6268 = vmatmul.mubr.bf16.vlgmr.msra.gmra.mxu1 %v5922_v54  ;;  %v5875_v4 = vmax.f32 %v5873_v0, %v5874_v43  ;;  %v5855_v28 = vrot.slane %v5854_v52, 2  ;;  %v5727_v38 = vrot.slane %v5713_v44, %v9796_v15  ;;  %v9096_v44 = vld [vmem:[#allocation10 + $0x2f8] sm:$0xff]   ;;  %v9102_v41 = vld [vmem:[#allocation10 + $0x270] sm:$0xff]   ;;  %v9106_v31 = vld [vmem:[#allocation10 + $0x268] sm:$0xff]  }
 0x4eb   : > { %6131 = vmatprep.mubr.bf16.mxu0 %v5925_v23  ;;  %8476 = vmatpush3.bf16.msra.mxu1 %v9065_v62  ;;  %v5890_v24 = vrot.slane %v5889_v37, 2  ;;  %v5841_v27 = vrot.slane %v5840_v19, 2  ;;  %v9093_v23 = vld [vmem:[#allocation10 + $0x180] sm:$0xff]   ;;  %v9103_v0 = vld [vmem:[#allocation10 + $0x230] sm:$0xff]   ;;  %v9105_v13 = vld [vmem:[#allocation10 + $0x2a8] sm:$0xff]  }
 0x4ec   : > { %6606 = vmatprep.mubr.bf16.mxu1 %v5929_v22  ;;  %6132 = vmatmul.mubr.bf16.vlgmr.msra.gmra.mxu0 %v5924_v7  ;;  %v5876_v16 = vrot.slane %v5875_v4, 2  ;;  %v5856_v3 = vmax.f32 %v5854_v52, %v5855_v28  ;;  %v5729_v62 = vcombine.high %v5727_v38, %v5727_v38  ;;  %v9095_v22 = vld [vmem:[#allocation10 + $0x100] sm:$0xff]   ;;  %v9098_v7 = vld [vmem:[#allocation10 + $0x278] sm:$0xff]  }
 0x4ed   : > { %8477 = vmatprep.subr.bf16.mxu1 %v9068_v18  ;;  %8454 = vmatpush3.bf16.msra.mxu0 %v9067_v26  ;;  %v5891_v12 = vmax.f32 %v5889_v37, %v5890_v24  ;;  %v5842_v5 = vmax.f32 %v5840_v19, %v5841_v27  ;;  %v9108_v43 = vld [vmem:[#allocation10 + $0x2e0] sm:$0xff]  }
 0x4ee   : > { %6436 = vmatprep.mubr.bf16.mxu0 %v5927_v39  ;;  %8455 = vmatprep.subr.bf16.mxu0 %v9070_v61  ;;  %v5877_v8 = vmax.f32 %v5875_v4, %v5876_v16  ;;  %v5857_v53 = vrot.slane %v5856_v3, 1  ;;  %v10318_v61 = vrot.slane %v5729_v62, %v9796_v15  ;;  %v9109_v19 = vld [vmem:[#allocation10 + $0x2a0] sm:$0xff]   ;;  %v9112_v4 = vld [vmem:[#allocation10 + $0x2d8] sm:$0xff]  }
 0x4ef   : > { %8478 = vmatpush3.bf16.msra.mxu1 %v9069_v34  ;;  %v5892_v25 = vrot.slane %v5891_v12, 1  ;;  %v5843_v54 = vrot.slane %v5842_v5, 1  ;;  %v10321_v34 = vrot.slane %v5727_v38, %v9796_v15  ;;  %v9104_v15 = vld [vmem:[#allocation10 + $0x2e8] sm:$0xff]   ;;  %v9111_v28 = vld [vmem:[#allocation10 + $0x220] sm:$0xff]   ;;  %v9117_v38 = vld [vmem:[#allocation10 + $0x290] sm:$0xff]  }
 0x4f0   : > { %8479 = vmatprep.subr.bf16.mxu1 %v9072_v17  ;;  %v5878_v60 = vrot.slane %v5877_v8, 1  ;;  %v5858_v57 = vmax.f32 %v5856_v3, %v5857_v53  ;;  %v9122_v53 = vld [vmem:[#allocation10 + $0x248] sm:$0xff]  }
 0x4f1   : > { %8456 = vmatpush3.bf16.msra.mxu0 %v9071_v49  ;;  %v5893_v18 = vmax.f32 %v5891_v12, %v5892_v25  ;;  %v5844_v26 = vmax.f32 %v5842_v5, %v5843_v54  ;;  %v5785_v36 = vcombine.high %v10321_v34, %v10321_v34  ;;  %v9120_v5 = vld [vmem:[#allocation10 + $0x2c8] sm:$0xff]  }
 0x4f2   : > { %8457 = vmatprep.subr.bf16.mxu0 %v9074_v47  ;;  %v5879_v39 = vmax.f32 %v5877_v8, %v5878_v60  ;;  %v5928_v17 = vpack.c.bf16 %v5858_v57, %v5858_v57  ;;  %v9119_v8 = vld [vmem:[#allocation10 + $0x210] sm:$0xff]   ;;  %v9121_v25 = vld [vmem:[#allocation10 + $0x288] sm:$0xff]   ;;  %v9126_v57 = vld [vmem:[#allocation10 + $0x240] sm:$0xff]  }
 0x4f3   : > { %8480 = vmatpush3.bf16.msra.mxu1 %v9073_v56  ;;  %v5933_v49 = vpack.c.bf16 %v5893_v18, %v5893_v18  ;;  %v5926_v47 = vpack.c.bf16 %v5844_v26, %v5844_v26  ;;  %v5793_v56 = vcombine.high %v10318_v61, %v10318_v61  ;;  %v5901_v52 = vsel %vm2098_vm11, %v5785_v36, -inf }
 0x4f4   : > { %8481 = vmatprep.subr.bf16.mxu1 %v9076_v1  ;;  %v5931_v45 = vpack.c.bf16 %v5879_v39, %v5879_v39  ;;  %v9101_v1 = vld [vmem:[#allocation10 + $0x2b0] sm:$0xff]  }
 0x4f5   : > { %8458 = vmatpush3.bf16.msra.mxu0 %v9075_v20  ;;  %v5880_v20 = vsel %vm2098_vm11, %v10298_v32, -inf }
 0x4f6   : > { %8459 = vmatprep.subr.bf16.mxu0 %v9078_v40  ;;  %v5915_v40 = vsel %vm2098_vm11, %v5793_v56, -inf }
 0x4f7   : > { %8482 = vmatpush3.bf16.msra.mxu1 %v9077_v50  ;;  %v5866_v50 = vsel %vm2098_vm11, %v10301_v21, -inf  ;;  %v5916_v37 = vrot.slane %v5915_v40, 4 }
 0x4f8   : > { %8483 = vmatprep.subr.bf16.mxu1 %v9080_v11  ;;  %v5881_v11 = vrot.slane %v5880_v20, 4  ;;  %v5867_v32 = vrot.slane %v5866_v50, 4 }
 0x4f9   : > { %8460 = vmatpush3.bf16.msra.mxu0 %v9079_v6  ;;  %v9107_v6 = vld [vmem:[#allocation10 + $0x228] sm:$0xff]   ;;  %v5917_v21 = vmax.f32 %v5915_v40, %v5916_v37  ;;  %v5908_v40 = vsel %vm2098_vm11, %v10318_v61, -inf  ;;  %v9142_v37 = vld [vmem:[#allocation10 + $0x360] sm:$0xff]  }
 0x4fa   : > { %8461 = vmatprep.subr.bf16.mxu0 %v9082_v59  ;;  %v9110_v59 = vld [vmem:[#allocation10 + $0x260] sm:$0xff]   ;;  %v5868_v24 = vmax.f32 %v5866_v50, %v5867_v32  ;;  %v9137_v50 = vld [vmem:[#allocation10 + $0x3a8] sm:$0xff]  }
 0x4fb   : > { %8484 = vmatpush3.bf16.msra.mxu1 %v9081_v58  ;;  %v5902_v58 = vrot.slane %v5901_v52, 4  ;;  %v5918_v3 = vrot.slane %v5917_v21, 2  ;;  %v9141_v32 = vld [vmem:[#allocation10 + $0x3a0] sm:$0xff]  }
 0x4fc   : > { %8485 = vmatprep.subr.bf16.mxu1 %v9084_v14  ;;  %v5882_v14 = vmax.f32 %v5880_v20, %v5881_v11  ;;  %v5869_v12 = vrot.slane %v5868_v24, 2  ;;  %v9136_v20 = vld [vmem:[#allocation10 + $0x3e8] sm:$0xff]   ;;  %v9140_v11 = vld [vmem:[#allocation10 + $0x3e0] sm:$0xff]  }
 0x4fd   : > { %8462 = vmatpush3.bf16.msra.mxu0 %v9083_v30  ;;  %v9114_v30 = vld [vmem:[#allocation10 + $0x258] sm:$0xff]   ;;  %v5903_v27 = vmax.f32 %v5901_v52, %v5902_v58  ;;  %v5909_v52 = vrot.slane %v5908_v40, 4  ;;  %v9143_v58 = vld [vmem:[#allocation10 + $0x320] sm:$0xff]  }
 0x4fe   : > { %8463 = vmatprep.subr.bf16.mxu0 %v9086_v51  ;;  %v9113_v51 = vld [vmem:[#allocation10 + $0x298] sm:$0xff]   ;;  %v5883_v16 = vrot.slane %v5882_v14, 2 }
 0x4ff   : > { %8486 = vmatpush3.bf16.msra.mxu1 %v9085_v63  ;;  %v9116_v63 = vld [vmem:[#allocation10 + $0x2d0] sm:$0xff]   ;;  %v5910_v61 = vmax.f32 %v5908_v40, %v5909_v52 }
 0x500   : > { %8487 = vmatprep.subr.bf16.mxu1 %v9088_v48  ;;  %v9115_v48 = vld [vmem:[#allocation10 + $0x218] sm:$0xff]  }
 0x501   : > { %8464 = vmatpush3.bf16.msra.mxu0 %v9087_v33  ;;  %v9118_v33 = vld [vmem:[#allocation10 + $0x250] sm:$0xff]  }
 0x502   : > { %8465 = vmatprep.subr.bf16.mxu0 %v9090_v42  ;;  %v5904_v42 = vrot.slane %v5903_v27, 2 }
 0x503   : > { %8488 = vmatpush3.bf16.msra.mxu1 %v9089_v9  ;;  %v5884_v9 = vmax.f32 %v5882_v14, %v5883_v16 }
 0x504   : > { %8489 = vmatprep.subr.bf16.mxu1 %v9092_v29  ;;  %v5919_v29 = vmax.f32 %v5917_v21, %v5918_v3  ;;  %v5905_v62 = vmax.f32 %v5903_v27, %v5904_v42  ;;  %v5911_v21 = vrot.slane %v5910_v61, 2  ;;  %v9149_v27 = vld [vmem:[#allocation10 + $0x390] sm:$0xff]   ;;  %v9154_v3 = vld [vmem:[#allocation10 + $0x348] sm:$0xff]  }
 0x505   : > { %8466 = vmatpush3.bf16.msra.mxu0 %v9091_v55  ;;  %v5870_v55 = vmax.f32 %v5868_v24, %v5869_v12  ;;  %v5885_v54 = vrot.slane %v5884_v9, 1  ;;  %v9150_v24 = vld [vmem:[#allocation10 + $0x350] sm:$0xff]   ;;  %v9153_v12 = vld [vmem:[#allocation10 + $0x388] sm:$0xff]  }
 0x506   : > { %8467 = vmatprep.subr.bf16.mxu0 %v9094_v46  ;;  %v9124_v46 = vld [vmem:[#allocation10 + $0x2c0] sm:$0xff]   ;;  %v5920_v60 = vrot.slane %v5919_v29, 1  ;;  %v5906_v18 = vrot.slane %v5905_v62, 1  ;;  %v5912_v16 = vmax.f32 %v5910_v61, %v5911_v21 }
 0x507   : > { %8490 = vmatpush3.bf16.msra.mxu1 %v9093_v23  ;;  %v9123_v23 = vld [vmem:[#allocation10 + $0x208] sm:$0xff]   ;;  %v5886_v26 = vmax.f32 %v5884_v9, %v5885_v54  ;;  %v9158_v9 = vld [vmem:[#allocation10 + $0x340] sm:$0xff]   ;;  %v9160_v54 = vld [vmem:[%s10467_s9 + $0x38] sm:$0xff]  }
 0x508   : > { %8519 = vmatprep.subr.bf16.mxu1 %v9096_v44  ;;  %v5871_v44 = vrot.slane %v5870_v55, 1  ;;  %v5921_v39 = vmax.f32 %v5919_v29, %v5920_v60  ;;  %v5913_v42 = vrot.slane %v5912_v16, 1  ;;  %v9157_v29 = vld [vmem:[#allocation10 + $0x380] sm:$0xff]   ;;  %v9161_v60 = vld [vmem:[%s10467_s9 + $0x30] sm:$0xff]  }
 0x509   : > { %8468 = vmatpush3.bf16.msra.mxu0 %v9095_v22  ;;  %v9125_v22 = vld [vmem:[#allocation10 + $0x280] sm:$0xff]  }
 0x50a   : > { %6607 = vmatmul.mubr.bf16.vlgmr.msra.gmra.mxu1 %v5928_v17  ;;  %8497 = vmatprep.subr.bf16.mxu0 %v9098_v7  ;;  %v9128_v7 = vld [vmem:[#allocation10 + $0x3f8] sm:$0xff]   ;;  %v5872_v17 = vmax.f32 %v5870_v55, %v5871_v44  ;;  %v5937_v56 = vpack.c.bf16 %v5921_v39, %v5921_v39  ;;  %v9159_v55 = vld [vmem:[#allocation10 + $0x300] sm:$0xff]  }
 0x50b   : > { %8520 = vmatpush3.bf16.msra.mxu1 %v9097_v2  ;;  %6946 = vmatprep.mubr.bf16.mxu1 %v5933_v49  ;;  %v9127_v2 = vld [vmem:[#allocation10 + $0x200] sm:$0xff]   ;;  %v9129_v49 = vld [vmem:[#allocation10 + $0x3b8] sm:$0xff]  }
 0x50c   : > { %6437 = vmatmul.mubr.bf16.vlgmr.msra.gmra.mxu0 %v5926_v47  ;;  %8521 = vmatprep.subr.bf16.mxu1 %v9100_v35  ;;  %v9130_v35 = vld [vmem:[#allocation10 + $0x378] sm:$0xff]   ;;  %v5932_v47 = vpack.c.bf16 %v5886_v26, %v5886_v26 }
 0x50d   : > { %8498 = vmatpush3.bf16.msra.mxu0 %v9099_v10  ;;  %6776 = vmatprep.mubr.bf16.mxu0 %v5931_v45  ;;  %v5907_v10 = vmax.f32 %v5905_v62, %v5906_v18  ;;  %v9131_v45 = vld [vmem:[#allocation10 + $0x338] sm:$0xff]   ;;  %v9169_v18 = vld [vmem:[%s10469_s11 + $0x30] sm:$0xff]  }
 0x50e   : > { %8499 = vmatprep.subr.bf16.mxu0 %v9102_v41  ;;  %v9132_v41 = vld [vmem:[#allocation10 + $0x3f0] sm:$0xff]   ;;  %v9163_v44 = vld [vmem:[%s10467_s9 + $0x20] sm:$0xff]  }
 0x50f   : > { %8522 = vmatpush3.bf16.msra.mxu1 %v9101_v1  ;;  %v5930_v1 = vpack.c.bf16 %v5872_v17, %v5872_v17  ;;  %v5935_v36 = vpack.c.bf16 %v5907_v10, %v5907_v10 }
 0x510   : > { %8523 = vmatprep.subr.bf16.mxu1 %v9104_v15  ;;  %v9134_v15 = vld [vmem:[#allocation10 + $0x370] sm:$0xff]  }
 0x511   : > { %8500 = vmatpush3.bf16.msra.mxu0 %v9103_v0  ;;  %v9133_v0 = vld [vmem:[#allocation10 + $0x3b0] sm:$0xff]  }
 0x512   : > { %8501 = vmatprep.subr.bf16.mxu0 %v9106_v31  ;;  %v9135_v31 = vld [vmem:[#allocation10 + $0x330] sm:$0xff]  }
 0x513   : > { %8524 = vmatpush3.bf16.msra.mxu1 %v9105_v13  ;;  %v9138_v13 = vld [vmem:[#allocation10 + $0x368] sm:$0xff]  }
 0x514   : > { %8525 = vmatprep.subr.bf16.mxu1 %v9108_v43  ;;  %v5894_v43 = vsel %vm2098_vm11, %v10321_v34, -inf  ;;  %v9145_v34 = vld [vmem:[#allocation10 + $0x398] sm:$0xff]  }
 0x515   : > { %8502 = vmatpush3.bf16.msra.mxu0 %v9107_v6  ;;  %v9139_v6 = vld [vmem:[#allocation10 + $0x328] sm:$0xff]  }
 0x516   : > { %8503 = vmatprep.subr.bf16.mxu0 %v9110_v59  ;;  %v5895_v59 = vrot.slane %v5894_v43, 4 }
 0x517   : > { %8526 = vmatpush3.bf16.msra.mxu1 %v9109_v19  ;;  %v9144_v19 = vld [vmem:[#allocation10 + $0x3d8] sm:$0xff]  }
 0x518   : > { %8527 = vmatprep.subr.bf16.mxu1 %v9112_v4  ;;  %v9146_v4 = vld [vmem:[#allocation10 + $0x358] sm:$0xff]   ;;  %v5896_v14 = vmax.f32 %v5894_v43, %v5895_v59 }
 0x519   : > { %8504 = vmatpush3.bf16.msra.mxu0 %v9111_v28  ;;  %v9148_v28 = vld [vmem:[#allocation10 + $0x3d0] sm:$0xff]  }
 0x51a   : > { %8505 = vmatprep.subr.bf16.mxu0 %v9114_v30  ;;  %v9147_v30 = vld [vmem:[#allocation10 + $0x318] sm:$0xff]  }
 0x51b   : > { %8528 = vmatpush3.bf16.msra.mxu1 %v9113_v51  ;;  %v5897_v51 = vrot.slane %v5896_v14, 2 }
 0x51c   : > { %8529 = vmatprep.subr.bf16.mxu1 %v9116_v63  ;;  %v9152_v63 = vld [vmem:[#allocation10 + $0x3c8] sm:$0xff]  }
 0x51d   : > { %8506 = vmatpush3.bf16.msra.mxu0 %v9115_v48  ;;  %v9151_v48 = vld [vmem:[#allocation10 + $0x310] sm:$0xff]  }
 0x51e   : > { %8507 = vmatprep.subr.bf16.mxu0 %v9118_v33  ;;  %v5898_v33 = vmax.f32 %v5896_v14, %v5897_v51 }
 0x51f   : > { %8530 = vmatpush3.bf16.msra.mxu1 %v9117_v38  ;;  %v9156_v38 = vld [vmem:[#allocation10 + $0x3c0] sm:$0xff]  }
 0x520   : > { %8531 = vmatprep.subr.bf16.mxu1 %v9120_v5  ;;  %v9155_v5 = vld [vmem:[#allocation10 + $0x308] sm:$0xff]  }
 0x521   : > { %8508 = vmatpush3.bf16.msra.mxu0 %v9119_v8  ;;  %v5899_v8 = vrot.slane %v5898_v33, 1 }
 0x522   : > { %8509 = vmatprep.subr.bf16.mxu0 %v9122_v53  ;;  %v5914_v53 = vmax.f32 %v5912_v16, %v5913_v42 }
 0x523   : > { %8532 = vmatpush3.bf16.msra.mxu1 %v9121_v25  ;;  %v5900_v25 = vmax.f32 %v5898_v33, %v5899_v8  ;;  %v8328_v8 = vld [vmem:[%s10466_s8] ss:$0 sm:$0xff] }
 0x524   : > { %8533 = vmatprep.subr.bf16.mxu1 %v9124_v46  ;;  %v5936_v62 = vpack.c.bf16 %v5914_v53, %v5914_v53 }
 0x525   : > { %8510 = vmatpush3.bf16.msra.mxu0 %v9123_v23  ;;  %v5934_v46 = vpack.c.bf16 %v5900_v25, %v5900_v25  ;;  %v9324_v23 = vmov 0.0  }
 0x526   : > { %8511 = vmatprep.subr.bf16.mxu0 %v9126_v57  ;;  %v9162_v57 = vld [vmem:[%s10467_s9 + $0x28] sm:$0xff]  }
 0x527   : > { %8534 = vmatpush3.bf16.msra.mxu1 %v9125_v22  ;;  %v9168_v22 = vld [vmem:[%s10469_s11 + $0x38] sm:$0xff]  }
 0x528   : > { %8563 = vmatprep.subr.bf16.mxu1 %v9128_v7  ;;  %v9164_v7 = vld [vmem:[%s10467_s9 + $0x18] sm:$0xff]  }
 0x529   : > { %8512 = vmatpush3.bf16.msra.mxu0 %v9127_v2 }
 0x52a   : > { %6947 = vmatmul.mubr.bf16.vlgmr.msra.gmra.mxu1 %v5932_v47  ;;  %8541 = vmatprep.subr.bf16.mxu0 %v9130_v35  ;;  %v9170_v35 = vld [vmem:[%s10469_s11 + $0x28] sm:$0xff]  }
 0x52b   : > { %8564 = vmatpush3.bf16.msra.mxu1 %v9129_v49  ;;  %7286 = vmatprep.mubr.bf16.mxu1 %v5937_v56 }
 0x52c   : > { %6777 = vmatmul.mubr.bf16.vlgmr.msra.gmra.mxu0 %v5930_v1  ;;  %8565 = vmatprep.subr.bf16.mxu1 %v9132_v41  ;;  %v9165_v41 = vld [vmem:[%s10467_s9 + $0x10] sm:$0xff]  }
 0x52d   : > { %8542 = vmatpush3.bf16.msra.mxu0 %v9131_v45  ;;  %7116 = vmatprep.mubr.bf16.mxu0 %v5935_v36  ;;  %v9166_v36 = vld [vmem:[%s10467_s9 + $0x8] sm:$0xff]  }
 0x52e   : > { %8543 = vmatprep.subr.bf16.mxu0 %v9134_v15 }
 0x52f   : > { %8566 = vmatpush3.bf16.msra.mxu1 %v9133_v0  ;;  %v9167_v0 = vld [vmem:[%s10467_s9] sm:$0xff]  }
 0x530   : > { %8567 = vmatprep.subr.bf16.mxu1 %v9136_v20 }
 0x531   : > { %8544 = vmatpush3.bf16.msra.mxu0 %v9135_v31 }
 0x532   : > { %8545 = vmatprep.subr.bf16.mxu0 %v9138_v13 }
 0x533   : > { %8568 = vmatpush3.bf16.msra.mxu1 %v9137_v50 }
 0x534   : > { %8569 = vmatprep.subr.bf16.mxu1 %v9140_v11 }
 0x535   : > { %8546 = vmatpush3.bf16.msra.mxu0 %v9139_v6 }
 0x536   : > { %8547 = vmatprep.subr.bf16.mxu0 %v9142_v37 }
 0x537   : > { %8570 = vmatpush3.bf16.msra.mxu1 %v9141_v32 }
 0x538   : > { %8571 = vmatprep.subr.bf16.mxu1 %v9144_v19 }
 0x539   : > { %8548 = vmatpush3.bf16.msra.mxu0 %v9143_v58 }
 0x53a   : > { %8549 = vmatprep.subr.bf16.mxu0 %v9146_v4 }
 0x53b   : > { %8572 = vmatpush3.bf16.msra.mxu1 %v9145_v34 }
 0x53c   : > { %8573 = vmatprep.subr.bf16.mxu1 %v9148_v28 }
 0x53d   : > { %8550 = vmatpush3.bf16.msra.mxu0 %v9147_v30 }
 0x53e   : > { %8551 = vmatprep.subr.bf16.mxu0 %v9150_v24 }
 0x53f   : > { %8574 = vmatpush3.bf16.msra.mxu1 %v9149_v27 }
 0x540   : > { %8575 = vmatprep.subr.bf16.mxu1 %v9152_v63 }
 0x541   : > { %8552 = vmatpush3.bf16.msra.mxu0 %v9151_v48 }
 0x542   : > { %8553 = vmatprep.subr.bf16.mxu0 %v9154_v3 }
 0x543   : > { %8576 = vmatpush3.bf16.msra.mxu1 %v9153_v12 }
 0x544   : > { %8577 = vmatprep.subr.bf16.mxu1 %v9156_v38 }
 0x545   : > { %8554 = vmatpush3.bf16.msra.mxu0 %v9155_v5 }
 0x546   : > { %8555 = vmatprep.subr.bf16.mxu0 %v9158_v9 }
 0x547   : > { %8578 = vmatpush3.bf16.msra.mxu1 %v9157_v29 }
 0x548   : > { %8632 = vmatprep.subr.bf16.mxu1 %v9324_v23 }
 0x549   : > { %8556 = vmatpush3.bf16.msra.mxu0 %v9159_v55 }
 0x54a   : > { %7287 = vmatmul.mubr.bf16.vlgmr.msra.gmra.mxu1 %v5936_v62  ;;  %8612 = vmatprep.subr.bf16.mxu0 %v9324_v23 }
 0x54b   : > { %8648 = vmatprep.mubr.msk.bf16.mxu1 %vm9325_vm2, %v9324_v23  ;;  %8633 = vmatpush3.bf16.msra.mxu1 %v9168_v22  ;;  %v9178_v22 = vld [vmem:[%s10471_s13 + $0x28] sm:$0xff]  }
 0x54c   : > { %7117 = vmatmul.mubr.bf16.vlgmr.msra.gmra.mxu0 %v5934_v46  ;;  %8634 = vmatprep.subr.bf16.mxu1 %v9324_v23  ;;  %v9171_v46 = vld [vmem:[%s10469_s11 + $0x20] sm:$0xff]  }
 0x54d   : > { %8613 = vmatpush3.bf16.msra.mxu0 %v9160_v54  ;;  %8628 = vmatprep.mubr.msk.bf16.mxu0 %vm9325_vm2, %v9324_v23  ;;  %v9172_v54 = vld [vmem:[%s10469_s11 + $0x18] sm:$0xff]  }
 0x54e   : > { %8614 = vmatprep.subr.bf16.mxu0 %v9324_v23 }
 0x54f   : > { %8635 = vmatpush3.bf16.msra.mxu1 %v9169_v18  ;;  %v9174_v18 = vld [vmem:[%s10469_s11 + $0x8] sm:$0xff]  }
 0x550   : > { %8636 = vmatprep.subr.bf16.mxu1 %v9324_v23 }
 0x551   : > { %8615 = vmatpush3.bf16.msra.mxu0 %v9161_v60  ;;  %v9176_v60 = vld [vmem:[%s10471_s13 + $0x38] sm:$0xff]  }
 0x552   : > { %8616 = vmatprep.subr.bf16.mxu0 %v9324_v23 }
 0x553   : > { %8637 = vmatpush3.bf16.msra.mxu1 %v9170_v35 }
 0x554   : > { %8638 = vmatprep.subr.bf16.mxu1 %v9324_v23 }
 0x555   : > { %8617 = vmatpush3.bf16.msra.mxu0 %v9162_v57  ;;  %v9177_v57 = vld [vmem:[%s10471_s13 + $0x30] sm:$0xff]  }
 0x556   : > { %8618 = vmatprep.subr.bf16.mxu0 %v9324_v23 }
 0x557   : > { %8639 = vmatpush3.bf16.msra.mxu1 %v9171_v46 }
 0x558   : > { %8640 = vmatprep.subr.bf16.mxu1 %v9324_v23 }
 0x559   : > { %8619 = vmatpush3.bf16.msra.mxu0 %v9163_v44  ;;  %v9173_v44 = vld [vmem:[%s10469_s11 + $0x10] sm:$0xff]  }
 0x55a   : > { %8620 = vmatprep.subr.bf16.mxu0 %v9324_v23 }
 0x55b   : > { %8641 = vmatpush3.bf16.msra.mxu1 %v9172_v54 }
 0x55c   : > { %8642 = vmatprep.subr.bf16.mxu1 %v9324_v23 }
 0x55d   : > { %8621 = vmatpush3.bf16.msra.mxu0 %v9164_v7  ;;  %v9175_v7 = vld [vmem:[%s10469_s11] sm:$0xff]  }
 0x55e   : > { %8622 = vmatprep.subr.bf16.mxu0 %v9324_v23 }
 0x55f   : > { %8643 = vmatpush3.bf16.msra.mxu1 %v9173_v44 }
 0x560   : > { %8644 = vmatprep.subr.bf16.mxu1 %v9324_v23 }
 0x561   : > { %8623 = vmatpush3.bf16.msra.mxu0 %v9165_v41 }
 0x562   : > { %8624 = vmatprep.subr.bf16.mxu0 %v9324_v23 }
 0x563   : > { %8645 = vmatpush3.bf16.msra.mxu1 %v9174_v18 }
 0x564   : > { %8646 = vmatprep.subr.bf16.mxu1 %v9324_v23 }
 0x565   : > { %8625 = vmatpush3.bf16.msra.mxu0 %v9166_v36  ;;  %v8338_v36 = vld [vmem:[%s10470_s12] ss:$0 sm:$0xff] }
 0x566   : > { %8626 = vmatprep.subr.bf16.mxu0 %v9324_v23 }
 0x567   : > { %8647 = vmatpush3.bf16.msra.mxu1 %v9175_v7 }
 0x569   : > { %8627 = vmatpush3.bf16.msra.mxu0 %v9167_v0 }
 0x56a   : > { %8652 = vmatprep.subr.bf16.mxu0 %v9324_v23 }
 0x5aa   : > { %v8447_v26 = vpop.f32.mrf.mxu1 }
 0x5ac   : > { %v8425_v2 = vpop.f32.mrf.mxu0  ;;  %v8448_v39 = vpop.f32.mrf.mxu1 }
 0x5ad   : > { %v8449_v17 = vadd.f32 %v8448_v39, %v8447_v26  ;;  %v9179_v26 = vld [vmem:[%s10471_s13 + $0x20] sm:$0xff]   ;;  %v9181_v39 = vld [vmem:[%s10471_s13 + $0x10] sm:$0xff]  }
 0x5ae   : > { %v8426_v49 = vpop.f32.mrf.mxu0  ;;  %v8450_v10 = vpop.f32.mrf.mxu1 }
 0x5af   : > { %v8427_v47 = vadd.f32 %v8426_v49, %v8425_v2  ;;  %v9180_v2 = vld [vmem:[%s10471_s13 + $0x18] sm:$0xff]  }
 0x5b0   : > { %v8428_v56 = vpop.f32.mrf.mxu0  ;;  %v8451_v45 = vpop.f32.mrf.mxu1 }
 0x5b1   : > { %v6270_v1 = vadd.f32 %v8449_v17, %v8427_v47  ;;  %v8329_v17 = vld [vmem:[%s10468_s10] ss:$0 sm:$0xff] }
 0x5b2   : > { %v8429_v15 = vpop.f32.mrf.mxu0 }
 0x5b3   : > { %v9183_v15 = vld [vmem:[%s10471_s13] sm:$0xff]  }
 0x5ca   : > { %v8491_v20 = vpop.f32.mrf.mxu1 }
 0x5cc   : > { %v8469_v31 = vpop.f32.mrf.mxu0  ;;  %v8492_v40 = vpop.f32.mrf.mxu1 }
 0x5cd   : > { %v8493_v28 = vadd.f32 %v8492_v40, %v8491_v20 }
 0x5ce   : > { %v8470_v13 = vpop.f32.mrf.mxu0  ;;  %v8494_v50 = vpop.f32.mrf.mxu1 }
 0x5cf   : > { %v8471_v14 = vadd.f32 %v8470_v13, %v8469_v31 }
 0x5d0   : > { %v8472_v43 = vpop.f32.mrf.mxu0  ;;  %v8495_v11 = vpop.f32.mrf.mxu1 }
 0x5d1   : > { %v6444_v34 = vadd.f32 %v8471_v14, %v6270_v1  ;;  %v9182_v1 = vld [vmem:[%s10471_s13 + $0x8] sm:$0xff]   ;;  %v8347_v11 = vld [vmem:[%s10472_s14] ss:$0 sm:$0xff] }
 0x5d2   : > { %v8473_v52 = vpop.f32.mrf.mxu0 }
 0x5d3   : > { %v6614_v30 = vadd.f32 %v8493_v28, %v6444_v34 }
 0x5ea   : > { %v8535_v6 = vpop.f32.mrf.mxu1 }
 0x5ec   : > { %v8513_v37 = vpop.f32.mrf.mxu0  ;;  %v8536_v59 = vpop.f32.mrf.mxu1 }
 0x5ed   : > { %v8537_v16 = vadd.f32 %v8536_v59, %v8535_v6 }
 0x5ee   : > { %v8514_v32 = vpop.f32.mrf.mxu0  ;;  %v8538_v19 = vpop.f32.mrf.mxu1 }
 0x5ef   : > { %v8515_v21 = vadd.f32 %v8514_v32, %v8513_v37 }
 0x5f0   : > { %v8516_v61 = vpop.f32.mrf.mxu0  ;;  %v8539_v58 = vpop.f32.mrf.mxu1 }
 0x5f1   : > { %v6784_v51 = vadd.f32 %v8515_v21, %v6614_v30 }
 0x5f2   : > { %v8517_v4 = vpop.f32.mrf.mxu0 }
 0x5f3   : > { %v6954_v33 = vadd.f32 %v8537_v16, %v6784_v51 }
 0x60a   : > { %v8579_v24 = vpop.f32.mrf.mxu1 }
 0x60c   : > { %v8557_v27 = vpop.f32.mrf.mxu0  ;;  %v8580_v63 = vpop.f32.mrf.mxu1 }
 0x60d   : > { %v8581_v5 = vadd.f32 %v8580_v63, %v8579_v24 }
 0x60e   : > { %v8558_v48 = vpop.f32.mrf.mxu0  ;;  %v8582_v3 = vpop.f32.mrf.mxu1 }
 0x60f   : > { %v8559_v12 = vadd.f32 %v8558_v48, %v8557_v27 }
 0x610   : > { %v8560_v38 = vpop.f32.mrf.mxu0  ;;  %v8583_v42 = vpop.f32.mrf.mxu1 }
 0x611   : > { %v7124_v9 = vadd.f32 %v8559_v12, %v6954_v33 }
 0x612   : > { %v8561_v29 = vpop.f32.mrf.mxu0 }
 0x613   : > { %v7294_v53 = vadd.f32 %v8581_v5, %v7124_v9 }
 0x615   : > { %v7302_v55 = vadd.f32 %v8328_v8, %v7294_v53 }
 0x617   : > { %9184 = vtanh.f32 %v7302_v55 }
 0x624   : > { %v9185_v25 = vpop.eup %9184 }
 0x625   : > { %v7304_v62 = vpack.c.bf16 %v9185_v25, %v9185_v25 }
 0x627   : > { %8629 = vmatmul.mubr.bf16.vlgmr.msra.gmra.mxu0 %v7304_v62 }
 0x628   : > { %8668 = vmatprep.mubr.msk.bf16.mxu0 %vm9325_vm2, %v9324_v23  ;;  %8653 = vmatpush3.bf16.msra.mxu0 %v9176_v60 }
 0x629   : > { %8654 = vmatprep.subr.bf16.mxu0 %v9324_v23 }
 0x62c   : > { %8655 = vmatpush3.bf16.msra.mxu0 %v9177_v57 }
 0x62d   : > { %8656 = vmatprep.subr.bf16.mxu0 %v9324_v23 }
 0x630   : > { %8657 = vmatpush3.bf16.msra.mxu0 %v9178_v22 }
 0x631   : > { %8658 = vmatprep.subr.bf16.mxu0 %v9324_v23 }
 0x634   : > { %8659 = vmatpush3.bf16.msra.mxu0 %v9179_v26 }
 0x635   : > { %8660 = vmatprep.subr.bf16.mxu0 %v9324_v23 }
 0x638   : > { %8661 = vmatpush3.bf16.msra.mxu0 %v9180_v2 }
 0x639   : > { %8662 = vmatprep.subr.bf16.mxu0 %v9324_v23 }
 0x63c   : > { %8663 = vmatpush3.bf16.msra.mxu0 %v9181_v39 }
 0x63d   : > { %8664 = vmatprep.subr.bf16.mxu0 %v9324_v23 }
 0x640   : > { %8665 = vmatpush3.bf16.msra.mxu0 %v9182_v1 }
 0x641   : > { %8666 = vmatprep.subr.bf16.mxu0 %v9324_v23 }
 0x644   : > { %8667 = vmatpush3.bf16.msra.mxu0 %v9183_v15 }
 0x6e7   : > { %v7410_v35 = vpop.f32.mrf.mxu0 }
 0x6e8   : > { %v7411_v49 = vadd.f32 %v8329_v17, %v7410_v35 }
 0x6e9   : > { %v8630_v10 = vpop.f32.mrf.mxu0 }
 0x6ea   : > { %9186 = vtanh.f32 %v7411_v49 }
 0x6eb   : > { %v7413_v47 = vpop.f32.mrf.mxu0 }
 0x6ed   : > { %v8631_v41 = vpop.f32.mrf.mxu0 }
 0x6f7   : > { %v9187_v56 = vpop.eup %9186 }
 0x6f8   : > { %v7417_v45 = vpack.c.bf16 %v9187_v56, %v9187_v56 }
 0x6fa   : > { %8649 = vmatmul.mubr.bf16.vlgmr.msra.gmra.mxu1 %v7417_v45 }
 0x7ba   : > { %v7523_v0 = vpop.f32.mrf.mxu1 }
 0x7bb   : > { %v7524_v20 = vadd.f32 %v8338_v36, %v7523_v0 }
 0x7bc   : > { %v8650_v31 = vpop.f32.mrf.mxu1 }
 0x7bd   : > { %v7529_v40 = vmax.f32 %v7524_v20, 0.0 }
 0x7be   : > { %v7526_v13 = vpop.f32.mrf.mxu1 }
 0x7bf   : > { %v7530_v50 = vpack.c.bf16 %v7529_v40, %v7529_v40 }
 0x7c0   : > { %v8651_v43 = vpop.f32.mrf.mxu1 }
 0x7c1   : > { %8669 = vmatmul.mubr.bf16.vlgmr.msra.gmra.mxu0 %v7530_v50 }
 0x881   : > { %v7636_v23 = vpop.f32.mrf.mxu0 }
 0x882   : > { %v7637_v52 = vadd.f32 %v8347_v11, %v7636_v23 }
 0x883   : > { %v8670_v6 = vpop.f32.mrf.mxu0 }
 0x884   : > { %7642 = vst [vmem:[%s551_s17] sm:$0xff] %v7637_v52 }
 0x885   : > { %v7639_v37 = vpop.f32.mrf.mxu0 }
 0x887   : > { %v8671_v59 = vpop.f32.mrf.mxu0 }
 0x888 PF: > { %s28_s18 = sadd.s32 1, %s9310_s18  }
 0x889   : > { %p25_p3 = scmp.ge.s32.totalorder %s28_s18, 4  }
 0x88b   :  { %27 = sbr.rel (!%p25_p3) target bundleno = 3 (0x3), region = 140 }
 0x890   :  { %7662 = vsyncpa [#allocation6], 1 }
 0x891   :  { %7664 = vsyncpa [#allocation6 + $0x1], 1 }
 0x892   :  { %7665 = vsyncpa [#allocation8], 1 }
 0x893   :  { %7666 = vsyncpa [#allocation11], 1 }

</bundles_post_ra>
